<compile_context>
chip_gen: v7x
topology: tpu7x:2x2x1
jax: 0.10.0
libtpu: 0.0.40
codegen_flags: <defaults>
</compile_context>

<pallas_src>
import numpy as np
import jax
import jax.numpy as jnp
from jax.experimental import pallas as pl
from jax.experimental.pallas import tpu as pltpu


# ---------------------------------------------------------------------------
# Static shape configuration.
# ---------------------------------------------------------------------------
L_IN, D_IN = 98, 768                  # BERT sequence length / hidden size
C1, K1, L1C, L1P = 128, 8, 46, 44     # conv1: out-ch, kernel, conv-len, pool-len
C2, K2, L2C, L2P = 64, 8, 19, 17      # conv2
C3, K3, L3C, L3P = 32, 3, 8, 6        # conv3
T, H = 6, 16                          # LSTM steps / hidden size
D1 = 64                               # dense1 out features
PH = 49                               # rows per stride-2 phase of the 98-row input
PH_PAD = 56                           # phase rows padded to a multiple of 8
X_ROWS = 2 * PH_PAD                   # 112 rows per sample in the host layout


# ---------------------------------------------------------------------------
# The single fused kernel (one batch sample per grid step).
# ---------------------------------------------------------------------------
def fused_kernel(x_ref, w1_ref, s1_ref, w2_ref, s2_ref, w3_ref, s3_ref,
                 wih_ref, lb_ref, wcomb_ref, bd1_ref, wd2_ref, bd2_ref,
                 o_ref, p1_ref, p2_ref):
    f32 = jnp.float32
    bf16 = jnp.bfloat16

    def pool3(h, n_out):
        # MaxPool1d(kernel_size=3, stride=1) on in-register values.
        return jnp.maximum(jnp.maximum(h[0:n_out], h[1:n_out + 1]),
                           h[2:n_out + 2])

    # ---- conv1: im2col as ONE matmul.  Tap k is a contiguous, stride-free
    #      window of phase (k%2) starting at row k//2 (phases are 8-aligned).
    taps1 = [x_ref[pl.ds((k % 2) * PH_PAD + k // 2, L1C), :] for k in range(K1)]
    lhs1 = jnp.concatenate(taps1, axis=-1).astype(bf16)           # (46, 6144)
    h1 = jnp.dot(lhs1, w1_ref[...], preferred_element_type=f32) + s1_ref[...]
    h1 = jnp.maximum(h1, 0.0)                                     # (46, 128)
    p1_ref[...] = pool3(h1, L1P)                                  # (44, 128)

    # ---- conv2: 2 strided decimation reads (even/odd), then ONE matmul.
    pe = p1_ref[pl.ds(0, 22, 2), :]                               # p1[0::2]
    po = p1_ref[pl.ds(1, 22, 2), :]                               # p1[1::2]
    taps2 = [(pe if k % 2 == 0 else po)[k // 2:k // 2 + L2C, :]
             for k in range(K2)]
    lhs2 = jnp.concatenate(taps2, axis=-1).astype(bf16)           # (19, 1024)
    h2 = jnp.dot(lhs2, w2_ref[...], preferred_element_type=f32) + s2_ref[...]
    h2 = jnp.maximum(h2, 0.0)                                     # (19, 64)
    p2_ref[...] = pool3(h2, L2P)                                  # (17, 64)

    # ---- conv3: tiny; keep 3 accumulated f32 dots (avoids an unaligned
    #      64-lane concat for negligible FLOPs).
    pe2 = p2_ref[pl.ds(0, 9, 2), :]                               # p2[0::2]
    po2 = p2_ref[pl.ds(1, 8, 2), :]                               # p2[1::2]
    taps3 = [pe2[0:L3C, :], po2[0:L3C, :], pe2[1:1 + L3C, :]]
    acc3 = jnp.zeros((L3C, C3), f32)
    for k in range(K3):
        acc3 = acc3 + jnp.dot(taps3[k], w3_ref[k], preferred_element_type=f32)
    h3 = jnp.maximum(acc3 + s3_ref[...], 0.0)                     # (8, 32)
    p3 = pool3(h3, T)                                             # (6, 32)

    # ---- LSTM: input->gate projection for all T steps in one hoisted matmul.
    #      Gate order i|f|g|o; the 'g' columns of wih/whh/lb are pre-scaled by
    #      2 host-side so a single sigmoid covers all 64 lanes
    #      (tanh(a) = 2*sigmoid(2a) - 1).
    xg = jnp.dot(p3, wih_ref[...], preferred_element_type=f32) + lb_ref[...]
    wcomb = wcomb_ref[...]                                        # (T, 16, 128)

    h_t = jnp.zeros((1, H), f32)
    c_t = jnp.zeros((1, H), f32)
    rec = jnp.zeros((1, 4 * H), f32)
    z1 = jnp.zeros((1, D1), f32)
    for t in range(T):                                            # static unroll
        g_pre = xg[t:t + 1, :] + rec                              # (1, 64)
        s = 1.0 / (1.0 + jnp.exp(-g_pre))        # exact sigmoid (recurrent state)
        i_g = s[:, 0:H]
        f_g = s[:, H:2 * H]
        g_g = 2.0 * s[:, 2 * H:3 * H] - 1.0      # tanh via pre-doubled 'g' lanes
        o_g = s[:, 3 * H:4 * H]
        c_t = f_g * c_t + i_g * g_g
        h_t = o_g * jnp.tanh(c_t)
        # One fused dot: [h_t @ Whh | h_t @ dense1_t]  -> next-step recurrent
        # term + this step's dense1 increment.
        comb = jnp.dot(h_t, wcomb[t], preferred_element_type=f32)  # (1, 128)
        rec = comb[:, 0:4 * H]
        z1 = z1 + comb[:, 4 * H:4 * H + D1]

    z1 = jnp.maximum(z1 + bd1_ref[...], 0.0)                      # (1, 64)
    z2 = jnp.sum(z1 * wd2_ref[...], axis=1, keepdims=True) + bd2_ref[...]
    out = pl.reciprocal(1.0 + jnp.exp(-z2), approx=True)          # final sigmoid only
    o_ref[...] = jnp.broadcast_to(out.reshape(1, 1, 1), o_ref.shape)


# ---------------------------------------------------------------------------
# Wrapper: host-side weight folding / re-layout + the single pallas_call.
# ---------------------------------------------------------------------------
def pallas_forward(x, params, eps=1e-5):
    bsz = x.shape[0]
    f32, bf16 = jnp.float32, jnp.bfloat16

    def fold_conv(w, b, g, be, m, v, flatten, dtype):
        # w: (Cout, Cin, K) PyTorch Conv1d layout.  Fold BN scale into weights.
        s = g / jnp.sqrt(v + eps)                                   # (Cout,)
        wf = jnp.transpose(w, (2, 1, 0)) * s                        # (K, Cin, Cout)
        if flatten:
            wf = wf.reshape(-1, wf.shape[-1])                       # (K*Cin, Cout)
        sh = ((b - m) * s + be).reshape(1, -1).astype(f32)          # (1, Cout)
        return wf.astype(dtype), sh

    w1f, sh1 = fold_conv(params['cw0'], params['cb0'], params['cg0'],
                         params['cbe0'], params['cm0'], params['cv0'], True, bf16)
    w2f, sh2 = fold_conv(params['cw1'], params['cb1'], params['cg1'],
                         params['cbe1'], params['cm1'], params['cv1'], True, bf16)
    w3f, sh3 = fold_conv(params['cw2'], params['cb2'], params['cg2'],
                         params['cbe2'], params['cm2'], params['cv2'], False, f32)

    # LSTM gate weights concatenated to (in, 4H), PyTorch gate order i,f,g,o.
    # 'g' columns pre-scaled by 2 (tanh recovered in-kernel from one sigmoid).
    gscale = jnp.concatenate([jnp.ones((2 * H,), f32),
                              2.0 * jnp.ones((H,), f32),
                              jnp.ones((H,), f32)])
    wih = jnp.transpose(params['wih'], (1, 0, 2)).reshape(C3, 4 * H) * gscale
    whh = jnp.transpose(params['whh'], (1, 0, 2)).reshape(H, 4 * H) * gscale
    lb = params['lb'].reshape(1, 4 * H) * gscale
    # Per-step fused RHS: [Whh | dense1 slice for step t]  -> (T, 16, 128).
    wd1 = params['dw1'].reshape(T, H, D1)
    wcomb = jnp.concatenate([jnp.broadcast_to(whh[None], (T, H, 4 * H)), wd1],
                            axis=2)
    bd1 = params['db1'].reshape(1, D1)
    wd2 = params['dw2'].reshape(1, D1)
    bd2 = params['db2'].reshape(1, 1)

    # Host-side stride-2 phase split of x: [even rows | pad | odd rows | pad],
    # each phase padded to 56 (multiple of 8) rows, so every conv1 tap is a
    # contiguous stride-free read inside the kernel.
    xe = x[:, 0::2, :]                                            # (B, 49, 768)
    xo = x[:, 1::2, :]                                            # (B, 49, 768)
    zpad = jnp.zeros((bsz, PH_PAD - PH, D_IN), x.dtype)
    x_host = jnp.concatenate([xe, zpad, xo, zpad], axis=1)        # (B, 112, 768)
    x_host = x_host.reshape(bsz * X_ROWS, D_IN).astype(f32)

    inputs = (x_host, w1f, sh1, w2f, sh2, w3f, sh3,
              wih, lb, wcomb, bd1, wd2, bd2)

    def const_spec(a):
        nd = a.ndim
        return pl.BlockSpec(a.shape, lambda b, _nd=nd: (0,) * _nd)

    in_specs = [pl.BlockSpec((X_ROWS, D_IN), lambda b: (b, 0))]
    in_specs += [const_spec(a) for a in inputs[1:]]

    out = pl.pallas_call(
        fused_kernel,
        out_shape=jax.ShapeDtypeStruct((bsz, 8, 128), jnp.float32),
        grid=(bsz,),
        in_specs=in_specs,
        out_specs=pl.BlockSpec((1, 8, 128), lambda b: (b, 0, 0)),
        scratch_shapes=[
            pltpu.VMEM((L1P, C1), jnp.float32),    # pooled conv1 (per sample)
            pltpu.VMEM((L2P, C2), jnp.float32),    # pooled conv2 (per sample)
        ],
        compiler_params=pltpu.CompilerParams(
            dimension_semantics=("parallel",),
            vmem_limit_bytes=16 * 1024 * 1024,
        ),
    )(*inputs)
    return out[:, 0, 0]                                 # == torch .view(-1)


# ---------------------------------------------------------------------------
# Pure-JAX f32 reference (same math, no Pallas) for validation.
# ---------------------------------------------------------------------------
def im2col(x, K, stride):
    B, L, C = x.shape
    Lout = (L - K) // stride + 1
    cols = [x[:, k: k + stride * (Lout - 1) + 1: stride, :] for k in range(K)]
    patches = jnp.stack(cols, axis=2)           # (B, Lout, K, C)
    return patches.reshape(B, Lout, K * C), Lout


def ref_forward(x, P, eps=1e-5):
    def conv_bn_relu_ref(x, w, b, g, be, m, v, K, s):
        patches, _ = im2col(x, K, s)
        wm = jnp.transpose(w, (2, 1, 0)).reshape(patches.shape[-1], -1)
        z = patches @ wm + b
        sc = g / jnp.sqrt(v + eps)
        return jnp.maximum((z - m) * sc + be, 0.0)

    def mp_ref(x):
        return jnp.maximum(jnp.maximum(x[:, :-2], x[:, 1:-1]), x[:, 2:])

    h = mp_ref(conv_bn_relu_ref(x, P['cw0'], P['cb0'], P['cg0'], P['cbe0'],
                                P['cm0'], P['cv0'], 8, 2))
    h = mp_ref(conv_bn_relu_ref(h, P['cw1'], P['cb1'], P['cg1'], P['cbe1'],
                                P['cm1'], P['cv1'], 8, 2))
    h = mp_ref(conv_bn_relu_ref(h, P['cw2'], P['cb2'], P['cg2'], P['cbe2'],
                                P['cm2'], P['cv2'], 3, 2))
    B, Tn, _ = h.shape
    hh = jnp.zeros((B, H)); cc = jnp.zeros((B, H)); outs = []
    for t in range(Tn):
        xt = h[:, t, :]
        gz = [xt @ P['wih'][k] + hh @ P['whh'][k] + P['lb'][k] for k in range(4)]
        i = jax.nn.sigmoid(gz[0]); f = jax.nn.sigmoid(gz[1])
        g = jnp.tanh(gz[2]);       o = jax.nn.sigmoid(gz[3])
        cc = f * cc + i * g
        hh = o * jnp.tanh(cc)
        outs.append(hh)
    feats = jnp.concatenate(outs, axis=1)
    z1 = jnp.maximum(feats @ P['dw1'] + P['db1'], 0.0)
    z2 = jnp.sum(z1 * P['dw2'], axis=1, keepdims=True) + P['db2']
    return jax.nn.sigmoid(z2).reshape(-1)


# ---------------------------------------------------------------------------
# Deterministic parameter construction (shapes from the module's __init__).
# ---------------------------------------------------------------------------
def make_params(key):
    ks = jax.random.split(key, 32)

    def u(k, shape, fan_in):
        b = 1.0 / np.sqrt(fan_in)
        return jax.random.uniform(k, shape, jnp.float32, -b, b)

    def n(k, shape, s=0.1):
        return s * jax.random.normal(k, shape, jnp.float32)

    P = {}
    conv_cfg = [((128, 768, 8), 768 * 8), ((64, 128, 8), 128 * 8), ((32, 64, 3), 64 * 3)]
    ki = 0
    for li, (wshape, fan) in enumerate(conv_cfg):
        cout = wshape[0]
        P[f'cw{li}'] = u(ks[ki], wshape, fan); ki += 1
        P[f'cb{li}'] = u(ks[ki], (cout,), fan); ki += 1
        P[f'cg{li}'] = 1.0 + n(ks[ki], (cout,)); ki += 1
        P[f'cbe{li}'] = n(ks[ki], (cout,)); ki += 1
        P[f'cm{li}'] = n(ks[ki], (cout,)); ki += 1
        P[f'cv{li}'] = 1.0 + 0.1 * jnp.abs(jax.random.normal(ks[ki], (cout,))); ki += 1
    # LSTM(32 -> 16), gates stacked as (4, in, hidden) / (4, hidden, hidden)
    P['wih'] = u(ks[ki], (4, 32, 16), 16); ki += 1
    P['whh'] = u(ks[ki], (4, 16, 16), 16); ki += 1
    P['lb'] = u(ks[ki], (4, 16), 16); ki += 1
    # Dense 96 -> 64 -> 1
    P['dw1'] = u(ks[ki], (96, 64), 96); ki += 1
    P['db1'] = u(ks[ki], (1, 64), 96); ki += 1
    P['dw2'] = u(ks[ki], (1, 64), 64); ki += 1
    P['db2'] = u(ks[ki], (1, 1), 64); ki += 1
    return P


if __name__ == "__main__":
    key = jax.random.PRNGKey(0)
    kx, kp = jax.random.split(key)
    B = 2
    x = jax.random.normal(kx, (B, L_IN, D_IN), jnp.float32)
    params = make_params(kp)

    fwd = jax.jit(pallas_forward)
    out = jax.block_until_ready(fwd(x, params))
    ref = jax.block_until_ready(ref_forward(x, params))

    assert out.shape == (B,)
    assert np.allclose(np.asarray(out), np.asarray(ref), atol=1e-2), (out, ref)
    print("KERNEL_OK")
</pallas_src>

<mosaic_0001>
module attributes {stable_mosaic.version = 11 : i64} {
  func.func @fused_kernel(%arg0: i32, %arg1: memref<112x768xf32, #tpu.memory_space<vmem>>, %arg2: memref<6144x128xbf16, #tpu.memory_space<vmem>>, %arg3: memref<1x128xf32, #tpu.memory_space<vmem>>, %arg4: memref<1024x64xbf16, #tpu.memory_space<vmem>>, %arg5: memref<1x64xf32, #tpu.memory_space<vmem>>, %arg6: memref<3x64x32xf32, #tpu.memory_space<vmem>>, %arg7: memref<1x32xf32, #tpu.memory_space<vmem>>, %arg8: memref<32x64xf32, #tpu.memory_space<vmem>>, %arg9: memref<1x64xf32, #tpu.memory_space<vmem>>, %arg10: memref<6x16x128xf32, #tpu.memory_space<vmem>>, %arg11: memref<1x64xf32, #tpu.memory_space<vmem>>, %arg12: memref<1x64xf32, #tpu.memory_space<vmem>>, %arg13: memref<1x1xf32, #tpu.memory_space<vmem>>, %arg14: memref<1x8x128xf32, #tpu.memory_space<vmem>>, %arg15: memref<44x128xf32, #tpu.memory_space<vmem>>, %arg16: memref<17x64xf32, #tpu.memory_space<vmem>>) attributes {dimension_semantics = [#tpu.dimension_semantics<parallel>], iteration_bounds = array<i64: 2>, scalar_prefetch = 0 : i64, scratch_operands = 2 : i64, tpu.core_type = #tpu.core_type<tc>, window_params = [{transform_indices = @transform_0, window_bounds = array<i64: 112, 768>}, {pipeline_mode = #tpu.pipeline_mode<synchronous>, transform_indices = @transform_1, window_bounds = array<i64: 6144, 128>}, {pipeline_mode = #tpu.pipeline_mode<synchronous>, transform_indices = @transform_2, window_bounds = array<i64: 1, 128>}, {pipeline_mode = #tpu.pipeline_mode<synchronous>, transform_indices = @transform_3, window_bounds = array<i64: 1024, 64>}, {pipeline_mode = #tpu.pipeline_mode<synchronous>, transform_indices = @transform_4, window_bounds = array<i64: 1, 64>}, {pipeline_mode = #tpu.pipeline_mode<synchronous>, transform_indices = @transform_5, window_bounds = array<i64: 3, 64, 32>}, {pipeline_mode = #tpu.pipeline_mode<synchronous>, transform_indices = @transform_6, window_bounds = array<i64: 1, 32>}, {pipeline_mode = #tpu.pipeline_mode<synchronous>, transform_indices = @transform_7, window_bounds = array<i64: 32, 64>}, {pipeline_mode = #tpu.pipeline_mode<synchronous>, transform_indices = @transform_8, window_bounds = array<i64: 1, 64>}, {pipeline_mode = #tpu.pipeline_mode<synchronous>, transform_indices = @transform_9, window_bounds = array<i64: 6, 16, 128>}, {pipeline_mode = #tpu.pipeline_mode<synchronous>, transform_indices = @transform_10, window_bounds = array<i64: 1, 64>}, {pipeline_mode = #tpu.pipeline_mode<synchronous>, transform_indices = @transform_11, window_bounds = array<i64: 1, 64>}, {pipeline_mode = #tpu.pipeline_mode<synchronous>, transform_indices = @transform_12, window_bounds = array<i64: 1, 1>}, {transform_indices = @transform_13, window_bounds = array<i64: 1, 8, 128>}]} {
    %c0 = arith.constant 0 : index
    %c0_0 = arith.constant 0 : index
    %0 = vector.load %arg1[%c0, %c0_0] : memref<112x768xf32, #tpu.memory_space<vmem>>, vector<46x768xf32>
    %c56 = arith.constant 56 : index
    %c0_1 = arith.constant 0 : index
    %1 = vector.load %arg1[%c56, %c0_1] : memref<112x768xf32, #tpu.memory_space<vmem>>, vector<46x768xf32>
    %c1 = arith.constant 1 : index
    %c0_2 = arith.constant 0 : index
    %2 = vector.load %arg1[%c1, %c0_2] : memref<112x768xf32, #tpu.memory_space<vmem>>, vector<46x768xf32>
    %c57 = arith.constant 57 : index
    %c0_3 = arith.constant 0 : index
    %3 = vector.load %arg1[%c57, %c0_3] : memref<112x768xf32, #tpu.memory_space<vmem>>, vector<46x768xf32>
    %c2 = arith.constant 2 : index
    %c0_4 = arith.constant 0 : index
    %4 = vector.load %arg1[%c2, %c0_4] : memref<112x768xf32, #tpu.memory_space<vmem>>, vector<46x768xf32>
    %c58 = arith.constant 58 : index
    %c0_5 = arith.constant 0 : index
    %5 = vector.load %arg1[%c58, %c0_5] : memref<112x768xf32, #tpu.memory_space<vmem>>, vector<46x768xf32>
    %c3 = arith.constant 3 : index
    %c0_6 = arith.constant 0 : index
    %6 = vector.load %arg1[%c3, %c0_6] : memref<112x768xf32, #tpu.memory_space<vmem>>, vector<46x768xf32>
    %c59 = arith.constant 59 : index
    %c0_7 = arith.constant 0 : index
    %7 = vector.load %arg1[%c59, %c0_7] : memref<112x768xf32, #tpu.memory_space<vmem>>, vector<46x768xf32>
    %8 = tpu.concatenate %0, %1, %2, %3, %4, %5, %6, %7 in 1 : vector<46x768xf32>, vector<46x768xf32>, vector<46x768xf32>, vector<46x768xf32>, vector<46x768xf32>, vector<46x768xf32>, vector<46x768xf32>, vector<46x768xf32> -> vector<46x6144xf32>
    %9 = arith.truncf %8 : vector<46x6144xf32> to vector<46x6144xbf16>
    %c0_8 = arith.constant 0 : index
    %c0_9 = arith.constant 0 : index
    %10 = vector.load %arg2[%c0_8, %c0_9] : memref<6144x128xbf16, #tpu.memory_space<vmem>>, vector<6144x128xbf16>
    %cst = arith.constant dense<0.000000e+00> : vector<46x128xf32>
    %11 = tpu.matmul %9, %10, %cst {dimension_numbers = #tpu.dot_dimension_numbers<[1], [0], [0], [1], [0, 0, 1, 1], [], []>} : vector<46x6144xbf16>, vector<6144x128xbf16>, vector<46x128xf32> -> vector<46x128xf32>
    %c0_10 = arith.constant 0 : index
    %c0_11 = arith.constant 0 : index
    %12 = vector.load %arg3[%c0_10, %c0_11] : memref<1x128xf32, #tpu.memory_space<vmem>>, vector<1x128xf32>
    %13 = vector.broadcast %12 : vector<1x128xf32> to vector<46x128xf32>
    %14 = arith.addf %11, %13 : vector<46x128xf32>
    %cst_12 = arith.constant 0.000000e+00 : f32
    %15 = vector.broadcast %cst_12 : f32 to vector<46x128xf32>
    %16 = arith.maximumf %14, %15 : vector<46x128xf32>
    %17 = vector.extract_strided_slice %16 {offsets = [0, 0], sizes = [44, 128], strides = [1, 1]} : vector<46x128xf32> to vector<44x128xf32>
    %18 = vector.extract_strided_slice %16 {offsets = [1, 0], sizes = [44, 128], strides = [1, 1]} : vector<46x128xf32> to vector<44x128xf32>
    %19 = arith.maximumf %17, %18 : vector<44x128xf32>
    %20 = vector.extract_strided_slice %16 {offsets = [2, 0], sizes = [44, 128], strides = [1, 1]} : vector<46x128xf32> to vector<44x128xf32>
    %21 = arith.maximumf %19, %20 : vector<44x128xf32>
    %c0_13 = arith.constant 0 : index
    %c0_14 = arith.constant 0 : index
    %22 = vector.load %arg15[%c0_13, %c0_14] : memref<44x128xf32, #tpu.memory_space<vmem>>, vector<44x128xf32>
    tpu.vector_store %arg15[%c0_13, %c0_14], %21 {strides = array<i32>} : memref<44x128xf32, #tpu.memory_space<vmem>>, vector<44x128xf32>,
    %c0_15 = arith.constant 0 : index
    %c0_16 = arith.constant 0 : index
    %23 = tpu.strided_load %arg15[%c0_15, %c0_16] {strides = array<i32: 2, 1>} : memref<44x128xf32, #tpu.memory_space<vmem>>, vector<22x128xf32>
    %c1_17 = arith.constant 1 : index
    %c0_18 = arith.constant 0 : index
    %24 = tpu.strided_load %arg15[%c1_17, %c0_18] {strides = array<i32: 2, 1>} : memref<44x128xf32, #tpu.memory_space<vmem>>, vector<22x128xf32>
    %25 = vector.extract_strided_slice %23 {offsets = [0, 0], sizes = [19, 128], strides = [1, 1]} : vector<22x128xf32> to vector<19x128xf32>
    %26 = vector.extract_strided_slice %24 {offsets = [0, 0], sizes = [19, 128], strides = [1, 1]} : vector<22x128xf32> to vector<19x128xf32>
    %27 = vector.extract_strided_slice %23 {offsets = [1, 0], sizes = [19, 128], strides = [1, 1]} : vector<22x128xf32> to vector<19x128xf32>
    %28 = vector.extract_strided_slice %24 {offsets = [1, 0], sizes = [19, 128], strides = [1, 1]} : vector<22x128xf32> to vector<19x128xf32>
    %29 = vector.extract_strided_slice %23 {offsets = [2, 0], sizes = [19, 128], strides = [1, 1]} : vector<22x128xf32> to vector<19x128xf32>
    %30 = vector.extract_strided_slice %24 {offsets = [2, 0], sizes = [19, 128], strides = [1, 1]} : vector<22x128xf32> to vector<19x128xf32>
    %31 = vector.extract_strided_slice %23 {offsets = [3, 0], sizes = [19, 128], strides = [1, 1]} : vector<22x128xf32> to vector<19x128xf32>
    %32 = vector.extract_strided_slice %24 {offsets = [3, 0], sizes = [19, 128], strides = [1, 1]} : vector<22x128xf32> to vector<19x128xf32>
    %33 = tpu.concatenate %25, %26, %27, %28, %29, %30, %31, %32 in 1 : vector<19x128xf32>, vector<19x128xf32>, vector<19x128xf32>, vector<19x128xf32>, vector<19x128xf32>, vector<19x128xf32>, vector<19x128xf32>, vector<19x128xf32> -> vector<19x1024xf32>
    %34 = arith.truncf %33 : vector<19x1024xf32> to vector<19x1024xbf16>
    %c0_19 = arith.constant 0 : index
    %c0_20 = arith.constant 0 : index
    %35 = vector.load %arg4[%c0_19, %c0_20] : memref<1024x64xbf16, #tpu.memory_space<vmem>>, vector<1024x64xbf16>
    %cst_21 = arith.constant dense<0.000000e+00> : vector<19x64xf32>
    %36 = tpu.matmul %34, %35, %cst_21 {dimension_numbers = #tpu.dot_dimension_numbers<[1], [0], [0], [1], [0, 0, 1, 1], [], []>} : vector<19x1024xbf16>, vector<1024x64xbf16>, vector<19x64xf32> -> vector<19x64xf32>
    %c0_22 = arith.constant 0 : index
    %c0_23 = arith.constant 0 : index
    %37 = vector.load %arg5[%c0_22, %c0_23] : memref<1x64xf32, #tpu.memory_space<vmem>>, vector<1x64xf32>
    %38 = vector.broadcast %37 : vector<1x64xf32> to vector<19x64xf32>
    %39 = arith.addf %36, %38 : vector<19x64xf32>
    %cst_24 = arith.constant 0.000000e+00 : f32
    %40 = vector.broadcast %cst_24 : f32 to vector<19x64xf32>
    %41 = arith.maximumf %39, %40 : vector<19x64xf32>
    %42 = vector.extract_strided_slice %41 {offsets = [0, 0], sizes = [17, 64], strides = [1, 1]} : vector<19x64xf32> to vector<17x64xf32>
    %43 = vector.extract_strided_slice %41 {offsets = [1, 0], sizes = [17, 64], strides = [1, 1]} : vector<19x64xf32> to vector<17x64xf32>
    %44 = arith.maximumf %42, %43 : vector<17x64xf32>
    %45 = vector.extract_strided_slice %41 {offsets = [2, 0], sizes = [17, 64], strides = [1, 1]} : vector<19x64xf32> to vector<17x64xf32>
    %46 = arith.maximumf %44, %45 : vector<17x64xf32>
    %c0_25 = arith.constant 0 : index
    %c0_26 = arith.constant 0 : index
    %47 = vector.load %arg16[%c0_25, %c0_26] : memref<17x64xf32, #tpu.memory_space<vmem>>, vector<17x64xf32>
    tpu.vector_store %arg16[%c0_25, %c0_26], %46 {strides = array<i32>} : memref<17x64xf32, #tpu.memory_space<vmem>>, vector<17x64xf32>,
    %c0_27 = arith.constant 0 : index
    %c0_28 = arith.constant 0 : index
    %48 = tpu.strided_load %arg16[%c0_27, %c0_28] {strides = array<i32: 2, 1>} : memref<17x64xf32, #tpu.memory_space<vmem>>, vector<9x64xf32>
    %c1_29 = arith.constant 1 : index
    %c0_30 = arith.constant 0 : index
    %49 = tpu.strided_load %arg16[%c1_29, %c0_30] {strides = array<i32: 2, 1>} : memref<17x64xf32, #tpu.memory_space<vmem>>, vector<8x64xf32>
    %50 = vector.extract_strided_slice %48 {offsets = [0, 0], sizes = [8, 64], strides = [1, 1]} : vector<9x64xf32> to vector<8x64xf32>
    %51 = vector.extract_strided_slice %48 {offsets = [1, 0], sizes = [8, 64], strides = [1, 1]} : vector<9x64xf32> to vector<8x64xf32>
    %cst_31 = arith.constant 0.000000e+00 : f32
    %52 = vector.broadcast %cst_31 : f32 to vector<8x32xf32>
    %c0_32 = arith.constant 0 : index
    %c0_33 = arith.constant 0 : index
    %c0_34 = arith.constant 0 : index
    %53 = vector.load %arg6[%c0_32, %c0_33, %c0_34] : memref<3x64x32xf32, #tpu.memory_space<vmem>>, vector<1x64x32xf32>
    %54 = vector.shape_cast %53 : vector<1x64x32xf32> to vector<64x32xf32>
    %cst_35 = arith.constant dense<0.000000e+00> : vector<8x32xf32>
    %55 = tpu.matmul %50, %54, %cst_35 {dimension_numbers = #tpu.dot_dimension_numbers<[1], [0], [0], [1], [0, 0, 1, 1], [], []>} : vector<8x64xf32>, vector<64x32xf32>, vector<8x32xf32> -> vector<8x32xf32>
    %56 = arith.addf %52, %55 : vector<8x32xf32>
    %c1_36 = arith.constant 1 : index
    %c0_37 = arith.constant 0 : index
    %c0_38 = arith.constant 0 : index
    %57 = vector.load %arg6[%c1_36, %c0_37, %c0_38] : memref<3x64x32xf32, #tpu.memory_space<vmem>>, vector<1x64x32xf32>
    %58 = vector.shape_cast %57 : vector<1x64x32xf32> to vector<64x32xf32>
    %cst_39 = arith.constant dense<0.000000e+00> : vector<8x32xf32>
    %59 = tpu.matmul %49, %58, %cst_39 {dimension_numbers = #tpu.dot_dimension_numbers<[1], [0], [0], [1], [0, 0, 1, 1], [], []>} : vector<8x64xf32>, vector<64x32xf32>, vector<8x32xf32> -> vector<8x32xf32>
    %60 = arith.addf %56, %59 : vector<8x32xf32>
    %c2_40 = arith.constant 2 : index
    %c0_41 = arith.constant 0 : index
    %c0_42 = arith.constant 0 : index
    %61 = vector.load %arg6[%c2_40, %c0_41, %c0_42] : memref<3x64x32xf32, #tpu.memory_space<vmem>>, vector<1x64x32xf32>
    %62 = vector.shape_cast %61 : vector<1x64x32xf32> to vector<64x32xf32>
    %cst_43 = arith.constant dense<0.000000e+00> : vector<8x32xf32>
    %63 = tpu.matmul %51, %62, %cst_43 {dimension_numbers = #tpu.dot_dimension_numbers<[1], [0], [0], [1], [0, 0, 1, 1], [], []>} : vector<8x64xf32>, vector<64x32xf32>, vector<8x32xf32> -> vector<8x32xf32>
    %64 = arith.addf %60, %63 : vector<8x32xf32>
    %c0_44 = arith.constant 0 : index
    %c0_45 = arith.constant 0 : index
    %65 = vector.load %arg7[%c0_44, %c0_45] : memref<1x32xf32, #tpu.memory_space<vmem>>, vector<1x32xf32>
    %66 = vector.broadcast %65 : vector<1x32xf32> to vector<8x32xf32>
    %67 = arith.addf %64, %66 : vector<8x32xf32>
    %cst_46 = arith.constant 0.000000e+00 : f32
    %68 = vector.broadcast %cst_46 : f32 to vector<8x32xf32>
    %69 = arith.maximumf %67, %68 : vector<8x32xf32>
    %70 = vector.extract_strided_slice %69 {offsets = [0, 0], sizes = [6, 32], strides = [1, 1]} : vector<8x32xf32> to vector<6x32xf32>
    %71 = vector.extract_strided_slice %69 {offsets = [1, 0], sizes = [6, 32], strides = [1, 1]} : vector<8x32xf32> to vector<6x32xf32>
    %72 = arith.maximumf %70, %71 : vector<6x32xf32>
    %73 = vector.extract_strided_slice %69 {offsets = [2, 0], sizes = [6, 32], strides = [1, 1]} : vector<8x32xf32> to vector<6x32xf32>
    %74 = arith.maximumf %72, %73 : vector<6x32xf32>
    %c0_47 = arith.constant 0 : index
    %c0_48 = arith.constant 0 : index
    %75 = vector.load %arg8[%c0_47, %c0_48] : memref<32x64xf32, #tpu.memory_space<vmem>>, vector<32x64xf32>
    %cst_49 = arith.constant dense<0.000000e+00> : vector<6x64xf32>
    %76 = tpu.matmul %74, %75, %cst_49 {dimension_numbers = #tpu.dot_dimension_numbers<[1], [0], [0], [1], [0, 0, 1, 1], [], []>} : vector<6x32xf32>, vector<32x64xf32>, vector<6x64xf32> -> vector<6x64xf32>
    %c0_50 = arith.constant 0 : index
    %c0_51 = arith.constant 0 : index
    %77 = vector.load %arg9[%c0_50, %c0_51] : memref<1x64xf32, #tpu.memory_space<vmem>>, vector<1x64xf32>
    %78 = vector.broadcast %77 : vector<1x64xf32> to vector<6x64xf32>
    %79 = arith.addf %76, %78 : vector<6x64xf32>
    %c0_52 = arith.constant 0 : index
    %c0_53 = arith.constant 0 : index
    %c0_54 = arith.constant 0 : index
    %80 = vector.load %arg10[%c0_52, %c0_53, %c0_54] : memref<6x16x128xf32, #tpu.memory_space<vmem>>, vector<6x16x128xf32>
    %cst_55 = arith.constant 0.000000e+00 : f32
    %81 = vector.broadcast %cst_55 : f32 to vector<1x16xf32>
    %cst_56 = arith.constant 0.000000e+00 : f32
    %82 = vector.broadcast %cst_56 : f32 to vector<1x64xf32>
    %cst_57 = arith.constant 0.000000e+00 : f32
    %83 = vector.broadcast %cst_57 : f32 to vector<1x64xf32>
    %84 = vector.extract_strided_slice %79 {offsets = [0, 0], sizes = [1, 64], strides = [1, 1]} : vector<6x64xf32> to vector<1x64xf32>
    %85 = arith.addf %84, %82 : vector<1x64xf32>
    %cst_58 = arith.constant 0.000000e+00 : f32
    %86 = vector.broadcast %cst_58 : f32 to vector<1x64xf32>
    %87 = arith.subf %86, %85 : vector<1x64xf32>
    %88 = math.exp %87 : vector<1x64xf32>
    %cst_59 = arith.constant 1.000000e+00 : f32
    %89 = vector.broadcast %cst_59 : f32 to vector<1x64xf32>
    %90 = arith.addf %89, %88 : vector<1x64xf32>
    %cst_60 = arith.constant 1.000000e+00 : f32
    %91 = vector.broadcast %cst_60 : f32 to vector<1x64xf32>
    %92 = arith.divf %91, %90 : vector<1x64xf32>
    %93 = vector.extract_strided_slice %92 {offsets = [0, 0], sizes = [1, 16], strides = [1, 1]} : vector<1x64xf32> to vector<1x16xf32>
    %94 = vector.extract_strided_slice %92 {offsets = [0, 16], sizes = [1, 16], strides = [1, 1]} : vector<1x64xf32> to vector<1x16xf32>
    %95 = vector.extract_strided_slice %92 {offsets = [0, 32], sizes = [1, 16], strides = [1, 1]} : vector<1x64xf32> to vector<1x16xf32>
    %cst_61 = arith.constant 2.000000e+00 : f32
    %96 = vector.broadcast %cst_61 : f32 to vector<1x16xf32>
    %97 = arith.mulf %96, %95 : vector<1x16xf32>
    %cst_62 = arith.constant 1.000000e+00 : f32
    %98 = vector.broadcast %cst_62 : f32 to vector<1x16xf32>
    %99 = arith.subf %97, %98 : vector<1x16xf32>
    %100 = vector.extract_strided_slice %92 {offsets = [0, 48], sizes = [1, 16], strides = [1, 1]} : vector<1x64xf32> to vector<1x16xf32>
    %101 = arith.mulf %94, %81 : vector<1x16xf32>
    %102 = arith.mulf %93, %99 : vector<1x16xf32>
    %103 = arith.addf %101, %102 : vector<1x16xf32>
    %104 = math.tanh %103 : vector<1x16xf32>
    %105 = arith.mulf %100, %104 : vector<1x16xf32>
    %106 = vector.extract_strided_slice %80 {offsets = [0, 0, 0], sizes = [1, 16, 128], strides = [1, 1, 1]} : vector<6x16x128xf32> to vector<1x16x128xf32>
    %107 = vector.shape_cast %106 : vector<1x16x128xf32> to vector<16x128xf32>
    %cst_63 = arith.constant dense<0.000000e+00> : vector<1x128xf32>
    %108 = tpu.matmul %105, %107, %cst_63 {dimension_numbers = #tpu.dot_dimension_numbers<[1], [0], [0], [1], [0, 0, 1, 1], [], []>} : vector<1x16xf32>, vector<16x128xf32>, vector<1x128xf32> -> vector<1x128xf32>
    %109 = vector.extract_strided_slice %108 {offsets = [0, 0], sizes = [1, 64], strides = [1, 1]} : vector<1x128xf32> to vector<1x64xf32>
    %110 = vector.extract_strided_slice %108 {offsets = [0, 64], sizes = [1, 64], strides = [1, 1]} : vector<1x128xf32> to vector<1x64xf32>
    %111 = arith.addf %83, %110 : vector<1x64xf32>
    %112 = vector.extract_strided_slice %79 {offsets = [1, 0], sizes = [1, 64], strides = [1, 1]} : vector<6x64xf32> to vector<1x64xf32>
    %113 = arith.addf %112, %109 : vector<1x64xf32>
    %cst_64 = arith.constant 0.000000e+00 : f32
    %114 = vector.broadcast %cst_64 : f32 to vector<1x64xf32>
    %115 = arith.subf %114, %113 : vector<1x64xf32>
    %116 = math.exp %115 : vector<1x64xf32>
    %cst_65 = arith.constant 1.000000e+00 : f32
    %117 = vector.broadcast %cst_65 : f32 to vector<1x64xf32>
    %118 = arith.addf %117, %116 : vector<1x64xf32>
    %cst_66 = arith.constant 1.000000e+00 : f32
    %119 = vector.broadcast %cst_66 : f32 to vector<1x64xf32>
    %120 = arith.divf %119, %118 : vector<1x64xf32>
    %121 = vector.extract_strided_slice %120 {offsets = [0, 0], sizes = [1, 16], strides = [1, 1]} : vector<1x64xf32> to vector<1x16xf32>
    %122 = vector.extract_strided_slice %120 {offsets = [0, 16], sizes = [1, 16], strides = [1, 1]} : vector<1x64xf32> to vector<1x16xf32>
    %123 = vector.extract_strided_slice %120 {offsets = [0, 32], sizes = [1, 16], strides = [1, 1]} : vector<1x64xf32> to vector<1x16xf32>
    %cst_67 = arith.constant 2.000000e+00 : f32
    %124 = vector.broadcast %cst_67 : f32 to vector<1x16xf32>
    %125 = arith.mulf %124, %123 : vector<1x16xf32>
    %cst_68 = arith.constant 1.000000e+00 : f32
    %126 = vector.broadcast %cst_68 : f32 to vector<1x16xf32>
    %127 = arith.subf %125, %126 : vector<1x16xf32>
    %128 = vector.extract_strided_slice %120 {offsets = [0, 48], sizes = [1, 16], strides = [1, 1]} : vector<1x64xf32> to vector<1x16xf32>
    %129 = arith.mulf %122, %103 : vector<1x16xf32>
    %130 = arith.mulf %121, %127 : vector<1x16xf32>
    %131 = arith.addf %129, %130 : vector<1x16xf32>
    %132 = math.tanh %131 : vector<1x16xf32>
    %133 = arith.mulf %128, %132 : vector<1x16xf32>
    %134 = vector.extract_strided_slice %80 {offsets = [1, 0, 0], sizes = [1, 16, 128], strides = [1, 1, 1]} : vector<6x16x128xf32> to vector<1x16x128xf32>
    %135 = vector.shape_cast %134 : vector<1x16x128xf32> to vector<16x128xf32>
    %cst_69 = arith.constant dense<0.000000e+00> : vector<1x128xf32>
    %136 = tpu.matmul %133, %135, %cst_69 {dimension_numbers = #tpu.dot_dimension_numbers<[1], [0], [0], [1], [0, 0, 1, 1], [], []>} : vector<1x16xf32>, vector<16x128xf32>, vector<1x128xf32> -> vector<1x128xf32>
    %137 = vector.extract_strided_slice %136 {offsets = [0, 0], sizes = [1, 64], strides = [1, 1]} : vector<1x128xf32> to vector<1x64xf32>
    %138 = vector.extract_strided_slice %136 {offsets = [0, 64], sizes = [1, 64], strides = [1, 1]} : vector<1x128xf32> to vector<1x64xf32>
    %139 = arith.addf %111, %138 : vector<1x64xf32>
    %140 = vector.extract_strided_slice %79 {offsets = [2, 0], sizes = [1, 64], strides = [1, 1]} : vector<6x64xf32> to vector<1x64xf32>
    %141 = arith.addf %140, %137 : vector<1x64xf32>
    %cst_70 = arith.constant 0.000000e+00 : f32
    %142 = vector.broadcast %cst_70 : f32 to vector<1x64xf32>
    %143 = arith.subf %142, %141 : vector<1x64xf32>
    %144 = math.exp %143 : vector<1x64xf32>
    %cst_71 = arith.constant 1.000000e+00 : f32
    %145 = vector.broadcast %cst_71 : f32 to vector<1x64xf32>
    %146 = arith.addf %145, %144 : vector<1x64xf32>
    %cst_72 = arith.constant 1.000000e+00 : f32
    %147 = vector.broadcast %cst_72 : f32 to vector<1x64xf32>
    %148 = arith.divf %147, %146 : vector<1x64xf32>
    %149 = vector.extract_strided_slice %148 {offsets = [0, 0], sizes = [1, 16], strides = [1, 1]} : vector<1x64xf32> to vector<1x16xf32>
    %150 = vector.extract_strided_slice %148 {offsets = [0, 16], sizes = [1, 16], strides = [1, 1]} : vector<1x64xf32> to vector<1x16xf32>
    %151 = vector.extract_strided_slice %148 {offsets = [0, 32], sizes = [1, 16], strides = [1, 1]} : vector<1x64xf32> to vector<1x16xf32>
    %cst_73 = arith.constant 2.000000e+00 : f32
    %152 = vector.broadcast %cst_73 : f32 to vector<1x16xf32>
    %153 = arith.mulf %152, %151 : vector<1x16xf32>
    %cst_74 = arith.constant 1.000000e+00 : f32
    %154 = vector.broadcast %cst_74 : f32 to vector<1x16xf32>
    %155 = arith.subf %153, %154 : vector<1x16xf32>
    %156 = vector.extract_strided_slice %148 {offsets = [0, 48], sizes = [1, 16], strides = [1, 1]} : vector<1x64xf32> to vector<1x16xf32>
    %157 = arith.mulf %150, %131 : vector<1x16xf32>
    %158 = arith.mulf %149, %155 : vector<1x16xf32>
    %159 = arith.addf %157, %158 : vector<1x16xf32>
    %160 = math.tanh %159 : vector<1x16xf32>
    %161 = arith.mulf %156, %160 : vector<1x16xf32>
    %162 = vector.extract_strided_slice %80 {offsets = [2, 0, 0], sizes = [1, 16, 128], strides = [1, 1, 1]} : vector<6x16x128xf32> to vector<1x16x128xf32>
    %163 = vector.shape_cast %162 : vector<1x16x128xf32> to vector<16x128xf32>
    %cst_75 = arith.constant dense<0.000000e+00> : vector<1x128xf32>
    %164 = tpu.matmul %161, %163, %cst_75 {dimension_numbers = #tpu.dot_dimension_numbers<[1], [0], [0], [1], [0, 0, 1, 1], [], []>} : vector<1x16xf32>, vector<16x128xf32>, vector<1x128xf32> -> vector<1x128xf32>
    %165 = vector.extract_strided_slice %164 {offsets = [0, 0], sizes = [1, 64], strides = [1, 1]} : vector<1x128xf32> to vector<1x64xf32>
    %166 = vector.extract_strided_slice %164 {offsets = [0, 64], sizes = [1, 64], strides = [1, 1]} : vector<1x128xf32> to vector<1x64xf32>
    %167 = arith.addf %139, %166 : vector<1x64xf32>
    %168 = vector.extract_strided_slice %79 {offsets = [3, 0], sizes = [1, 64], strides = [1, 1]} : vector<6x64xf32> to vector<1x64xf32>
    %169 = arith.addf %168, %165 : vector<1x64xf32>
    %cst_76 = arith.constant 0.000000e+00 : f32
    %170 = vector.broadcast %cst_76 : f32 to vector<1x64xf32>
    %171 = arith.subf %170, %169 : vector<1x64xf32>
    %172 = math.exp %171 : vector<1x64xf32>
    %cst_77 = arith.constant 1.000000e+00 : f32
    %173 = vector.broadcast %cst_77 : f32 to vector<1x64xf32>
    %174 = arith.addf %173, %172 : vector<1x64xf32>
    %cst_78 = arith.constant 1.000000e+00 : f32
    %175 = vector.broadcast %cst_78 : f32 to vector<1x64xf32>
    %176 = arith.divf %175, %174 : vector<1x64xf32>
    %177 = vector.extract_strided_slice %176 {offsets = [0, 0], sizes = [1, 16], strides = [1, 1]} : vector<1x64xf32> to vector<1x16xf32>
    %178 = vector.extract_strided_slice %176 {offsets = [0, 16], sizes = [1, 16], strides = [1, 1]} : vector<1x64xf32> to vector<1x16xf32>
    %179 = vector.extract_strided_slice %176 {offsets = [0, 32], sizes = [1, 16], strides = [1, 1]} : vector<1x64xf32> to vector<1x16xf32>
    %cst_79 = arith.constant 2.000000e+00 : f32
    %180 = vector.broadcast %cst_79 : f32 to vector<1x16xf32>
    %181 = arith.mulf %180, %179 : vector<1x16xf32>
    %cst_80 = arith.constant 1.000000e+00 : f32
    %182 = vector.broadcast %cst_80 : f32 to vector<1x16xf32>
    %183 = arith.subf %181, %182 : vector<1x16xf32>
    %184 = vector.extract_strided_slice %176 {offsets = [0, 48], sizes = [1, 16], strides = [1, 1]} : vector<1x64xf32> to vector<1x16xf32>
    %185 = arith.mulf %178, %159 : vector<1x16xf32>
    %186 = arith.mulf %177, %183 : vector<1x16xf32>
    %187 = arith.addf %185, %186 : vector<1x16xf32>
    %188 = math.tanh %187 : vector<1x16xf32>
    %189 = arith.mulf %184, %188 : vector<1x16xf32>
    %190 = vector.extract_strided_slice %80 {offsets = [3, 0, 0], sizes = [1, 16, 128], strides = [1, 1, 1]} : vector<6x16x128xf32> to vector<1x16x128xf32>
    %191 = vector.shape_cast %190 : vector<1x16x128xf32> to vector<16x128xf32>
    %cst_81 = arith.constant dense<0.000000e+00> : vector<1x128xf32>
    %192 = tpu.matmul %189, %191, %cst_81 {dimension_numbers = #tpu.dot_dimension_numbers<[1], [0], [0], [1], [0, 0, 1, 1], [], []>} : vector<1x16xf32>, vector<16x128xf32>, vector<1x128xf32> -> vector<1x128xf32>
    %193 = vector.extract_strided_slice %192 {offsets = [0, 0], sizes = [1, 64], strides = [1, 1]} : vector<1x128xf32> to vector<1x64xf32>
    %194 = vector.extract_strided_slice %192 {offsets = [0, 64], sizes = [1, 64], strides = [1, 1]} : vector<1x128xf32> to vector<1x64xf32>
    %195 = arith.addf %167, %194 : vector<1x64xf32>
    %196 = vector.extract_strided_slice %79 {offsets = [4, 0], sizes = [1, 64], strides = [1, 1]} : vector<6x64xf32> to vector<1x64xf32>
    %197 = arith.addf %196, %193 : vector<1x64xf32>
    %cst_82 = arith.constant 0.000000e+00 : f32
    %198 = vector.broadcast %cst_82 : f32 to vector<1x64xf32>
    %199 = arith.subf %198, %197 : vector<1x64xf32>
    %200 = math.exp %199 : vector<1x64xf32>
    %cst_83 = arith.constant 1.000000e+00 : f32
    %201 = vector.broadcast %cst_83 : f32 to vector<1x64xf32>
    %202 = arith.addf %201, %200 : vector<1x64xf32>
    %cst_84 = arith.constant 1.000000e+00 : f32
    %203 = vector.broadcast %cst_84 : f32 to vector<1x64xf32>
    %204 = arith.divf %203, %202 : vector<1x64xf32>
    %205 = vector.extract_strided_slice %204 {offsets = [0, 0], sizes = [1, 16], strides = [1, 1]} : vector<1x64xf32> to vector<1x16xf32>
    %206 = vector.extract_strided_slice %204 {offsets = [0, 16], sizes = [1, 16], strides = [1, 1]} : vector<1x64xf32> to vector<1x16xf32>
    %207 = vector.extract_strided_slice %204 {offsets = [0, 32], sizes = [1, 16], strides = [1, 1]} : vector<1x64xf32> to vector<1x16xf32>
    %cst_85 = arith.constant 2.000000e+00 : f32
    %208 = vector.broadcast %cst_85 : f32 to vector<1x16xf32>
    %209 = arith.mulf %208, %207 : vector<1x16xf32>
    %cst_86 = arith.constant 1.000000e+00 : f32
    %210 = vector.broadcast %cst_86 : f32 to vector<1x16xf32>
    %211 = arith.subf %209, %210 : vector<1x16xf32>
    %212 = vector.extract_strided_slice %204 {offsets = [0, 48], sizes = [1, 16], strides = [1, 1]} : vector<1x64xf32> to vector<1x16xf32>
    %213 = arith.mulf %206, %187 : vector<1x16xf32>
    %214 = arith.mulf %205, %211 : vector<1x16xf32>
    %215 = arith.addf %213, %214 : vector<1x16xf32>
    %216 = math.tanh %215 : vector<1x16xf32>
    %217 = arith.mulf %212, %216 : vector<1x16xf32>
    %218 = vector.extract_strided_slice %80 {offsets = [4, 0, 0], sizes = [1, 16, 128], strides = [1, 1, 1]} : vector<6x16x128xf32> to vector<1x16x128xf32>
    %219 = vector.shape_cast %218 : vector<1x16x128xf32> to vector<16x128xf32>
    %cst_87 = arith.constant dense<0.000000e+00> : vector<1x128xf32>
    %220 = tpu.matmul %217, %219, %cst_87 {dimension_numbers = #tpu.dot_dimension_numbers<[1], [0], [0], [1], [0, 0, 1, 1], [], []>} : vector<1x16xf32>, vector<16x128xf32>, vector<1x128xf32> -> vector<1x128xf32>
    %221 = vector.extract_strided_slice %220 {offsets = [0, 0], sizes = [1, 64], strides = [1, 1]} : vector<1x128xf32> to vector<1x64xf32>
    %222 = vector.extract_strided_slice %220 {offsets = [0, 64], sizes = [1, 64], strides = [1, 1]} : vector<1x128xf32> to vector<1x64xf32>
    %223 = arith.addf %195, %222 : vector<1x64xf32>
    %224 = vector.extract_strided_slice %79 {offsets = [5, 0], sizes = [1, 64], strides = [1, 1]} : vector<6x64xf32> to vector<1x64xf32>
    %225 = arith.addf %224, %221 : vector<1x64xf32>
    %cst_88 = arith.constant 0.000000e+00 : f32
    %226 = vector.broadcast %cst_88 : f32 to vector<1x64xf32>
    %227 = arith.subf %226, %225 : vector<1x64xf32>
    %228 = math.exp %227 : vector<1x64xf32>
    %cst_89 = arith.constant 1.000000e+00 : f32
    %229 = vector.broadcast %cst_89 : f32 to vector<1x64xf32>
    %230 = arith.addf %229, %228 : vector<1x64xf32>
    %cst_90 = arith.constant 1.000000e+00 : f32
    %231 = vector.broadcast %cst_90 : f32 to vector<1x64xf32>
    %232 = arith.divf %231, %230 : vector<1x64xf32>
    %233 = vector.extract_strided_slice %232 {offsets = [0, 0], sizes = [1, 16], strides = [1, 1]} : vector<1x64xf32> to vector<1x16xf32>
    %234 = vector.extract_strided_slice %232 {offsets = [0, 16], sizes = [1, 16], strides = [1, 1]} : vector<1x64xf32> to vector<1x16xf32>
    %235 = vector.extract_strided_slice %232 {offsets = [0, 32], sizes = [1, 16], strides = [1, 1]} : vector<1x64xf32> to vector<1x16xf32>
    %cst_91 = arith.constant 2.000000e+00 : f32
    %236 = vector.broadcast %cst_91 : f32 to vector<1x16xf32>
    %237 = arith.mulf %236, %235 : vector<1x16xf32>
    %cst_92 = arith.constant 1.000000e+00 : f32
    %238 = vector.broadcast %cst_92 : f32 to vector<1x16xf32>
    %239 = arith.subf %237, %238 : vector<1x16xf32>
    %240 = vector.extract_strided_slice %232 {offsets = [0, 48], sizes = [1, 16], strides = [1, 1]} : vector<1x64xf32> to vector<1x16xf32>
    %241 = arith.mulf %234, %215 : vector<1x16xf32>
    %242 = arith.mulf %233, %239 : vector<1x16xf32>
    %243 = arith.addf %241, %242 : vector<1x16xf32>
    %244 = math.tanh %243 : vector<1x16xf32>
    %245 = arith.mulf %240, %244 : vector<1x16xf32>
    %246 = vector.extract_strided_slice %80 {offsets = [5, 0, 0], sizes = [1, 16, 128], strides = [1, 1, 1]} : vector<6x16x128xf32> to vector<1x16x128xf32>
    %247 = vector.shape_cast %246 : vector<1x16x128xf32> to vector<16x128xf32>
    %cst_93 = arith.constant dense<0.000000e+00> : vector<1x128xf32>
    %248 = tpu.matmul %245, %247, %cst_93 {dimension_numbers = #tpu.dot_dimension_numbers<[1], [0], [0], [1], [0, 0, 1, 1], [], []>} : vector<1x16xf32>, vector<16x128xf32>, vector<1x128xf32> -> vector<1x128xf32>
    %249 = vector.extract_strided_slice %248 {offsets = [0, 64], sizes = [1, 64], strides = [1, 1]} : vector<1x128xf32> to vector<1x64xf32>
    %250 = arith.addf %223, %249 : vector<1x64xf32>
    %c0_94 = arith.constant 0 : index
    %c0_95 = arith.constant 0 : index
    %251 = vector.load %arg11[%c0_94, %c0_95] : memref<1x64xf32, #tpu.memory_space<vmem>>, vector<1x64xf32>
    %252 = arith.addf %250, %251 : vector<1x64xf32>
    %cst_96 = arith.constant 0.000000e+00 : f32
    %253 = vector.broadcast %cst_96 : f32 to vector<1x64xf32>
    %254 = arith.maximumf %252, %253 : vector<1x64xf32>
    %c0_97 = arith.constant 0 : index
    %c0_98 = arith.constant 0 : index
    %255 = vector.load %arg12[%c0_97, %c0_98] : memref<1x64xf32, #tpu.memory_space<vmem>>, vector<1x64xf32>
    %256 = arith.mulf %254, %255 : vector<1x64xf32>
    %cst_99 = arith.constant dense<0.000000e+00> : vector<1xf32>
    %257 = vector.multi_reduction <add>, %256, %cst_99 [1] : vector<1x64xf32> to vector<1xf32>
    %258 = vector.shape_cast %257 : vector<1xf32> to vector<1x1xf32>
    %c0_100 = arith.constant 0 : index
    %c0_101 = arith.constant 0 : index
    %259 = vector.load %arg13[%c0_100, %c0_101] : memref<1x1xf32, #tpu.memory_space<vmem>>, vector<1x1xf32>
    %260 = arith.addf %258, %259 : vector<1x1xf32>
    %cst_102 = arith.constant 0.000000e+00 : f32
    %261 = vector.broadcast %cst_102 : f32 to vector<1x1xf32>
    %262 = arith.subf %261, %260 : vector<1x1xf32>
    %263 = math.exp %262 : vector<1x1xf32>
    %cst_103 = arith.constant 1.000000e+00 : f32
    %264 = vector.broadcast %cst_103 : f32 to vector<1x1xf32>
    %265 = arith.addf %264, %263 : vector<1x1xf32>
    %266 = tpu.reciprocal %265 {approx = true} : vector<1x1xf32> -> vector<1x1xf32>
    %267 = vector.shape_cast %266 : vector<1x1xf32> to vector<1x1x1xf32>
    %268 = vector.shape_cast %267 : vector<1x1x1xf32> to vector<1x1x1xf32>
    %269 = vector.broadcast %268 : vector<1x1x1xf32> to vector<1x8x128xf32>
    %c0_104 = arith.constant 0 : index
    %c0_105 = arith.constant 0 : index
    %c0_106 = arith.constant 0 : index
    %270 = vector.load %arg14[%c0_104, %c0_105, %c0_106] : memref<1x8x128xf32, #tpu.memory_space<vmem>>, vector<1x8x128xf32>
    tpu.vector_store %arg14[%c0_104, %c0_105, %c0_106], %269 {strides = array<i32>} : memref<1x8x128xf32, #tpu.memory_space<vmem>>, vector<1x8x128xf32>,
    return
  }
  func.func @transform_0(%arg0: i32) -> (i32, i32) {
    %c0_i32 = arith.constant 0 : i32
    %c0_i32_0 = arith.constant 0 : i32
    return %arg0, %c0_i32 : i32, i32
  }
  func.func @transform_1(%arg0: i32) -> (i32, i32) {
    %c0_i32 = arith.constant 0 : i32
    %c0_i32_0 = arith.constant 0 : i32
    %c0_i32_1 = arith.constant 0 : i32
    return %c0_i32, %c0_i32_0 : i32, i32
  }
  func.func @transform_2(%arg0: i32) -> (i32, i32) {
    %c0_i32 = arith.constant 0 : i32
    %c0_i32_0 = arith.constant 0 : i32
    %c0_i32_1 = arith.constant 0 : i32
    return %c0_i32, %c0_i32_0 : i32, i32
  }
  func.func @transform_3(%arg0: i32) -> (i32, i32) {
    %c0_i32 = arith.constant 0 : i32
    %c0_i32_0 = arith.constant 0 : i32
    %c0_i32_1 = arith.constant 0 : i32
    return %c0_i32, %c0_i32_0 : i32, i32
  }
  func.func @transform_4(%arg0: i32) -> (i32, i32) {
    %c0_i32 = arith.constant 0 : i32
    %c0_i32_0 = arith.constant 0 : i32
    %c0_i32_1 = arith.constant 0 : i32
    return %c0_i32, %c0_i32_0 : i32, i32
  }
  func.func @transform_5(%arg0: i32) -> (i32, i32, i32) {
    %c0_i32 = arith.constant 0 : i32
    %c0_i32_0 = arith.constant 0 : i32
    %c0_i32_1 = arith.constant 0 : i32
    %c0_i32_2 = arith.constant 0 : i32
    return %c0_i32, %c0_i32_0, %c0_i32_1 : i32, i32, i32
  }
  func.func @transform_6(%arg0: i32) -> (i32, i32) {
    %c0_i32 = arith.constant 0 : i32
    %c0_i32_0 = arith.constant 0 : i32
    %c0_i32_1 = arith.constant 0 : i32
    return %c0_i32, %c0_i32_0 : i32, i32
  }
  func.func @transform_7(%arg0: i32) -> (i32, i32) {
    %c0_i32 = arith.constant 0 : i32
    %c0_i32_0 = arith.constant 0 : i32
    %c0_i32_1 = arith.constant 0 : i32
    return %c0_i32, %c0_i32_0 : i32, i32
  }
  func.func @transform_8(%arg0: i32) -> (i32, i32) {
    %c0_i32 = arith.constant 0 : i32
    %c0_i32_0 = arith.constant 0 : i32
    %c0_i32_1 = arith.constant 0 : i32
    return %c0_i32, %c0_i32_0 : i32, i32
  }
  func.func @transform_9(%arg0: i32) -> (i32, i32, i32) {
    %c0_i32 = arith.constant 0 : i32
    %c0_i32_0 = arith.constant 0 : i32
    %c0_i32_1 = arith.constant 0 : i32
    %c0_i32_2 = arith.constant 0 : i32
    return %c0_i32, %c0_i32_0, %c0_i32_1 : i32, i32, i32
  }
  func.func @transform_10(%arg0: i32) -> (i32, i32) {
    %c0_i32 = arith.constant 0 : i32
    %c0_i32_0 = arith.constant 0 : i32
    %c0_i32_1 = arith.constant 0 : i32
    return %c0_i32, %c0_i32_0 : i32, i32
  }
  func.func @transform_11(%arg0: i32) -> (i32, i32) {
    %c0_i32 = arith.constant 0 : i32
    %c0_i32_0 = arith.constant 0 : i32
    %c0_i32_1 = arith.constant 0 : i32
    return %c0_i32, %c0_i32_0 : i32, i32
  }
  func.func @transform_12(%arg0: i32) -> (i32, i32) {
    %c0_i32 = arith.constant 0 : i32
    %c0_i32_0 = arith.constant 0 : i32
    %c0_i32_1 = arith.constant 0 : i32
    return %c0_i32, %c0_i32_0 : i32, i32
  }
  func.func @transform_13(%arg0: i32) -> (i32, i32, i32) {
    %c0_i32 = arith.constant 0 : i32
    %c0_i32_0 = arith.constant 0 : i32
    %c0_i32_1 = arith.constant 0 : i32
    return %arg0, %c0_i32, %c0_i32_0 : i32, i32, i32
  }
}

</mosaic_0001>

<bundles_post_ra>
// kernel: mul.15
= control target key start
LH: loop header
LB: loop body
LE: loop exit
PB: predicated region body
PF: predicated region fallthrough
CT: control target
= control target key end

     0   :  { %s34_s0 = inlined_call_operand.vmem [shape: f32[4,16], index: 0, kind: input, shape index: {}]   ;;  %s35_s1 = inlined_call_operand.vmem [shape: f32[4,16], index: 1, kind: input, shape index: {}]   ;;  %s36_s2 = inlined_call_operand.vmem [shape: f32[4,16], index: 2, kind: output, shape index: {}]  }
   0x1   :  { %v3_v0 = vld [vmem:[%s34_s0] sm:$0xf] }
   0x2   :  { %v4_v1 = vld [vmem:[%s35_s1] sm:$0xf] }
   0x3   :  { %v7_v2 = vmul.f32 %v4_v1, %v3_v0 }
   0x5   :  { %9 = vst [vmem:[%s36_s2] sm:$0xf] %v7_v2 }

// kernel: pallas_forward.1
= control target key start
LH: loop header
LB: loop body
LE: loop exit
PB: predicated region body
PF: predicated region fallthrough
CT: control target
= control target key end

     0   :  { %s10289_s27 = smov 0   ;;  %s13437_s0 = inlined_call_operand.vmem [shape: f32[224,768], index: 0, kind: input, shape index: {}]   ;;  %s13438_s1 = inlined_call_operand.vmem [shape: bf16[6144,128], index: 1, kind: input, shape index: {}]   ;;  %s13439_s2 = inlined_call_operand.vmem [shape: f32[1,128], index: 2, kind: input, shape index: {}]   ;;  %s13440_s3 = inlined_call_operand.vmem [shape: bf16[1024,64], index: 3, kind: input, shape index: {}]   ;;  %s13441_s4 = inlined_call_operand.vmem [shape: f32[1,64], index: 4, kind: input, shape index: {}]   ;;  %s13442_s5 = inlined_call_operand.vmem [shape: f32[3,64,32], index: 5, kind: input, shape index: {}]   ;;  %s13443_s6 = inlined_call_operand.vmem [shape: f32[1,32], index: 6, kind: input, shape index: {}]   ;;  %s13444_s7 = inlined_call_operand.vmem [shape: f32[32,64], index: 7, kind: input, shape index: {}]   ;;  %s13445_s8 = inlined_call_operand.vmem [shape: f32[1,64], index: 8, kind: input, shape index: {}]   ;;  %s13446_s9 = inlined_call_operand.vmem [shape: f32[6,16,128], index: 9, kind: input, shape index: {}]   ;;  %s13447_s10 = inlined_call_operand.vmem [shape: f32[1,64], index: 10, kind: input, shape index: {}]   ;;  %s13448_s11 = inlined_call_operand.vmem [shape: f32[1,64], index: 11, kind: input, shape index: {}]   ;;  %s13449_s12 = inlined_call_operand.<no memory space> [shape: f32[1,1], index: 12, kind: input, shape index: {}]   ;;  %s13450_s13 = inlined_call_operand.vmem [shape: f32[2,8,128], index: 13, kind: output, shape index: {}]  }
   0x1   :  { %v18_v0 = vstv %s13449_s12 }
   0x2   :  { %19 = vst [vmem:[#allocation4] sm:$0x1] %v18_v0 }
   0x3 LB: > { %s10295_s28 = sadd.s32 4294967295, %s10206_s27   ;;  %p8002_p0 = scmp.ge.s32.totalorder %s10206_s27, 1  ;;  %s10206_s27 = sphi %s10289_s27, %s25_s27  }
   0x4   : > { %p391_p1 = scmp.lt.s32.totalorder %s10206_s27, 3 }
   0x6   : > { %p392_p2 = pnand %p8002_p0, %p391_p1 }
   0x8   : > { %395 = sbr.rel (%p392_p2) target bundleno = 6130 (0x17f2), region = 72 }
   0xf   : > { %v9660_v1 = vld [vmem:[%s13438_s1 + $0x40] sm:$0xff]   ;;  %v9664_v5 = vld [vmem:[%s13438_s1 + $0x48] sm:$0xff]   ;;  %v9668_v9 = vld [vmem:[%s13438_s1 + $0x50] sm:$0xff]   ;;  %s435_s23 = smul.u32 14, %s10295_s28  ;;  %vm657_vm0 = vcmask 1046528   ;;  %vm910_vm1 = vcmask 1045504  }
  0x10   : > { %v9661_v2 = vld [vmem:[%s13438_s1 + $0xc0] sm:$0xff]   ;;  %8493 = vmatprep.subr.bf16.mxu0 %v9660_v1  ;;  %v9665_v6 = vld [vmem:[%s13438_s1 + $0xc8] sm:$0xff]   ;;  %v9669_v10 = vld [vmem:[%s13438_s1 + $0xd0] sm:$0xff]   ;;  %vm1139_vm2 = vcmask 1044480   ;;  %vm10209_vm3 = vmmov 0   ;;  %vm6885_vm4 = vcmask 523264  }
  0x11   : > { %v9662_v3 = vld [vmem:[%s13438_s1] sm:$0xff]   ;;  %8527 = vmatprep.subr.bf16.mxu1 %v9661_v2  ;;  %v9666_v7 = vld [vmem:[%s13438_s1 + $0x8] sm:$0xff]   ;;  %v9670_v11 = vld [vmem:[%s13438_s1 + $0x10] sm:$0xff]   ;;  %p436_p3 = scmp.lt.s32.totalorder %s435_s23, 27  ;;  %vm6888_vm5 = vcmask 516096   ;;  %vm7171_vm6 = vcmask 261120  }
  0x12   : > { %v9663_v4 = vld [vmem:[%s13438_s1 + $0x80] sm:$0xff]   ;;  %8494 = vmatpush3.bf16.msra.mxu0 %v9662_v3  ;;  %v9667_v8 = vld [vmem:[%s13438_s1 + $0x88] sm:$0xff]   ;;  %v9671_v12 = vld [vmem:[%s13438_s1 + $0x90] sm:$0xff]   ;;  %s10211_s16 = smov 96   ;;  %s10213_s21 = smov 32   ;;  %vm7286_vm7 = vcmask 130048  }
  0x13   : > { %8528 = vmatpush3.bf16.msra.mxu1 %v9663_v4  ;;  %8495 = vmatprep.subr.bf16.mxu0 %v9664_v5  ;;  %v9672_v13 = vld [vmem:[%s13438_s1 + $0x58] sm:$0xff]   ;;  %v9676_v17 = vld [vmem:[%s13438_s1 + $0x60] sm:$0xff]   ;;  %v9680_v21 = vld [vmem:[%s13438_s1 + $0x68] sm:$0xff]   ;;  %s13650_s23 = smov (!%p436_p3, %s435_s23), 27  ;;  %s10214_s22 = smov 80  }
  0x14   : > { %8529 = vmatprep.subr.bf16.mxu1 %v9665_v6  ;;  %v9673_v14 = vld [vmem:[%s13438_s1 + $0xd8] sm:$0xff]   ;;  %v9677_v18 = vld [vmem:[%s13438_s1 + $0xe0] sm:$0xff]   ;;  %v9681_v22 = vld [vmem:[%s13438_s1 + $0xe8] sm:$0xff]   ;;  %s9641_s17 = smul.u32 48, %s13650_s23  ;;  %p442_p4 = scmp.lt.s32.totalorder %s10295_s28, 1 }
  0x15   : > { %v9674_v15 = vld [vmem:[%s13438_s1 + $0x18] sm:$0xff]   ;;  %v9678_v19 = vld [vmem:[%s13438_s1 + $0x20] sm:$0xff]   ;;  %v9682_v23 = vld [vmem:[%s13438_s1 + $0x28] sm:$0xff]  }
  0x16   : > { %8496 = vmatpush3.bf16.msra.mxu0 %v9666_v7  ;;  %v9675_v16 = vld [vmem:[%s13438_s1 + $0x98] sm:$0xff]   ;;  %v9679_v20 = vld [vmem:[%s13438_s1 + $0xa0] sm:$0xff]   ;;  %v9683_v24 = vld [vmem:[%s13438_s1 + $0xa8] sm:$0xff]   ;;  %s10393_s30 = scalar_lea.vmem %s13437_s0, %s9641_s17  ;;  %s10212_s17 = smov 16  }
  0x17   : > { %8530 = vmatpush3.bf16.msra.mxu1 %v9667_v8  ;;  %8497 = vmatprep.subr.bf16.mxu0 %v9668_v9  ;;  %v9684_v25 = vld [vmem:[%s13438_s1 + $0x70] sm:$0xff]   ;;  %v9688_v29 = vld [vmem:[%s13438_s1 + $0x78] sm:$0xff]   ;;  %v448_v33 = vld [vmem:[%s10393_s30 + $0x8] sm:$0xff]  ;;  %s13652_s28 = smov (!%p442_p4, %s10295_s28), 1 }
  0x18   : > { %8531 = vmatprep.subr.bf16.mxu1 %v9669_v10  ;;  %v9685_v26 = vld [vmem:[%s13438_s1 + $0xf0] sm:$0xff]   ;;  %v9689_v30 = vld [vmem:[%s13438_s1 + $0xf8] sm:$0xff]   ;;  %v456_v37 = vld [vmem:[%s10393_s30 + $0x48] sm:$0xff] }
  0x19   : > { %v9686_v27 = vld [vmem:[%s13438_s1 + $0x30] sm:$0xff]   ;;  %v9690_v31 = vld [vmem:[%s13438_s1 + $0x38] sm:$0xff]   ;;  %v447_v38 = vld [vmem:[%s10393_s30] sm:$0xff] }
  0x1a   : > { %8498 = vmatpush3.bf16.msra.mxu0 %v9670_v11  ;;  %v9687_v28 = vld [vmem:[%s13438_s1 + $0xb0] sm:$0xff]   ;;  %v9691_v32 = vld [vmem:[%s13438_s1 + $0xb8] sm:$0xff]   ;;  %v10411_v42 = vld [vmem:[%s10393_s30 + $0x40] sm:$0xff] }
  0x1b   : > { %8532 = vmatpush3.bf16.msra.mxu1 %v9671_v12  ;;  %8499 = vmatprep.subr.bf16.mxu0 %v9672_v13  ;;  %v454_v34 = vld [vmem:[%s10393_s30 + $0x38] sm:$0xff]  ;;  %v10407_v39 = vld [vmem:[%s10393_s30 + $0x30] sm:$0xff]  ;;  %v9692_v43 = vld [vmem:[%s13438_s1 + $0x140] sm:$0xff]   ;;  %v13460_v1 = vrot.slane %v10411_v42, 1 }
  0x1c   : > { %8533 = vmatprep.subr.bf16.mxu1 %v9673_v14  ;;  %v450_v35 = vld [vmem:[%s10393_s30 + $0x18] sm:$0xff]  ;;  %v1411_v36 = vpack.c.bf16 %v454_v34, %v448_v33  ;;  %v449_v41 = vld [vmem:[%s10393_s30 + $0x10] sm:$0xff]  ;;  %v1410_v44 = vpack.c.bf16 %v10407_v39, %v447_v38  ;;  %v9693_v45 = vld [vmem:[%s13438_s1 + $0x1c0] sm:$0xff]   ;;  %v13461_v63 = vrot.slane %v10407_v39, 1 }
  0x1d   : > { %v1413_v40 = vpack.c.bf16 %v456_v37, %v450_v35  ;;  %v1412_v46 = vpack.c.bf16 %v10411_v42, %v449_v41  ;;  %v9694_v47 = vld [vmem:[%s13438_s1 + $0x100] sm:$0xff]   ;;  %v9696_v49 = vld [vmem:[%s13438_s1 + $0x148] sm:$0xff]   ;;  %v9700_v53 = vld [vmem:[%s13438_s1 + $0x150] sm:$0xff]  }
  0x1e   : > { %8500 = vmatpush3.bf16.msra.mxu0 %v9674_v15  ;;  %4665 = vmatprep.mubr.bf16.mxu0 %v1411_v36  ;;  %v9695_v48 = vld [vmem:[%s13438_s1 + $0x180] sm:$0xff]   ;;  %v9697_v50 = vld [vmem:[%s13438_s1 + $0x1c8] sm:$0xff]   ;;  %v9701_v54 = vld [vmem:[%s13438_s1 + $0x1d0] sm:$0xff]  }
  0x1f   : > { %8534 = vmatpush3.bf16.msra.mxu1 %v9675_v16  ;;  %8501 = vmatprep.subr.bf16.mxu0 %v9676_v17  ;;  %v9698_v51 = vld [vmem:[%s13438_s1 + $0x108] sm:$0xff]   ;;  %v9702_v55 = vld [vmem:[%s13438_s1 + $0x110] sm:$0xff]   ;;  %v9704_v57 = vld [vmem:[%s13438_s1 + $0x158] sm:$0xff]  }
  0x20   : > { %8535 = vmatprep.subr.bf16.mxu1 %v9677_v18  ;;  %4722 = vmatprep.mubr.bf16.mxu1 %v1413_v40  ;;  %v9699_v52 = vld [vmem:[%s13438_s1 + $0x188] sm:$0xff]   ;;  %v9703_v56 = vld [vmem:[%s13438_s1 + $0x190] sm:$0xff]   ;;  %v9705_v58 = vld [vmem:[%s13438_s1 + $0x1d8] sm:$0xff]  }
  0x21   : > { %v10458_v59 = vld [vmem:[%s10393_s30 + $0x68] sm:$0xff]  ;;  %v10461_v60 = vld [vmem:[%s10393_s30 + $0x98] sm:$0xff]  ;;  %v10474_v2 = vld [vmem:[%s10393_s30 + $0x60] sm:$0xff] }
  0x22   : > { %8502 = vmatpush3.bf16.msra.mxu0 %v9678_v19  ;;  %v1459_v61 = vpack.c.bf16 %v10461_v60, %v10458_v59  ;;  %v9706_v62 = vld [vmem:[%s13438_s1 + $0x118] sm:$0xff]   ;;  %v10477_v3 = vld [vmem:[%s10393_s30 + $0x90] sm:$0xff]  ;;  %v13459_v5 = vrot.slane %v10474_v2, 1  ;;  %v10486_v7 = vld [vmem:[%s10393_s30 + $0xa8] sm:$0xff] }
  0x23   : > { %8536 = vmatpush3.bf16.msra.mxu1 %v9679_v20  ;;  %8503 = vmatprep.subr.bf16.mxu0 %v9680_v21  ;;  %v9707_v0 = vld [vmem:[%s13438_s1 + $0x198] sm:$0xff]   ;;  %v1458_v6 = vpack.c.bf16 %v10477_v3, %v10474_v2  ;;  %v10489_v8 = vld [vmem:[%s10393_s30 + $0x70] sm:$0xff]  ;;  %v10492_v9 = vld [vmem:[%s10393_s30 + $0xa0] sm:$0xff] }
  0x24   : > { %8537 = vmatprep.subr.bf16.mxu1 %v9681_v22  ;;  %v10480_v4 = vld [vmem:[%s10393_s30 + $0x78] sm:$0xff]  ;;  %v13458_v11 = vrot.slane %v10489_v8, 1  ;;  %v9708_v12 = vld [vmem:[%s13438_s1 + $0x160] sm:$0xff]   ;;  %v1460_v13 = vpack.c.bf16 %v10492_v9, %v10489_v8  ;;  %v10507_v14 = vsel %vm657_vm0, %v13461_v63, %v13459_v5  ;;  %v9712_v19 = vld [vmem:[%s13438_s1 + $0x168] sm:$0xff]  }
  0x25   : > { %v1461_v10 = vpack.c.bf16 %v10486_v7, %v10480_v4  ;;  %v9709_v15 = vld [vmem:[%s13438_s1 + $0x1e0] sm:$0xff]   ;;  %v9713_v20 = vld [vmem:[%s13438_s1 + $0x1e8] sm:$0xff]   ;;  %v478_v22 = vld [vmem:[%s10393_s30 + $0xf8] sm:$0x3f] }
  0x26   : > { %8504 = vmatpush3.bf16.msra.mxu0 %v9682_v23  ;;  %v10517_v16 = vsel %vm657_vm0, %v13460_v1, %v13458_v11  ;;  %v9710_v17 = vld [vmem:[%s13438_s1 + $0x120] sm:$0xff]   ;;  %v10532_v21 = vld [vmem:[%s10393_s30 + $0xc8] sm:$0xff]  ;;  %v9716_v35 = vld [vmem:[%s13438_s1 + $0x170] sm:$0xff]  }
  0x27   : > { %8538 = vmatpush3.bf16.msra.mxu1 %v9683_v24  ;;  %8505 = vmatprep.subr.bf16.mxu0 %v9684_v25  ;;  %v9711_v18 = vld [vmem:[%s13438_s1 + $0x1a0] sm:$0xff]   ;;  %v1507_v23 = vpack.c.bf16 %v478_v22, %v10532_v21  ;;  %v9714_v24 = vld [vmem:[%s13438_s1 + $0x128] sm:$0xff]   ;;  %v9717_v36 = vld [vmem:[%s13438_s1 + $0x1f0] sm:$0xff]  }
  0x28   : > { %8539 = vmatprep.subr.bf16.mxu1 %v9685_v26  ;;  %v9715_v25 = vld [vmem:[%s13438_s1 + $0x1a8] sm:$0xff]   ;;  %v10543_v26 = vld [vmem:[%s10393_s30 + $0xc0] sm:$0xff]  ;;  %v9718_v37 = vld [vmem:[%s13438_s1 + $0x130] sm:$0xff]  }
  0x29   : > { %v9719_v38 = vld [vmem:[%s13438_s1 + $0x1b0] sm:$0xff]   ;;  %v9720_v40 = vld [vmem:[%s13438_s1 + $0x178] sm:$0xff]  }
  0x2a   : > { %8506 = vmatpush3.bf16.msra.mxu0 %v9686_v27  ;;  %v477_v27 = vld [vmem:[%s10393_s30 + $0xf0] sm:$0x3f]  ;;  %v9721_v41 = vld [vmem:[%s13438_s1 + $0x1f8] sm:$0xff]  }
  0x2b   : > { %8540 = vmatpush3.bf16.msra.mxu1 %v9687_v28  ;;  %8507 = vmatprep.subr.bf16.mxu0 %v9688_v29  ;;  %v10547_v28 = vld [vmem:[%s10393_s30 + $0xd8] sm:$0xff]  ;;  %v1506_v29 = vpack.c.bf16 %v477_v27, %v10543_v26  ;;  %v9732_v22 = vld [vmem:[%s13438_s1 + $0x250] sm:$0xff]   ;;  %v10634_v27 = vld [vmem:[%s10393_s30 + $0x1e8] sm:$0xff] }
  0x2c   : > { %8541 = vmatprep.subr.bf16.mxu1 %v9689_v30  ;;  %v480_v30 = vld [vmem:[%s10393_s30 + $0x108] sm:$0x3f]  ;;  %v9769_v5 = vld [vmem:[%s13438_s1 + $0x3d8] sm:$0xff]  }
  0x2d   : > { %v1509_v33 = vpack.c.bf16 %v480_v30, %v10547_v28  ;;  %v828_v30 = vrot.slane %v10634_v27, 1  ;;  %v9770_v1 = vld [vmem:[%s13438_s1 + $0x318] sm:$0xff]  }
  0x2e   : > { %8508 = vmatpush3.bf16.msra.mxu0 %v9690_v31  ;;  %v10552_v31 = vld [vmem:[%s10393_s30 + $0xd0] sm:$0xff] }
  0x2f   : > { %8542 = vmatpush3.bf16.msra.mxu1 %v9691_v32  ;;  %8561 = vmatprep.subr.bf16.mxu0 %v9692_v43  ;;  %v479_v32 = vld [vmem:[%s10393_s30 + $0x100] sm:$0x3f]  ;;  %v9722_v43 = vld [vmem:[%s13438_s1 + $0x138] sm:$0xff]  }
  0x30   : > { %8595 = vmatprep.subr.bf16.mxu1 %v9693_v45  ;;  %v1508_v34 = vpack.c.bf16 %v479_v32, %v10552_v31  ;;  %v452_v45 = vld [vmem:[%s10393_s30 + $0x28] sm:$0xff] }
  0x31   : > { %4666 = vmatmul.mubr.bf16.vlgmr.msra.gmra.mrb[0].mxu0 %v1410_v44  ;;  %v9723_v44 = vld [vmem:[%s13438_s1 + $0x1b8] sm:$0xff]  }
  0x32   : > { %4723 = vmatmul.mubr.bf16.vlgmr.msra.gmra.mrb[0].mxu1 %v1412_v46  ;;  %8562 = vmatpush3.bf16.msra.mxu0 %v9694_v47  ;;  %v458_v46 = vld [vmem:[%s10393_s30 + $0x58] sm:$0xff] }
  0x33   : > { %8596 = vmatpush3.bf16.msra.mxu1 %v9695_v48  ;;  %8563 = vmatprep.subr.bf16.mxu0 %v9696_v49  ;;  %v484_v47 = vld [vmem:[%s10393_s30 + $0x158] sm:$0xff]  ;;  %v1415_v48 = vpack.c.bf16 %v458_v46, %v452_v45  ;;  %v10585_v49 = vld [vmem:[%s10393_s30 + $0x188] sm:$0xff] }
  0x34   : > { %8597 = vmatprep.subr.bf16.mxu1 %v9697_v50  ;;  %4673 = vmatprep.mubr.bf16.mxu0 %v1459_v61  ;;  %v451_v50 = vld [vmem:[%s10393_s30 + $0x20] sm:$0xff]  ;;  %v9737_v46 = vld [vmem:[%s13438_s1 + $0x2d8] sm:$0xff]  }
  0x35   : > { %4730 = vmatprep.mubr.bf16.mxu1 %v1461_v10  ;;  %v9726_v61 = vld [vmem:[%s13438_s1 + $0x200] sm:$0xff]   ;;  %v9730_v10 = vld [vmem:[%s13438_s1 + $0x208] sm:$0xff]  }
  0x36   : > { %8564 = vmatpush3.bf16.msra.mxu0 %v9698_v51  ;;  %v457_v51 = vld [vmem:[%s10393_s30 + $0x50] sm:$0xff] }
  0x37   : > { %8598 = vmatpush3.bf16.msra.mxu1 %v9699_v52  ;;  %8565 = vmatprep.subr.bf16.mxu0 %v9700_v53  ;;  %v1417_v52 = vpack.c.bf16 %v10585_v49, %v484_v47  ;;  %v1414_v53 = vpack.c.bf16 %v457_v51, %v451_v50  ;;  %v9739_v51 = vld [vmem:[%s13438_s1 + $0x298] sm:$0xff]  }
  0x38   : > { %8599 = vmatprep.subr.bf16.mxu1 %v9701_v54  ;;  %v483_v54 = vld [vmem:[%s10393_s30 + $0x150] sm:$0xff] }
  0x39   : > { %4674 = vmatmul.mubr.bf16.gmra.mrb[4].mxu0 %v1458_v6  ;;  %v9729_v6 = vld [vmem:[%s13438_s1 + $0x2c8] sm:$0xff]  }
  0x3a   : > { %8566 = vmatpush3.bf16.msra.mxu0 %v9702_v55  ;;  %4731 = vmatmul.mubr.bf16.gmra.mrb[4].mxu1 %v1460_v13  ;;  %v10592_v55 = vld [vmem:[%s10393_s30 + $0x180] sm:$0xff]  ;;  %v464_v13 = vld [vmem:[%s10393_s30 + $0x88] sm:$0xff] }
  0x3b   : > { %8600 = vmatpush3.bf16.msra.mxu1 %v9703_v56  ;;  %8567 = vmatprep.subr.bf16.mxu0 %v9704_v57  ;;  %v1416_v56 = vpack.c.bf16 %v10592_v55, %v483_v54  ;;  %v9724_v57 = vld [vmem:[%s13438_s1 + $0x240] sm:$0xff]   ;;  %v13455_v32 = vrot.slane %v10592_v55, 1 }
  0x3c   : > { %8601 = vmatprep.subr.bf16.mxu1 %v9705_v58  ;;  %4681 = vmatprep.mubr.bf16.mxu0 %v1507_v23  ;;  %v9725_v58 = vld [vmem:[%s13438_s1 + $0x2c0] sm:$0xff]  }
  0x3d   : > { %4738 = vmatprep.mubr.bf16.mxu1 %v1509_v33  ;;  %v475_v54 = vld [vmem:[%s10393_s30 + $0xe0] sm:$0xff] }
  0x3e   : > { %8568 = vmatpush3.bf16.msra.mxu0 %v9706_v62  ;;  %v9727_v62 = vld [vmem:[%s13438_s1 + $0x280] sm:$0xff]  }
  0x3f   : > { %8602 = vmatpush3.bf16.msra.mxu1 %v9707_v0  ;;  %8569 = vmatprep.subr.bf16.mxu0 %v9708_v12  ;;  %v9728_v0 = vld [vmem:[%s13438_s1 + $0x248] sm:$0xff]  }
  0x40   : > { %8603 = vmatprep.subr.bf16.mxu1 %v9709_v15  ;;  %v9731_v12 = vld [vmem:[%s13438_s1 + $0x288] sm:$0xff]   ;;  %v470_v15 = vld [vmem:[%s10393_s30 + $0xb8] sm:$0xff] }
  0x41   : > { %4682 = vmatmul.mubr.bf16.gmra.mrb[8].mxu0 %v1506_v29 }
  0x42   : > { %8570 = vmatpush3.bf16.msra.mxu0 %v9710_v17  ;;  %4739 = vmatmul.mubr.bf16.gmra.mrb[8].mxu1 %v1508_v34  ;;  %v463_v17 = vld [vmem:[%s10393_s30 + $0x80] sm:$0xff]  ;;  %v9734_v34 = vld [vmem:[%s13438_s1 + $0x210] sm:$0xff]  }
  0x43   : > { %8604 = vmatpush3.bf16.msra.mxu1 %v9711_v18  ;;  %8571 = vmatprep.subr.bf16.mxu0 %v9712_v19  ;;  %v469_v18 = vld [vmem:[%s10393_s30 + $0xb0] sm:$0xff]  ;;  %v13456_v19 = vrot.slane %v10585_v49, 1 }
  0x44   : > { %8605 = vmatprep.subr.bf16.mxu1 %v9713_v20  ;;  %4779 = vmatprep.mubr.bf16.mxu0 %v1415_v48  ;;  %v1463_v20 = vpack.c.bf16 %v470_v15, %v464_v13  ;;  %v1462_v23 = vpack.c.bf16 %v469_v18, %v463_v17  ;;  %v9738_v48 = vld [vmem:[%s13438_s1 + $0x218] sm:$0xff]   ;;  %v9742_v13 = vld [vmem:[%s13438_s1 + $0x220] sm:$0xff]   ;;  %v10708_v17 = vld [vmem:[%s10393_s30 + $0x210] sm:$0xff] }
  0x45   : > { %4836 = vmatprep.mubr.bf16.mxu1 %v1417_v52  ;;  %v476_v52 = vld [vmem:[%s10393_s30 + $0xe8] sm:$0xff]  ;;  %v9743_v15 = vld [vmem:[%s13438_s1 + $0x2a0] sm:$0xff]  }
  0x46   : > { %8572 = vmatpush3.bf16.msra.mxu0 %v9714_v24  ;;  %v9733_v24 = vld [vmem:[%s13438_s1 + $0x2d0] sm:$0xff]   ;;  %v513_v18 = vld [vmem:[%s10393_s30 + $0x240] sm:$0x3f] }
  0x47   : > { %8606 = vmatpush3.bf16.msra.mxu1 %v9715_v25  ;;  %8573 = vmatprep.subr.bf16.mxu0 %v9716_v35  ;;  %v10631_v25 = vld [vmem:[%s10393_s30 + $0x1b8] sm:$0xff]  ;;  %v9735_v35 = vld [vmem:[%s13438_s1 + $0x290] sm:$0xff]  }
  0x48   : > { %8607 = vmatprep.subr.bf16.mxu1 %v9717_v36  ;;  %v816_v29 = vrot.slane %v10631_v25, 1  ;;  %v1465_v33 = vpack.c.bf16 %v10634_v27, %v10631_v25  ;;  %v10648_v36 = vld [vmem:[%s10393_s30 + $0x1b0] sm:$0xff] }
  0x4a   : > { %8574 = vmatpush3.bf16.msra.mxu0 %v9718_v37  ;;  %v10653_v37 = vsel %vm657_vm0, %v13456_v19, %v816_v29  ;;  %v10919_v19 = vld [vmem:[%s10393_s30 + $0x220] sm:$0xff] }
  0x4b   : > { %8608 = vmatpush3.bf16.msra.mxu1 %v9719_v38  ;;  %8575 = vmatprep.subr.bf16.mxu0 %v9720_v40  ;;  %v10656_v38 = vsel %vm657_vm0, %v816_v29, %v828_v30  ;;  %v10659_v40 = vld [vmem:[%s10393_s30 + $0x1e0] sm:$0xff]  ;;  %13517 = vst [vmem:[#allocation14_spill] sm:$0xff] %v10919_v19 }
  0x4c   : > { %8609 = vmatprep.subr.bf16.mxu1 %v9721_v41  ;;  %v814_v41 = vrot.slane %v10648_v36, 1  ;;  %v1464_v45 = vpack.c.bf16 %v10659_v40, %v10648_v36 }
  0x4e   : > { %8576 = vmatpush3.bf16.msra.mxu0 %v9722_v43  ;;  %v9736_v43 = vld [vmem:[%s13438_s1 + $0x258] sm:$0xff]   ;;  %v10674_v47 = vsel %vm657_vm0, %v13455_v32, %v814_v41 }
  0x4f   : > { %8610 = vmatpush3.bf16.msra.mxu1 %v9723_v44  ;;  %8629 = vmatprep.subr.bf16.mxu0 %v9724_v57  ;;  %v826_v44 = vrot.slane %v10659_v40, 1 }
  0x50   : > { %8663 = vmatprep.subr.bf16.mxu1 %v9725_v58 }
  0x51   : > { %4780 = vmatmul.mubr.bf16.vlgmr.msra.gmra.mrb[12].mxu0 %v1414_v53  ;;  %v10680_v50 = vsel %vm657_vm0, %v814_v41, %v826_v44  ;;  %v482_v53 = vld [vmem:[%s10393_s30 + $0x118] sm:$0x3f]  ;;  %v9747_v41 = vld [vmem:[%s13438_s1 + $0x2a8] sm:$0xff]  }
  0x52   : > { %4837 = vmatmul.mubr.bf16.vlgmr.msra.gmra.mrb[12].mxu1 %v1416_v56  ;;  %8630 = vmatpush3.bf16.msra.mxu0 %v9726_v61  ;;  %v481_v56 = vld [vmem:[%s10393_s30 + $0x110] sm:$0x3f]  ;;  %v1511_v57 = vpack.c.bf16 %v482_v53, %v476_v52  ;;  %v9740_v61 = vld [vmem:[%s13438_s1 + $0x260] sm:$0xff]   ;;  %v9754_v52 = vld [vmem:[%s13438_s1 + $0x238] sm:$0xff]  }
  0x53   : > { %8664 = vmatpush3.bf16.msra.mxu1 %v9727_v62  ;;  %8631 = vmatprep.subr.bf16.mxu0 %v9728_v0  ;;  %v1510_v58 = vpack.c.bf16 %v481_v56, %v475_v54  ;;  %v9741_v62 = vld [vmem:[%s13438_s1 + $0x2e0] sm:$0xff]   ;;  %v10696_v0 = vld [vmem:[%s10393_s30 + $0x218] sm:$0xff]  ;;  %v486_v54 = vld [vmem:[%s10393_s30 + $0x168] sm:$0xff] }
  0x54   : > { %8665 = vmatprep.subr.bf16.mxu1 %v9729_v6  ;;  %4787 = vmatprep.mubr.bf16.mxu0 %v1463_v20  ;;  %v514_v6 = vld [vmem:[%s10393_s30 + $0x248] sm:$0x3f]  ;;  %v13453_v20 = vrot.slane %v10708_v17, 1  ;;  %v9755_v53 = vld [vmem:[%s13438_s1 + $0x2b8] sm:$0xff]  }
  0x55   : > { %4844 = vmatprep.mubr.bf16.mxu1 %v1465_v33  ;;  %v9745_v33 = vld [vmem:[%s13438_s1 + $0x2e8] sm:$0xff]   ;;  %v10765_v56 = vld [vmem:[%s10393_s30 + $0x198] sm:$0xff] }
  0x56   : > { %8632 = vmatpush3.bf16.msra.mxu0 %v9730_v10  ;;  %v13454_v10 = vrot.slane %v10696_v0, 1 }
  0x57   : > { %8666 = vmatpush3.bf16.msra.mxu1 %v9731_v12  ;;  %8633 = vmatprep.subr.bf16.mxu0 %v9732_v22  ;;  %v1513_v12 = vpack.c.bf16 %v514_v6, %v10696_v0  ;;  %v10774_v6 = vld [vmem:[%s10393_s30 + $0x190] sm:$0xff] }
  0x58   : > { %8667 = vmatprep.subr.bf16.mxu1 %v9733_v24  ;;  %v10715_v22 = vsel %vm657_vm0, %v828_v30, %v13454_v10  ;;  %v9744_v24 = vld [vmem:[%s13438_s1 + $0x268] sm:$0xff]  }
  0x59   : > { %4788 = vmatmul.mubr.bf16.gmra.mrb[16].mxu0 %v1462_v23  ;;  %v1512_v23 = vpack.c.bf16 %v513_v18, %v10708_v17  ;;  %v9746_v30 = vld [vmem:[%s13438_s1 + $0x228] sm:$0xff]  }
  0x5a   : > { %8634 = vmatpush3.bf16.msra.mxu0 %v9734_v34  ;;  %4845 = vmatmul.mubr.bf16.gmra.mrb[16].mxu1 %v1464_v45  ;;  %v10729_v34 = vsel %vm657_vm0, %v826_v44, %v13453_v20  ;;  %v9749_v44 = vld [vmem:[%s13438_s1 + $0x2f0] sm:$0xff]  }
  0x5b   : > { %8668 = vmatpush3.bf16.msra.mxu1 %v9735_v35  ;;  %8635 = vmatprep.subr.bf16.mxu0 %v9736_v43  ;;  %v9748_v43 = vld [vmem:[%s13438_s1 + $0x270] sm:$0xff]   ;;  %v10881_v35 = vld [vmem:[%s10393_s30 + $0x200] sm:$0xff] }
  0x5c   : > { %8669 = vmatprep.subr.bf16.mxu1 %v9737_v46  ;;  %4795 = vmatprep.mubr.bf16.mxu0 %v1511_v57  ;;  %v9750_v45 = vld [vmem:[%s13438_s1 + $0x230] sm:$0xff]   ;;  %v488_v57 = vld [vmem:[%s10393_s30 + $0x178] sm:$0xff] }
  0x5d   : > { %4852 = vmatprep.mubr.bf16.mxu1 %v1513_v12  ;;  %v9751_v46 = vld [vmem:[%s13438_s1 + $0x2b0] sm:$0xff]  }
  0x5e   : > { %8636 = vmatpush3.bf16.msra.mxu0 %v9738_v48  ;;  %v9752_v48 = vld [vmem:[%s13438_s1 + $0x278] sm:$0xff]   ;;  %v487_v12 = vld [vmem:[%s10393_s30 + $0x170] sm:$0xff] }
  0x5f   : > { %8670 = vmatpush3.bf16.msra.mxu1 %v9739_v51  ;;  %8637 = vmatprep.subr.bf16.mxu0 %v9740_v61  ;;  %v9753_v51 = vld [vmem:[%s13438_s1 + $0x2f8] sm:$0xff]   ;;  %v1419_v61 = vpack.c.bf16 %v10765_v56, %v486_v54  ;;  %v10872_v20 = vld [vmem:[%s10393_s30 + $0x1d0] sm:$0xff] }
  0x60   : > { %8671 = vmatprep.subr.bf16.mxu1 %v9741_v62  ;;  %v485_v62 = vld [vmem:[%s10393_s30 + $0x160] sm:$0xff]  ;;  %v822_v29 = vrot.slane %v10872_v20, 1 }
  0x61   : > { %4796 = vmatmul.mubr.bf16.gmra.mrb[20].mxu0 %v1510_v58  ;;  %v10769_v58 = vld [vmem:[%s10393_s30 + $0x1a8] sm:$0xff]  ;;  %v1418_v18 = vpack.c.bf16 %v10774_v6, %v485_v62 }
  0x62   : > { %8638 = vmatpush3.bf16.msra.mxu0 %v9742_v13  ;;  %4853 = vmatmul.mubr.bf16.gmra.mrb[20].mxu1 %v1512_v23  ;;  %v1421_v13 = vpack.c.bf16 %v10769_v58, %v488_v57  ;;  %v10817_v57 = vld [vmem:[%s10393_s30 + $0x1c0] sm:$0xff] }
  0x63   : > { %8672 = vmatpush3.bf16.msra.mxu1 %v9743_v15  ;;  %8639 = vmatprep.subr.bf16.mxu0 %v9744_v24  ;;  %v10779_v15 = vld [vmem:[%s10393_s30 + $0x1a0] sm:$0xff] }
  0x64   : > { %8673 = vmatprep.subr.bf16.mxu1 %v9745_v33  ;;  %4893 = vmatprep.mubr.bf16.mxu0 %v1419_v61  ;;  %v1420_v23 = vpack.c.bf16 %v10779_v15, %v487_v12  ;;  %v9756_v24 = vld [vmem:[%s13438_s1 + $0x340] sm:$0xff]   ;;  %v10820_v61 = vld [vmem:[%s10393_s30 + $0x1f0] sm:$0xff] }
  0x65   : > { %v9757_v33 = vld [vmem:[%s13438_s1 + $0x3c0] sm:$0xff]   ;;  %4950 = vmatprep.mubr.bf16.mxu1 %v1421_v13  ;;  %v818_v13 = vrot.slane %v10817_v57, 1 }
  0x66   : > { %8640 = vmatpush3.bf16.msra.mxu0 %v9746_v30  ;;  %v9758_v30 = vld [vmem:[%s13438_s1 + $0x300] sm:$0xff]  }
  0x67   : > { %8674 = vmatpush3.bf16.msra.mxu1 %v9747_v41  ;;  %8641 = vmatprep.subr.bf16.mxu0 %v9748_v43  ;;  %v9759_v41 = vld [vmem:[%s13438_s1 + $0x380] sm:$0xff]   ;;  %v9760_v43 = vld [vmem:[%s13438_s1 + $0x348] sm:$0xff]  }
  0x68   : > { %8675 = vmatprep.subr.bf16.mxu1 %v9749_v44  ;;  %v9761_v44 = vld [vmem:[%s13438_s1 + $0x3c8] sm:$0xff]  }
  0x6a   : > { %8642 = vmatpush3.bf16.msra.mxu0 %v9750_v45  ;;  %v9762_v45 = vld [vmem:[%s13438_s1 + $0x308] sm:$0xff]  }
  0x6b   : > { %8676 = vmatpush3.bf16.msra.mxu1 %v9751_v46  ;;  %8643 = vmatprep.subr.bf16.mxu0 %v9752_v48  ;;  %v13451_v46 = vrot.slane %v10765_v56, 1  ;;  %v13452_v48 = vrot.slane %v10774_v6, 1 }
  0x6c   : > { %8677 = vmatprep.subr.bf16.mxu1 %v9753_v51  ;;  %v9763_v51 = vld [vmem:[%s13438_s1 + $0x388] sm:$0xff]  }
  0x6e   : > { %8644 = vmatpush3.bf16.msra.mxu0 %v9754_v52  ;;  %v10810_v52 = vld [vmem:[%s10393_s30 + $0x1c8] sm:$0xff] }
  0x6f   : > { %8678 = vmatpush3.bf16.msra.mxu1 %v9755_v53  ;;  %8697 = vmatprep.subr.bf16.mxu0 %v9756_v24  ;;  %v10813_v53 = vld [vmem:[%s10393_s30 + $0x1f8] sm:$0xff]  ;;  %v820_v54 = vrot.slane %v10810_v52, 1  ;;  %v13462_v24 = vrot.slane %v10820_v61, 1 }
  0x70   : > { %8731 = vmatprep.subr.bf16.mxu1 %v9757_v33  ;;  %v832_v62 = vrot.slane %v10813_v53, 1  ;;  %v1467_v12 = vpack.c.bf16 %v10813_v53, %v10810_v52  ;;  %v1466_v33 = vpack.c.bf16 %v10820_v61, %v10817_v57 }
  0x71   : > { %4894 = vmatmul.mubr.bf16.vlgmr.msra.gmra.mrb[24].mxu0 %v1418_v18  ;;  %v9764_v18 = vld [vmem:[%s13438_s1 + $0x350] sm:$0xff]  }
  0x72   : > { %4951 = vmatmul.mubr.bf16.vlgmr.msra.gmra.mrb[24].mxu1 %v1420_v23  ;;  %8698 = vmatpush3.bf16.msra.mxu0 %v9758_v30  ;;  %v13457_v23 = vrot.slane %v10769_v58, 1  ;;  %v9765_v30 = vld [vmem:[%s13438_s1 + $0x3d0] sm:$0xff]  }
  0x73   : > { %8732 = vmatpush3.bf16.msra.mxu1 %v9759_v41  ;;  %8699 = vmatprep.subr.bf16.mxu0 %v9760_v43  ;;  %v10837_v41 = vld [vmem:[%s10393_s30 + $0x1d8] sm:$0xff]  ;;  %v10842_v43 = vsel %vm657_vm0, %v13451_v46, %v820_v54  ;;  %v10862_v46 = vsel %vm657_vm0, %v818_v13, %v13462_v24  ;;  %v10914_v24 = vld [vmem:[%s10393_s30 + $0x228] sm:$0xff] }
  0x74   : > { %8733 = vmatprep.subr.bf16.mxu1 %v9761_v44  ;;  %4901 = vmatprep.mubr.bf16.mxu0 %v1467_v12  ;;  %13508 = vst [vmem:[#allocation5_spill] sm:$0xff] %v10842_v43  ;;  %v10847_v44 = vsel %vm657_vm0, %v13452_v48, %v818_v13  ;;  %v824_v12 = vrot.slane %v10837_v41, 1  ;;  %13511 = vst [vmem:[#allocation8_spill] sm:$0xff] %v10862_v46  ;;  %v13463_v48 = vrot.slane %v10779_v15, 1  ;;  %v13465_v13 = vrot.slane %v10919_v19, 1  ;;  %v10990_v46 = vld [vmem:[%s10393_s30 + $0x38] sm:$0xff] }
  0x75   : > { %13509 = vst [vmem:[#allocation6_spill] sm:$0xff] %v10847_v44  ;;  %13516 = vst [vmem:[#allocation13_spill] sm:$0xff] %v10914_v24  ;;  %v13520_v44 = vrot.slane %v10407_v39, 2 }
  0x76   : > { %8700 = vmatpush3.bf16.msra.mxu0 %v9762_v45  ;;  %v10850_v45 = vsel %vm657_vm0, %v820_v54, %v832_v62  ;;  %v10877_v10 = vsel %vm657_vm0, %v13457_v23, %v824_v12  ;;  %v834_v23 = vrot.slane %v10881_v35, 1  ;;  %13530 = vst [vmem:[#allocation22_spill] sm:$0xff] %v10990_v46 }
  0x77   : > { %8734 = vmatpush3.bf16.msra.mxu1 %v9763_v51  ;;  %8701 = vmatprep.subr.bf16.mxu0 %v9764_v18  ;;  %13510 = vst [vmem:[#allocation7_spill] sm:$0xff] %v10850_v45  ;;  %v10853_v51 = vld [vmem:[%s10393_s30 + $0x208] sm:$0xff]  ;;  %v9766_v18 = vld [vmem:[%s13438_s1 + $0x310] sm:$0xff]   ;;  %13512 = vst [vmem:[#allocation9_spill] sm:$0xff] %v10877_v10 }
  0x78   : > { %8735 = vmatprep.subr.bf16.mxu1 %v9765_v30  ;;  %v836_v54 = vrot.slane %v10853_v51, 1  ;;  %v9767_v30 = vld [vmem:[%s13438_s1 + $0x390] sm:$0xff]   ;;  %v10908_v63 = vsel %vm657_vm0, %v822_v29, %v834_v23  ;;  %v519_v45 = vld [vmem:[%s10393_s30] sm:$0xfe] }
  0x79   : > { %4902 = vmatmul.mubr.bf16.gmra.mrb[28].mxu0 %v1466_v33  ;;  %v1469_v33 = vpack.c.bf16 %v10853_v51, %v10837_v41  ;;  %13515 = vst [vmem:[#allocation12_spill] sm:$0xff] %v10908_v63  ;;  %v522_v63 = vld [vmem:[%s10393_s30 + $0x18] sm:$0xfe] }
  0x7a   : > { %8702 = vmatpush3.bf16.msra.mxu0 %v9766_v18  ;;  %v9768_v18 = vld [vmem:[%s13438_s1 + $0x358] sm:$0xff]   ;;  %v10888_v32 = vsel %vm657_vm0, %v824_v12, %v836_v54  ;;  %v10901_v12 = vsel %vm657_vm0, %v13463_v48, %v822_v29  ;;  %v9772_v29 = vld [vmem:[%s13438_s1 + $0x360] sm:$0xff]  }
  0x7b   : > { %4958 = vmatprep.mubr.bf16.mxu1 %v1469_v33  ;;  %13513 = vst [vmem:[#allocation10_spill] sm:$0xff] %v10888_v32  ;;  %8736 = vmatpush3.bf16.msra.mxu1 %v9767_v30  ;;  %v1468_v33 = vpack.c.bf16 %v10881_v35, %v10872_v20  ;;  %13514 = vst [vmem:[#allocation11_spill] sm:$0xff] %v10901_v12  ;;  %v516_v48 = vld [vmem:[%s10393_s30 + $0x258] sm:$0x3f]  ;;  %v515_v30 = vld [vmem:[%s10393_s30 + $0x250] sm:$0x3f] }
  0x7c   : > { %8703 = vmatprep.subr.bf16.mxu0 %v9768_v18  ;;  %8737 = vmatprep.subr.bf16.mxu1 %v9769_v5  ;;  %v9771_v18 = vld [vmem:[%s13438_s1 + $0x398] sm:$0xff]   ;;  %v1515_v5 = vpack.c.bf16 %v516_v48, %v10914_v24  ;;  %v1514_v11 = vpack.c.bf16 %v515_v30, %v10919_v19  ;;  %v13519_v12 = vrot.slane %v10474_v2, 2  ;;  %v13522_v48 = vrot.slane %v10489_v8, 2  ;;  %v9781_v32 = vld [vmem:[%s13438_s1 + $0x3f0] sm:$0xff]  }
  0x7d   : > { %4959 = vmatmul.mubr.bf16.gmra.mrb[28].mxu1 %v1468_v33  ;;  %v13464_v33 = vrot.slane %v10914_v24, 1 }
  0x7e   : > { %8704 = vmatpush3.bf16.msra.mxu0 %v9770_v1  ;;  %v10938_v10 = vsel %vm910_vm1, %v13520_v44, %v13519_v12  ;;  %4909 = vmatprep.mubr.bf16.mxu0 %v1515_v5  ;;  %v13526_v12 = vrot.slane %v10820_v61, 1  ;;  %v9774_v44 = vld [vmem:[%s13438_s1 + $0x320] sm:$0xff]  }
  0x7f   : > { %8738 = vmatpush3.bf16.msra.mxu1 %v9771_v18  ;;  %8705 = vmatprep.subr.bf16.mxu0 %v9772_v29  ;;  %v10931_v1 = vsel %vm657_vm0, %v832_v62, %v13464_v33  ;;  %13521 = vst [vmem:[#allocation16_spill] sm:$0xff] %v10938_v10  ;;  %v13523_v18 = vrot.slane %v10411_v42, 2  ;;  %v9773_v62 = vld [vmem:[%s13438_s1 + $0x3e0] sm:$0xff]   ;;  %v10951_v29 = vld [vmem:[%s10393_s30 + $0x238] sm:$0xff]  ;;  %v518_v33 = vld [vmem:[%s10393_s30 + $0x268] sm:$0x3f] }
  0x80   : > { %13518 = vst [vmem:[#allocation15_spill] sm:$0xff] %v10931_v1  ;;  %13525 = vst [vmem:[#allocation18_spill] sm:$0xff] %v10951_v29  ;;  %v10961_v10 = vsel %vm657_vm0, %v13526_v12, %v13465_v13  ;;  %v13468_v5 = vrot.slane %v10951_v29, 1  ;;  %8739 = vmatprep.subr.bf16.mxu1 %v9773_v62  ;;  %v9775_v12 = vld [vmem:[%s13438_s1 + $0x3a0] sm:$0xff]   ;;  %v521_v1 = vld [vmem:[%s10393_s30 + $0x10] sm:$0xfe] }
  0x81   : > { %v10945_v30 = vsel %vm910_vm1, %v13523_v18, %v13522_v48  ;;  %13527 = vst [vmem:[#allocation19_spill] sm:$0xff] %v10961_v10  ;;  %4910 = vmatmul.mubr.bf16.gmra.mrb[32].mxu0 %v1514_v11  ;;  %v1517_v48 = vpack.c.bf16 %v518_v33, %v10951_v29  ;;  %v10974_v11 = vld [vmem:[%s10393_s30 + $0x230] sm:$0xff]  ;;  %v517_v13 = vld [vmem:[%s10393_s30 + $0x260] sm:$0x3f]  ;;  %v662_v10 = vrot.slane %v10990_v46, 1  ;;  %v13533_v46 = vrot.slane %v10532_v21, 1 }
  0x82   : > { %13524 = vst [vmem:[#allocation17_spill] sm:$0xff] %v10945_v30  ;;  %13528 = vst [vmem:[#allocation20_spill] sm:$0xff] %v10974_v11  ;;  %v10980_v33 = vsel %vm657_vm0, %v836_v54, %v13468_v5  ;;  %8706 = vmatpush3.bf16.msra.mxu0 %v9774_v44  ;;  %v13469_v62 = vrot.slane %v10974_v11, 1  ;;  %v1516_v18 = vpack.c.bf16 %v517_v13, %v10974_v11  ;;  %v9776_v30 = vld [vmem:[%s13438_s1 + $0x368] sm:$0xff]  }
  0x83   : > { %4966 = vmatprep.mubr.bf16.mxu1 %v1517_v48  ;;  %13529 = vst [vmem:[#allocation21_spill] sm:$0xff] %v10980_v33  ;;  %8740 = vmatpush3.bf16.msra.mxu1 %v9775_v12  ;;  %v9777_v54 = vld [vmem:[%s13438_s1 + $0x3e8] sm:$0xff]  }
  0x84   : > { %v10999_v13 = vsel %vm657_vm0, %v834_v23, %v13469_v62  ;;  %v11002_v44 = vld [vmem:[%s10393_s30 + $0x48] sm:$0xff]  ;;  %8707 = vmatprep.subr.bf16.mxu0 %v9776_v30  ;;  %8741 = vmatprep.subr.bf16.mxu1 %v9777_v54  ;;  %v678_v23 = vrot.slane %v10458_v59, 1  ;;  %v9780_v62 = vld [vmem:[%s13438_s1 + $0x370] sm:$0xff]   ;;  %v690_v30 = vrot.slane %v10461_v60, 1  ;;  %v682_v54 = vrot.slane %v10480_v4, 1  ;;  %v9784_v4 = vld [vmem:[%s13438_s1 + $0x378] sm:$0xff]  }
  0x85   : > { %4967 = vmatmul.mubr.bf16.gmra.mrb[32].mxu1 %v1516_v18  ;;  %13531 = vst [vmem:[#allocation23_spill] sm:$0xff] %v10999_v13  ;;  %13532 = vst [vmem:[#allocation24_spill] sm:$0xff] %v11002_v44  ;;  %v668_v12 = vrot.slane %v11002_v44, 1  ;;  %v9778_v5 = vld [vmem:[%s13438_s1 + $0x328] sm:$0xff]   ;;  %v9782_v18 = vld [vmem:[%s13438_s1 + $0x330] sm:$0xff]   ;;  %v688_v59 = vrot.slane %v10477_v3, 1 }
  0x86   : > { %v9779_v48 = vld [vmem:[%s13438_s1 + $0x3a8] sm:$0xff]   ;;  %8708 = vmatpush3.bf16.msra.mxu0 %v9778_v5  ;;  %v9783_v60 = vld [vmem:[%s13438_s1 + $0x3b0] sm:$0xff]   ;;  %v694_v5 = vrot.slane %v10486_v7, 1  ;;  %v9785_v3 = vld [vmem:[%s13438_s1 + $0x3f8] sm:$0xff]   ;;  %v664_v44 = vrot.slane %v521_v1, 1  ;;  %v703_v43 = vsel %vm657_vm0, %v690_v30, %v13533_v46  ;;  %v13535_v46 = vrot.slane %v10407_v39, 1 }
  0x87   : > { %8742 = vmatpush3.bf16.msra.mxu1 %v9779_v48  ;;  %8709 = vmatprep.subr.bf16.mxu0 %v9780_v62  ;;  %v692_v62 = vrot.slane %v10492_v9, 1  ;;  %v9786_v7 = vld [vmem:[%s13438_s1 + $0x338] sm:$0xff]   ;;  %v683_v33 = vsel %vm657_vm0, %v668_v12, %v682_v54  ;;  %v691_v48 = vsel %vm657_vm0, %v678_v23, %v690_v30 }
  0x88   : > { %8743 = vmatprep.subr.bf16.mxu1 %v9781_v32  ;;  %v9787_v9 = vld [vmem:[%s13438_s1 + $0x3b8] sm:$0xff]   ;;  %v695_v11 = vsel %vm657_vm0, %v682_v54, %v694_v5  ;;  %v9789_v54 = vld [vmem:[%s13438_s1 + $0x4c0] sm:$0xff]  }
  0x8a   : > { %8710 = vmatpush3.bf16.msra.mxu0 %v9782_v18  ;;  %v520_v18 = vld [vmem:[%s10393_s30 + $0x8] sm:$0xfe] }
  0x8b   : > { %8744 = vmatpush3.bf16.msra.mxu1 %v9783_v60  ;;  %8711 = vmatprep.subr.bf16.mxu0 %v9784_v4  ;;  %v679_v60 = vsel %vm657_vm0, %v662_v10, %v678_v23  ;;  %v661_v32 = vrot.slane %v520_v18, 1  ;;  %v667_v4 = vrot.slane %v522_v63, 1  ;;  %v9788_v63 = vld [vmem:[%s13438_s1 + $0x440] sm:$0xff]   ;;  %v13534_v18 = vrot.slane %v10547_v28, 1 }
  0x8c   : > { %8745 = vmatprep.subr.bf16.mxu1 %v9785_v3  ;;  %v658_v3 = vrot.slane %v519_v45, 1  ;;  %v704_v45 = vrot.slane %v10552_v31, 1  ;;  %v9812_v31 = vld [vmem:[%s13438_s1 + $0x470] sm:$0xff]  }
  0x8d   : > { %v663_v13 = vsel %vm657_vm0, %v661_v32, %v662_v10  ;;  %v707_v23 = vsel %vm657_vm0, %v694_v5, %v13534_v18  ;;  %v13536_v10 = vrot.slane %v10411_v42, 1 }
  0x8e   : > { %8712 = vmatpush3.bf16.msra.mxu0 %v9786_v7  ;;  %v669_v7 = vsel %vm657_vm0, %v667_v4, %v668_v12  ;;  %v1423_v1 = vpack.c.bf16 %v679_v60, %v663_v13  ;;  %v660_v30 = vsel %vm657_vm0, %v658_v3, %v13535_v46  ;;  %v9791_v13 = vld [vmem:[%s13438_s1 + $0x480] sm:$0xff]   ;;  %v1473_v4 = vpack.c.bf16 %v707_v23, %v695_v11  ;;  %v9793_v3 = vld [vmem:[%s13438_s1 + $0x4c8] sm:$0xff]  }
  0x8f   : > { %8746 = vmatpush3.bf16.msra.mxu1 %v9787_v9  ;;  %v1425_v9 = vpack.c.bf16 %v683_v33, %v669_v7  ;;  %v666_v12 = vsel %vm657_vm0, %v664_v44, %v13536_v10  ;;  %v1422_v32 = vpack.c.bf16 %v10507_v14, %v660_v30  ;;  %8765 = vmatprep.subr.bf16.mxu0 %v9788_v63  ;;  %v9790_v33 = vld [vmem:[%s13438_s1 + $0x400] sm:$0xff]   ;;  %v9792_v14 = vld [vmem:[%s13438_s1 + $0x448] sm:$0xff]   ;;  %v13538_v7 = vrot.slane %v10543_v26, 1  ;;  %v9797_v30 = vld [vmem:[%s13438_s1 + $0x4d0] sm:$0xff]  }
  0x90   : > { %v1424_v5 = vpack.c.bf16 %v10517_v16, %v666_v12  ;;  %5007 = vmatprep.mubr.bf16.mxu0 %v1423_v1  ;;  %v1471_v44 = vpack.c.bf16 %v703_v43, %v691_v48  ;;  %v13537_v16 = vrot.slane %v10474_v2, 1  ;;  %8799 = vmatprep.subr.bf16.mxu1 %v9789_v54  ;;  %v13539_v48 = vrot.slane %v10489_v8, 1  ;;  %v9794_v11 = vld [vmem:[%s13438_s1 + $0x408] sm:$0xff]   ;;  %v9798_v12 = vld [vmem:[%s13438_s1 + $0x410] sm:$0xff]  }
  0x91   : > { %5064 = vmatprep.mubr.bf16.mxu1 %v1425_v9  ;;  %5008 = vmatmul.mubr.bf16.vlgmr.msra.gmra.mrb[36].mxu0 %v1422_v32  ;;  %v701_v43 = vsel %vm657_vm0, %v688_v59, %v13538_v7  ;;  %v705_v18 = vsel %vm657_vm0, %v692_v62, %v704_v45  ;;  %v9795_v23 = vld [vmem:[%s13438_s1 + $0x488] sm:$0xff]   ;;  %v9796_v9 = vld [vmem:[%s13438_s1 + $0x450] sm:$0xff]   ;;  %v13484_v46 = vrot.slane %v10592_v55, 2  ;;  %v1045_v10 = vrot.slane %v10631_v25, 2 }
  0x92   : > { %5065 = vmatmul.mubr.bf16.vlgmr.msra.gmra.mrb[36].mxu1 %v1424_v5  ;;  %v689_v60 = vsel %vm657_vm0, %v13537_v16, %v688_v59  ;;  %8766 = vmatpush3.bf16.msra.mxu0 %v9790_v33  ;;  %v693_v63 = vsel %vm657_vm0, %v13539_v48, %v692_v62  ;;  %v13485_v59 = vrot.slane %v10585_v49, 2  ;;  %v1043_v54 = vrot.slane %v10648_v36, 2  ;;  %v9799_v32 = vld [vmem:[%s13438_s1 + $0x490] sm:$0xff]   ;;  %v9800_v5 = vld [vmem:[%s13438_s1 + $0x458] sm:$0xff]  }
  0x93   : > { %8800 = vmatpush3.bf16.msra.mxu1 %v9791_v13  ;;  %8767 = vmatprep.subr.bf16.mxu0 %v9792_v14  ;;  %v1470_v1 = vpack.c.bf16 %v701_v43, %v689_v60  ;;  %v1472_v62 = vpack.c.bf16 %v705_v18, %v693_v63  ;;  %v9801_v33 = vld [vmem:[%s13438_s1 + $0x4d8] sm:$0xff]   ;;  %v525_v60 = vld [vmem:[%s10393_s30 + $0xf0] sm:$0x7f]  ;;  %v9804_v43 = vld [vmem:[%s13438_s1 + $0x460] sm:$0xff]   ;;  %v1057_v48 = vrot.slane %v10634_v27, 2  ;;  %v13540_v63 = vrot.slane %v10532_v21, 1 }
  0x94   : > { %8801 = vmatprep.subr.bf16.mxu1 %v9793_v3  ;;  %5015 = vmatprep.mubr.bf16.mxu0 %v1471_v44  ;;  %v9802_v13 = vld [vmem:[%s13438_s1 + $0x418] sm:$0xff]   ;;  %v11137_v44 = vsel %vm910_vm1, %v13485_v59, %v1045_v10  ;;  %v712_v7 = vrot.slane %v525_v60, 1  ;;  %v9806_v27 = vld [vmem:[%s13438_s1 + $0x420] sm:$0xff]   ;;  %v13483_v21 = vrot.slane %v10696_v0, 2  ;;  %v13544_v59 = vrot.slane %v10592_v55, 1 }
  0x95   : > { %5072 = vmatprep.mubr.bf16.mxu1 %v1473_v4  ;;  %v9803_v14 = vld [vmem:[%s13438_s1 + $0x498] sm:$0xff]   ;;  %v11149_v4 = vsel %vm910_vm1, %v13484_v46, %v1043_v54 }
  0x96   : > { %8768 = vmatpush3.bf16.msra.mxu0 %v9794_v11  ;;  %v526_v16 = vld [vmem:[%s10393_s30 + $0xf8] sm:$0x7f]  ;;  %v13541_v11 = vrot.slane %v10543_v26, 1  ;;  %v9807_v26 = vld [vmem:[%s13438_s1 + $0x4a0] sm:$0xff]  }
  0x97   : > { %8802 = vmatpush3.bf16.msra.mxu1 %v9795_v23  ;;  %8769 = vmatprep.subr.bf16.mxu0 %v9796_v9  ;;  %v714_v3 = vrot.slane %v526_v16, 1  ;;  %v528_v9 = vld [vmem:[%s10393_s30 + $0x108] sm:$0x7f]  ;;  %v1055_v16 = vrot.slane %v10659_v40, 2 }
  0x98   : > { %8803 = vmatprep.subr.bf16.mxu1 %v9797_v30  ;;  %v713_v23 = vsel %vm657_vm0, %v13541_v11, %v712_v7  ;;  %v11200_v11 = vsel %vm910_vm1, %v1045_v10, %v1057_v48  ;;  %v9814_v10 = vld [vmem:[%s13438_s1 + $0x430] sm:$0xff]  }
  0x99   : > { %5016 = vmatmul.mubr.bf16.gmra.mrb[40].mxu0 %v1470_v1  ;;  %v715_v18 = vsel %vm657_vm0, %v13540_v63, %v714_v3  ;;  %v9805_v1 = vld [vmem:[%s13438_s1 + $0x4e0] sm:$0xff]   ;;  %v1518_v30 = vpack.c.bf16 %v712_v7, %v713_v23  ;;  %v9811_v63 = vld [vmem:[%s13438_s1 + $0x4a8] sm:$0xff]   ;;  %v11205_v23 = vsel %vm910_vm1, %v1057_v48, %v13483_v21  ;;  %v11216_v25 = vsel %vm910_vm1, %v1043_v54, %v1055_v16  ;;  %v9815_v54 = vld [vmem:[%s13438_s1 + $0x4b0] sm:$0xff]  }
  0x9a   : > { %5073 = vmatmul.mubr.bf16.gmra.mrb[40].mxu1 %v1472_v62  ;;  %8770 = vmatpush3.bf16.msra.mxu0 %v9798_v12  ;;  %v1519_v62 = vpack.c.bf16 %v714_v3, %v715_v18  ;;  %v718_v12 = vrot.slane %v528_v9, 1  ;;  %v9809_v3 = vld [vmem:[%s13438_s1 + $0x4e8] sm:$0xff]   ;;  %v10150_v18 = vld [vmem:[%s10393_s30 + $0x58] sm:$0xff]  ;;  %v10151_v9 = vld [vmem:[%s10393_s30 + $0x50] sm:$0xff] }
  0x9b   : > { %8804 = vmatpush3.bf16.msra.mxu1 %v9799_v32  ;;  %8771 = vmatprep.subr.bf16.mxu0 %v9800_v5  ;;  %v527_v32 = vld [vmem:[%s10393_s30 + $0x100] sm:$0x7f]  ;;  %v13542_v5 = vrot.slane %v10547_v28, 1  ;;  %v13482_v28 = vrot.slane %v10708_v17, 2  ;;  %v10152_v48 = vld [vmem:[%s10393_s30 + $0x88] sm:$0xff] }
  0x9c   : > { %8805 = vmatprep.subr.bf16.mxu1 %v9801_v33  ;;  %5023 = vmatprep.mubr.bf16.mxu0 %v1519_v62  ;;  %v671_v62 = vrot.slane %v10151_v9, 1  ;;  %v532_v9 = vld [vmem:[%s10393_s30 + $0x158] sm:$0xfe] }
  0x9d   : > { %v719_v33 = vsel %vm657_vm0, %v13542_v5, %v718_v12  ;;  %v9816_v5 = vld [vmem:[%s13438_s1 + $0x478] sm:$0xff]  }
  0x9e   : > { %8772 = vmatpush3.bf16.msra.mxu0 %v9802_v13  ;;  %v716_v13 = vrot.slane %v527_v32, 1  ;;  %v1521_v60 = vpack.c.bf16 %v718_v12, %v719_v33  ;;  %v686_v12 = vrot.slane %v10152_v48, 1  ;;  %v10154_v33 = vld [vmem:[%s10393_s30 + $0xb8] sm:$0xff] }
  0x9f   : > { %8806 = vmatpush3.bf16.msra.mxu1 %v9803_v14  ;;  %8773 = vmatprep.subr.bf16.mxu0 %v9804_v43  ;;  %v9808_v14 = vld [vmem:[%s13438_s1 + $0x468] sm:$0xff]  }
  0xa0   : > { %8807 = vmatprep.subr.bf16.mxu1 %v9805_v1  ;;  %v717_v7 = vsel %vm657_vm0, %v704_v45, %v716_v13  ;;  %v9810_v43 = vld [vmem:[%s13438_s1 + $0x428] sm:$0xff]   ;;  %5080 = vmatprep.mubr.bf16.mxu1 %v1521_v60  ;;  %v674_v45 = vrot.slane %v10150_v18, 1  ;;  %v9813_v1 = vld [vmem:[%s13438_s1 + $0x4f0] sm:$0xff]  }
  0xa1   : > { %5024 = vmatmul.mubr.bf16.gmra.mrb[44].mxu0 %v1518_v30  ;;  %v1520_v40 = vpack.c.bf16 %v716_v13, %v717_v7  ;;  %v698_v13 = vrot.slane %v10154_v33, 1  ;;  %v11248_v7 = vld [vmem:[%s10393_s30 + $0xe8] sm:$0xff] }
  0xa2   : > { %8774 = vmatpush3.bf16.msra.mxu0 %v9806_v27  ;;  %v11225_v27 = vsel %vm910_vm1, %v1055_v16, %v13482_v28  ;;  %v10155_v16 = vld [vmem:[%s10393_s30 + $0xb0] sm:$0xff]  ;;  %v524_v18 = vld [vmem:[%s10393_s30 + $0x28] sm:$0xfe] }
  0xa3   : > { %8808 = vmatpush3.bf16.msra.mxu1 %v9807_v26  ;;  %8775 = vmatprep.subr.bf16.mxu0 %v9808_v14  ;;  %v11228_v26 = vld [vmem:[%s10393_s30 + $0x80] sm:$0xff]  ;;  %v9817_v14 = vld [vmem:[%s13438_s1 + $0x4f8] sm:$0xff]   ;;  %v696_v60 = vrot.slane %v10155_v16, 1  ;;  %v673_v48 = vrot.slane %v524_v18, 1  ;;  %v699_v21 = vsel %vm657_vm0, %v686_v12, %v698_v13 }
  0xa4   : > { %8809 = vmatprep.subr.bf16.mxu1 %v9809_v3  ;;  %5081 = vmatmul.mubr.bf16.gmra.mrb[44].mxu1 %v1520_v40  ;;  %v684_v36 = vrot.slane %v11228_v26, 1  ;;  %v9818_v3 = vld [vmem:[%s13438_s1 + $0x438] sm:$0xff]   ;;  %v9820_v16 = vld [vmem:[%s13438_s1 + $0x540] sm:$0xff]   ;;  %v9828_v26 = vld [vmem:[%s13438_s1 + $0x550] sm:$0xff]  }
  0xa5   : > { %v9819_v40 = vld [vmem:[%s13438_s1 + $0x4b8] sm:$0xff]   ;;  %v675_v18 = vsel %vm657_vm0, %v673_v48, %v674_v45 }
  0xa6   : > { %8776 = vmatpush3.bf16.msra.mxu0 %v9810_v43  ;;  %v710_v43 = vrot.slane %v11248_v7, 1  ;;  %v685_v33 = vsel %vm657_vm0, %v671_v62, %v684_v36  ;;  %v9839_v7 = vld [vmem:[%s13438_s1 + $0x5a0] sm:$0xff]  }
  0xa7   : > { %8810 = vmatpush3.bf16.msra.mxu1 %v9811_v63  ;;  %8777 = vmatprep.subr.bf16.mxu0 %v9812_v31  ;;  %v11255_v63 = vld [vmem:[%s10393_s30 + $0xe0] sm:$0xff] }
  0xa8   : > { %8811 = vmatprep.subr.bf16.mxu1 %v9813_v1  ;;  %v708_v31 = vrot.slane %v11255_v63, 1  ;;  %v687_v1 = vsel %vm657_vm0, %v674_v45, %v686_v12  ;;  %v9822_v45 = vld [vmem:[%s13438_s1 + $0x500] sm:$0xff]   ;;  %v13547_v63 = vrot.slane %v10696_v0, 1 }
  0xaa   : > { %8778 = vmatpush3.bf16.msra.mxu0 %v9814_v10  ;;  %v523_v10 = vld [vmem:[%s10393_s30 + $0x20] sm:$0xfe] }
  0xab   : > { %8812 = vmatpush3.bf16.msra.mxu1 %v9815_v54  ;;  %8779 = vmatprep.subr.bf16.mxu0 %v9816_v5  ;;  %v799_v54 = vrot.slane %v532_v9, 1  ;;  %v670_v5 = vrot.slane %v523_v10, 1  ;;  %v13543_v9 = vrot.slane %v10585_v49, 1 }
  0xac   : > { %8813 = vmatprep.subr.bf16.mxu1 %v9817_v14  ;;  %v531_v14 = vld [vmem:[%s10393_s30 + $0x150] sm:$0xfe] }
  0xad   : > { %v796_v28 = vrot.slane %v531_v14, 1  ;;  %v801_v10 = vsel %vm657_vm0, %v799_v54, %v13543_v9  ;;  %v672_v32 = vsel %vm657_vm0, %v670_v5, %v671_v62  ;;  %v1427_v14 = vpack.c.bf16 %v687_v1, %v675_v18  ;;  %v9827_v5 = vld [vmem:[%s13438_s1 + $0x588] sm:$0xff]   ;;  %v9830_v9 = vld [vmem:[%s13438_s1 + $0x510] sm:$0xff]  }
  0xae   : > { %8780 = vmatpush3.bf16.msra.mxu0 %v9818_v3  ;;  %v9821_v3 = vld [vmem:[%s13438_s1 + $0x5c0] sm:$0xff]   ;;  %v1429_v30 = vpack.c.bf16 %v10653_v37, %v801_v10  ;;  %v1426_v46 = vpack.c.bf16 %v685_v33, %v672_v32  ;;  %v13493_v62 = vrot.slane %v10765_v56, 2  ;;  %v13492_v37 = vrot.slane %v10769_v58, 2 }
  0xaf   : > { %8814 = vmatpush3.bf16.msra.mxu1 %v9819_v40  ;;  %8833 = vmatprep.subr.bf16.mxu0 %v9820_v16  ;;  %v711_v40 = vsel %vm657_vm0, %v698_v13, %v710_v43  ;;  %v798_v12 = vsel %vm657_vm0, %v796_v28, %v13544_v59  ;;  %v9823_v13 = vld [vmem:[%s13438_s1 + $0x580] sm:$0xff]   ;;  %v9824_v59 = vld [vmem:[%s13438_s1 + $0x548] sm:$0xff]   ;;  %v13491_v32 = vrot.slane %v10774_v6, 2  ;;  %v13490_v1 = vrot.slane %v10779_v15, 2 }
  0xb0   : > { %8867 = vmatprep.subr.bf16.mxu1 %v9821_v3  ;;  %v1428_v48 = vpack.c.bf16 %v10674_v47, %v798_v12  ;;  %5121 = vmatprep.mubr.bf16.mxu0 %v1427_v14  ;;  %v1475_v28 = vpack.c.bf16 %v711_v40, %v699_v21  ;;  %v9825_v47 = vld [vmem:[%s13438_s1 + $0x5c8] sm:$0xff]   ;;  %v697_v21 = vsel %vm657_vm0, %v684_v36, %v696_v60  ;;  %v1049_v54 = vrot.slane %v10810_v52, 2  ;;  %v9829_v3 = vld [vmem:[%s13438_s1 + $0x5d0] sm:$0xff]   ;;  %v9832_v40 = vld [vmem:[%s13438_s1 + $0x558] sm:$0xff]  }
  0xb1   : > { %5178 = vmatprep.mubr.bf16.mxu1 %v1429_v30  ;;  %5122 = vmatmul.mubr.bf16.vlgmr.msra.gmra.mrb[48].mxu0 %v1426_v46  ;;  %v9826_v30 = vld [vmem:[%s13438_s1 + $0x508] sm:$0xff]   ;;  %v709_v46 = vsel %vm657_vm0, %v696_v60, %v708_v31  ;;  %v1061_v33 = vrot.slane %v10813_v53, 2  ;;  %v13545_v36 = vpack.c.bf16 %v10715_v22, %v10656_v38  ;;  %v1047_v60 = vrot.slane %v10817_v57, 2  ;;  %v9831_v38 = vld [vmem:[%s13438_s1 + $0x590] sm:$0xff]  }
  0xb2   : > { %5179 = vmatmul.mubr.bf16.vlgmr.msra.gmra.mrb[48].mxu1 %v1428_v48  ;;  %8834 = vmatpush3.bf16.msra.mxu0 %v9822_v45  ;;  %v1474_v16 = vpack.c.bf16 %v709_v46, %v697_v21  ;;  %v1059_v18 = vrot.slane %v10820_v61, 2  ;;  %v1053_v10 = vrot.slane %v10837_v41, 2  ;;  %v1065_v22 = vrot.slane %v10853_v51, 2  ;;  %v9833_v45 = vld [vmem:[%s13438_s1 + $0x5d8] sm:$0xff]   ;;  %v9836_v21 = vld [vmem:[%s13438_s1 + $0x560] sm:$0xff]  }
  0xb3   : > { %8868 = vmatpush3.bf16.msra.mxu1 %v9823_v13  ;;  %8835 = vmatprep.subr.bf16.mxu0 %v9824_v59  ;;  %v1051_v14 = vrot.slane %v10872_v20, 2  ;;  %v13546_v12 = vpack.c.bf16 %v10729_v34, %v10680_v50  ;;  %v1063_v48 = vrot.slane %v10881_v35, 2  ;;  %v9834_v13 = vld [vmem:[%s13438_s1 + $0x518] sm:$0xff]   ;;  %v13489_v59 = vrot.slane %v10914_v24, 2  ;;  %v11587_v20 = vld [vmem:[%s10393_s30 + $0x68] sm:$0xff] }
  0xb4   : > { %8869 = vmatprep.subr.bf16.mxu1 %v9825_v47  ;;  %5129 = vmatprep.mubr.bf16.mxu0 %v1475_v28  ;;  %v9835_v50 = vld [vmem:[%s13438_s1 + $0x598] sm:$0xff]   ;;  %v11359_v28 = vsel %vm910_vm1, %v13493_v62, %v1049_v54  ;;  %v11370_v46 = vsel %vm910_vm1, %v13492_v37, %v1053_v10  ;;  %v11448_v52 = vsel %vm910_vm1, %v1047_v60, %v1059_v18  ;;  %v542_v41 = vld [vmem:[%s10393_s30 + $0x268] sm:$0x7f] }
  0xb5   : > { %5186 = vmatprep.mubr.bf16.mxu1 %v13545_v36  ;;  %v530_v34 = vld [vmem:[%s10393_s30 + $0x118] sm:$0x7f]  ;;  %v11380_v36 = vsel %vm910_vm1, %v13491_v32, %v1047_v60  ;;  %v11467_v57 = vsel %vm910_vm1, %v1053_v10, %v1065_v22  ;;  %v9846_v60 = vld [vmem:[%s13438_s1 + $0x530] sm:$0xff]   ;;  %v11486_v51 = vsel %vm910_vm1, %v1051_v14, %v1063_v48  ;;  %v13576_v32 = vld [vmem:[#allocation12_spill] sm:$0xff] }
  0xb6   : > { %8836 = vmatpush3.bf16.msra.mxu0 %v9826_v30  ;;  %v722_v47 = vrot.slane %v530_v34, 1  ;;  %v529_v30 = vld [vmem:[%s10393_s30 + $0x110] sm:$0x7f]  ;;  %13550 = vst [vmem:[#allocation25_spill] sm:$0xff] %v11486_v51  ;;  %v9849_v35 = vld [vmem:[%s13438_s1 + $0x5f8] sm:$0xff]  }
  0xb7   : > { %8870 = vmatpush3.bf16.msra.mxu1 %v9827_v5  ;;  %8837 = vmatprep.subr.bf16.mxu0 %v9828_v26  ;;  %v720_v5 = vrot.slane %v529_v30, 1  ;;  %v9837_v26 = vld [vmem:[%s13438_s1 + $0x5e0] sm:$0xff]   ;;  %v13487_v30 = vrot.slane %v10951_v29, 2  ;;  %v9847_v10 = vld [vmem:[%s13438_s1 + $0x5b0] sm:$0xff]   ;;  %v9865_v62 = vld [vmem:[%s13438_s1 + $0x6d8] sm:$0xff]  }
  0xb8   : > { %8871 = vmatprep.subr.bf16.mxu1 %v9829_v3  ;;  %v723_v3 = vsel %vm657_vm0, %v710_v43, %v722_v47  ;;  %v537_v43 = vld [vmem:[%s10393_s30 + $0x240] sm:$0x7f] }
  0xb9   : > { %5130 = vmatmul.mubr.bf16.gmra.mrb[52].mxu0 %v1474_v16  ;;  %v11387_v16 = vsel %vm910_vm1, %v13490_v1, %v1051_v14  ;;  %v850_v34 = vrot.slane %v537_v43, 1  ;;  %v11474_v61 = vsel %vm910_vm1, %v1065_v22, %v13487_v30  ;;  %v9848_v22 = vld [vmem:[%s13438_s1 + $0x578] sm:$0xff]   ;;  %v9860_v30 = vld [vmem:[%s13438_s1 + $0x650] sm:$0xff]  }
  0xba   : > { %5187 = vmatmul.mubr.bf16.gmra.mrb[52].mxu1 %v13546_v12  ;;  %8838 = vmatpush3.bf16.msra.mxu0 %v9830_v9  ;;  %v538_v9 = vld [vmem:[%s10393_s30 + $0x248] sm:$0x7f]  ;;  %v9850_v14 = vld [vmem:[%s13438_s1 + $0x538] sm:$0xff]  }
  0xbb   : > { %8872 = vmatpush3.bf16.msra.mxu1 %v9831_v38  ;;  %8839 = vmatprep.subr.bf16.mxu0 %v9832_v40  ;;  %v1523_v38 = vpack.c.bf16 %v722_v47, %v723_v3  ;;  %v721_v40 = vsel %vm657_vm0, %v708_v31, %v720_v5  ;;  %v852_v12 = vrot.slane %v538_v9, 1  ;;  %v9840_v47 = vld [vmem:[%s13438_s1 + $0x568] sm:$0xff]   ;;  %v13549_v9 = vrot.slane %v10708_v17, 1  ;;  %v13575_v1 = vld [vmem:[#allocation23_spill] sm:$0xff] }
  0xbc   : > { %8873 = vmatprep.subr.bf16.mxu1 %v9833_v45  ;;  %v9838_v45 = vld [vmem:[%s13438_s1 + $0x520] sm:$0xff]   ;;  %v13577_v37 = vpack.c.bf16 %v13575_v1, %v13576_v32  ;;  %v540_v1 = vld [vmem:[%s10393_s30 + $0x258] sm:$0x7f] }
  0xbd   : > { %5137 = vmatprep.mubr.bf16.mxu0 %v1523_v38  ;;  %v853_v31 = vsel %vm657_vm0, %v13547_v63, %v852_v12  ;;  %v851_v38 = vsel %vm657_vm0, %v13549_v9, %v850_v34  ;;  %v13573_v63 = vld [vmem:[#allocation8_spill] sm:$0xff] }
  0xbe   : > { %8840 = vmatpush3.bf16.msra.mxu0 %v9834_v13  ;;  %v13488_v13 = vrot.slane %v10919_v19, 2  ;;  %v1524_v43 = vpack.c.bf16 %v850_v34, %v851_v38  ;;  %v536_v34 = vld [vmem:[%s10393_s30 + $0x178] sm:$0xfe]  ;;  %v535_v38 = vld [vmem:[%s10393_s30 + $0x170] sm:$0xfe]  ;;  %v9869_v32 = vld [vmem:[%s13438_s1 + $0x6e0] sm:$0xff]  }
  0xbf   : > { %8874 = vmatpush3.bf16.msra.mxu1 %v9835_v50  ;;  %8841 = vmatprep.subr.bf16.mxu0 %v9836_v21  ;;  %v1522_v50 = vpack.c.bf16 %v720_v5, %v721_v40  ;;  %v1525_v21 = vpack.c.bf16 %v852_v12, %v853_v31  ;;  %v9841_v5 = vld [vmem:[%s13438_s1 + $0x5e8] sm:$0xff]  }
  0xc0   : > { %8875 = vmatprep.subr.bf16.mxu1 %v9837_v26  ;;  %v13548_v26 = vld [vmem:[#allocation20_spill] sm:$0xff]  ;;  %v11455_v53 = vsel %vm910_vm1, %v1059_v18, %v13488_v13  ;;  %v534_v31 = vld [vmem:[%s10393_s30 + $0x168] sm:$0xfe] }
  0xc1   : > { %5138 = vmatmul.mubr.bf16.gmra.mrb[56].mxu0 %v1522_v50  ;;  %v13486_v3 = vrot.slane %v13548_v26, 2  ;;  %v9842_v40 = vld [vmem:[%s13438_s1 + $0x528] sm:$0xff]   ;;  %5194 = vmatprep.mubr.bf16.mxu1 %v1525_v21  ;;  %v11436_v50 = vsel %vm910_vm1, %v1061_v33, %v13489_v59  ;;  %v805_v21 = vrot.slane %v534_v31, 1  ;;  %v9861_v59 = vld [vmem:[%s13438_s1 + $0x6d0] sm:$0xff]  }
  0xc2   : > { %8842 = vmatpush3.bf16.msra.mxu0 %v9838_v45  ;;  %v9843_v12 = vld [vmem:[%s13438_s1 + $0x5a8] sm:$0xff]   ;;  %v11429_v45 = vsel %vm910_vm1, %v1049_v54, %v1061_v33  ;;  %5195 = vmatmul.mubr.bf16.gmra.mrb[56].mxu1 %v1524_v43  ;;  %v9845_v54 = vld [vmem:[%s13438_s1 + $0x5f0] sm:$0xff]   ;;  %v808_v43 = vrot.slane %v535_v38, 1 }
  0xc3   : > { %8876 = vmatpush3.bf16.msra.mxu1 %v9839_v7  ;;  %8843 = vmatprep.subr.bf16.mxu0 %v9840_v47  ;;  %v9844_v7 = vld [vmem:[%s13438_s1 + $0x570] sm:$0xff]   ;;  %v11493_v18 = vsel %vm910_vm1, %v1063_v48, %v13486_v3  ;;  %v9851_v48 = vld [vmem:[%s13438_s1 + $0x5b8] sm:$0xff]   ;;  %v533_v47 = vld [vmem:[%s10393_s30 + $0x160] sm:$0xfe]  ;;  %v13558_v3 = vrot.slane %v10779_v15, 1 }
  0xc4   : > { %8877 = vmatprep.subr.bf16.mxu1 %v9841_v5  ;;  %13551 = vst [vmem:[#allocation26_spill] sm:$0xff] %v11493_v18  ;;  %v811_v5 = vrot.slane %v536_v34, 1  ;;  %v802_v9 = vrot.slane %v533_v47, 1  ;;  %v13556_v31 = vld [vmem:[#allocation9_spill] sm:$0xff]  ;;  %v13557_v47 = vld [vmem:[#allocation6_spill] sm:$0xff] }
  0xc5   : > { %v13569_v13 = vld [vmem:[#allocation21_spill] sm:$0xff] }
  0xc6   : > { %8844 = vmatpush3.bf16.msra.mxu0 %v9842_v40  ;;  %v9852_v40 = vld [vmem:[%s13438_s1 + $0x640] sm:$0xff]  }
  0xc7   : > { %8878 = vmatpush3.bf16.msra.mxu1 %v9843_v12  ;;  %8845 = vmatprep.subr.bf16.mxu0 %v9844_v7  ;;  %v9853_v12 = vld [vmem:[%s13438_s1 + $0x6c0] sm:$0xff]   ;;  %v13552_v7 = vrot.slane %v10765_v56, 1 }
  0xc8   : > { %8879 = vmatprep.subr.bf16.mxu1 %v9845_v54 }
  0xc9   : > { %v807_v54 = vsel %vm657_vm0, %v805_v21, %v13552_v7  ;;  %v810_v21 = vsel %vm657_vm0, %v808_v43, %v13558_v3  ;;  %v13559_v7 = vld [vmem:[#allocation22_spill] sm:$0xff]  ;;  %v9856_v3 = vld [vmem:[%s13438_s1 + $0x648] sm:$0xff]  }
  0xca   : > { %8846 = vmatpush3.bf16.msra.mxu0 %v9846_v60  ;;  %v13553_v60 = vrot.slane %v10769_v58, 1  ;;  %v11550_v43 = vld [vmem:[%s10393_s30 + $0x30] sm:$0xff] }
  0xcb   : > { %8880 = vmatpush3.bf16.msra.mxu1 %v9847_v10  ;;  %8847 = vmatprep.subr.bf16.mxu0 %v9848_v22  ;;  %v13554_v22 = vrot.slane %v10774_v6, 1 }
  0xcc   : > { %8881 = vmatprep.subr.bf16.mxu1 %v9849_v35  ;;  %v813_v10 = vsel %vm657_vm0, %v811_v5, %v13553_v60  ;;  %v9854_v5 = vld [vmem:[%s13438_s1 + $0x600] sm:$0xff]   ;;  %v13581_v60 = vrot.slane %v10919_v19, 1 }
  0xcd   : > { %v804_v35 = vsel %vm657_vm0, %v802_v9, %v13554_v22  ;;  %v1433_v34 = vpack.c.bf16 %v13556_v31, %v813_v10  ;;  %v13560_v9 = vld [vmem:[#allocation11_spill] sm:$0xff]  ;;  %v13561_v10 = vld [vmem:[#allocation24_spill] sm:$0xff] }
  0xce   : > { %8848 = vmatpush3.bf16.msra.mxu0 %v9850_v14  ;;  %v13555_v14 = vld [vmem:[#allocation5_spill] sm:$0xff]  ;;  %v1430_v38 = vpack.c.bf16 %v13557_v47, %v804_v35  ;;  %v13593_v51 = vrot.slane %v13561_v10, 2 }
  0xcf   : > { %8882 = vmatpush3.bf16.msra.mxu1 %v9851_v48  ;;  %8901 = vmatprep.subr.bf16.mxu0 %v9852_v40  ;;  %v1431_v48 = vpack.c.bf16 %v13555_v14, %v807_v54  ;;  %v1432_v40 = vpack.c.bf16 %v13560_v9, %v810_v21  ;;  %v9855_v54 = vld [vmem:[%s13438_s1 + $0x680] sm:$0xff]   ;;  %13562 = vst [vmem:[#allocation5_spill] sm:$0xff] %v11550_v43  ;;  %v9857_v35 = vld [vmem:[%s13438_s1 + $0x6c8] sm:$0xff]   ;;  %v11571_v21 = vld [vmem:[%s10393_s30 + $0x70] sm:$0xff] }
  0xd0   : > { %8935 = vmatprep.subr.bf16.mxu1 %v9853_v12  ;;  %5292 = vmatprep.mubr.bf16.mxu1 %v1433_v34  ;;  %v13495_v12 = vrot.slane %v11550_v43, 3  ;;  %v11557_v14 = vld [vmem:[%s10393_s30 + $0x40] sm:$0xff]  ;;  %v9858_v31 = vld [vmem:[%s13438_s1 + $0x608] sm:$0xff]   ;;  %13565 = vst [vmem:[#allocation22_spill] sm:$0xff] %v11571_v21 }
  0xd1   : > { %5235 = vmatprep.mubr.bf16.mxu0 %v1431_v48  ;;  %13563 = vst [vmem:[#allocation9_spill] sm:$0xff] %v11557_v14  ;;  %v13497_v48 = vrot.slane %v11557_v14, 3  ;;  %v11564_v34 = vld [vmem:[%s10393_s30 + $0x60] sm:$0xff] }
  0xd2   : > { %5236 = vmatmul.mubr.bf16.vlgmr.msra.gmra.mrb[60].mxu0 %v1430_v38  ;;  %5293 = vmatmul.mubr.bf16.vlgmr.msra.gmra.mrb[60].mxu1 %v1432_v40  ;;  %13564 = vst [vmem:[#allocation6_spill] sm:$0xff] %v11564_v34  ;;  %v13494_v47 = vrot.slane %v11564_v34, 3  ;;  %v9859_v38 = vld [vmem:[%s13438_s1 + $0x688] sm:$0xff]   ;;  %v13566_v9 = vld [vmem:[#allocation15_spill] sm:$0xff]  ;;  %v543_v14 = vld [vmem:[%s10393_s30] sm:$0xfc] }
  0xd3   : > { %8902 = vmatpush3.bf16.msra.mxu0 %v9854_v5  ;;  %8936 = vmatpush3.bf16.msra.mxu1 %v9855_v54  ;;  %v13496_v5 = vrot.slane %v11571_v21, 3  ;;  %v13567_v40 = vld [vmem:[#allocation7_spill] sm:$0xff] }
  0xd4   : > { %8903 = vmatprep.subr.bf16.mxu0 %v9856_v3  ;;  %8937 = vmatprep.subr.bf16.mxu1 %v9857_v35  ;;  %v13568_v54 = vpack.c.bf16 %v13566_v9, %v13567_v40  ;;  %v13570_v3 = vld [vmem:[#allocation10_spill] sm:$0xff]  ;;  %v9884_v21 = vld [vmem:[%s13438_s1 + $0x740] sm:$0xff]  }
  0xd5   : > { %v13571_v35 = vpack.c.bf16 %v13569_v13, %v13570_v3  ;;  %v9862_v9 = vld [vmem:[%s13438_s1 + $0x610] sm:$0xff]   ;;  %v11594_v40 = vld [vmem:[%s10393_s30 + $0x78] sm:$0xff] }
  0xd6   : > { %5243 = vmatprep.mubr.bf16.mxu0 %v13568_v54  ;;  %v9863_v54 = vld [vmem:[%s13438_s1 + $0x690] sm:$0xff]   ;;  %v11601_v3 = vld [vmem:[%s10393_s30 + $0x98] sm:$0xff] }
  0xd7   : > { %5300 = vmatprep.mubr.bf16.mxu1 %v13571_v35  ;;  %8904 = vmatpush3.bf16.msra.mxu0 %v9858_v31  ;;  %v11608_v35 = vld [vmem:[%s10393_s30 + $0xc8] sm:$0xff]  ;;  %v11621_v31 = vld [vmem:[%s10393_s30 + $0x90] sm:$0xff] }
  0xd8   : > { %8938 = vmatpush3.bf16.msra.mxu1 %v9859_v38  ;;  %8905 = vmatprep.subr.bf16.mxu0 %v9860_v30  ;;  %v9864_v38 = vld [vmem:[%s13438_s1 + $0x658] sm:$0xff]  }
  0xd9   : > { %8939 = vmatprep.subr.bf16.mxu1 %v9861_v59  ;;  %v13572_v30 = vld [vmem:[#allocation19_spill] sm:$0xff] }
  0xda   : > { %v13574_v59 = vpack.c.bf16 %v13572_v30, %v13573_v63  ;;  %5301 = vmatmul.mubr.bf16.gmra.mrb[64].mxu1 %v13577_v37  ;;  %v9866_v63 = vld [vmem:[%s13438_s1 + $0x618] sm:$0xff]   ;;  %v11628_v30 = vld [vmem:[%s10393_s30 + $0xc0] sm:$0xff] }
  0xdb   : > { %8906 = vmatpush3.bf16.msra.mxu0 %v9862_v9  ;;  %v9867_v37 = vld [vmem:[%s13438_s1 + $0x698] sm:$0xff]   ;;  %v539_v9 = vld [vmem:[%s10393_s30 + $0x250] sm:$0x7f] }
  0xdc   : > { %5244 = vmatmul.mubr.bf16.gmra.mrb[64].mxu0 %v13574_v59  ;;  %8940 = vmatpush3.bf16.msra.mxu1 %v9863_v54  ;;  %v856_v59 = vrot.slane %v540_v1, 1  ;;  %v9868_v54 = vld [vmem:[%s13438_s1 + $0x660] sm:$0xff]   ;;  %v854_v22 = vrot.slane %v539_v9, 1  ;;  %v13580_v1 = vrot.slane %v10914_v24, 1 }
  0xdd   : > { %8907 = vmatprep.subr.bf16.mxu0 %v9864_v38  ;;  %8941 = vmatprep.subr.bf16.mxu1 %v9865_v62  ;;  %v11647_v62 = vsel %vm1139_vm2, %v13495_v12, %v13494_v47  ;;  %v11654_v38 = vsel %vm1139_vm2, %v13497_v48, %v13496_v5  ;;  %v860_v12 = vrot.slane %v542_v41, 1  ;;  %v9870_v5 = vld [vmem:[%s13438_s1 + $0x620] sm:$0xff]   ;;  %v9872_v41 = vld [vmem:[%s13438_s1 + $0x668] sm:$0xff]  }
  0xde   : > { %13578 = vst [vmem:[#allocation11_spill] sm:$0xff] %v11647_v62  ;;  %13579 = vst [vmem:[#allocation24_spill] sm:$0xff] %v11654_v38  ;;  %v857_v9 = vsel %vm657_vm0, %v13580_v1, %v856_v59  ;;  %v855_v47 = vsel %vm657_vm0, %v13581_v60, %v854_v22  ;;  %v546_v38 = vld [vmem:[%s10393_s30 + $0x18] sm:$0xfc]  ;;  %v13587_v62 = vrot.slane %v13561_v10, 2 }
  0xdf   : > { %8908 = vmatpush3.bf16.msra.mxu0 %v9866_v63  ;;  %v1527_v13 = vpack.c.bf16 %v856_v59, %v857_v9  ;;  %v1526_v48 = vpack.c.bf16 %v854_v22, %v855_v47  ;;  %v9871_v63 = vld [vmem:[%s13438_s1 + $0x6a0] sm:$0xff]   ;;  %v13582_v59 = vrot.slane %v10951_v29, 1  ;;  %v9873_v22 = vld [vmem:[%s13438_s1 + $0x6e8] sm:$0xff]   ;;  %v545_v29 = vld [vmem:[%s10393_s30 + $0x10] sm:$0xfc] }
  0xe0   : > { %8942 = vmatpush3.bf16.msra.mxu1 %v9867_v37  ;;  %8909 = vmatprep.subr.bf16.mxu0 %v9868_v54  ;;  %v541_v37 = vld [vmem:[%s10393_s30 + $0x260] sm:$0x7f]  ;;  %v917_v19 = vrot.slane %v545_v29, 2 }
  0xe1   : > { %8943 = vmatprep.subr.bf16.mxu1 %v9869_v32  ;;  %5251 = vmatprep.mubr.bf16.mxu0 %v1527_v13  ;;  %v861_v9 = vsel %vm657_vm0, %v13582_v59, %v860_v12  ;;  %v858_v60 = vrot.slane %v541_v37, 1  ;;  %v13583_v13 = vrot.slane %v13548_v26, 1  ;;  %v9874_v37 = vld [vmem:[%s13438_s1 + $0x628] sm:$0xff]   ;;  %v911_v26 = vrot.slane %v543_v14, 2 }
  0xe2   : > { %v1529_v32 = vpack.c.bf16 %v860_v12, %v861_v9  ;;  %v9875_v12 = vld [vmem:[%s13438_s1 + $0x6a8] sm:$0xff]   ;;  %v13589_v14 = vrot.slane %v11608_v35, 2 }
  0xe3   : > { %8910 = vmatpush3.bf16.msra.mxu0 %v9870_v5  ;;  %v859_v54 = vsel %vm657_vm0, %v13583_v13, %v858_v60  ;;  %v9876_v5 = vld [vmem:[%s13438_s1 + $0x670] sm:$0xff]  }
  0xe4   : > { %5252 = vmatmul.mubr.bf16.gmra.mrb[68].mxu0 %v1526_v48  ;;  %8944 = vmatpush3.bf16.msra.mxu1 %v9871_v63  ;;  %v1528_v33 = vpack.c.bf16 %v858_v60, %v859_v54  ;;  %v9877_v60 = vld [vmem:[%s13438_s1 + $0x6f0] sm:$0xff]   ;;  %v9880_v54 = vld [vmem:[%s13438_s1 + $0x678] sm:$0xff]  }
  0xe5   : > { %5308 = vmatprep.mubr.bf16.mxu1 %v1529_v32  ;;  %8911 = vmatprep.subr.bf16.mxu0 %v9872_v41 }
  0xe6   : > { %8945 = vmatprep.subr.bf16.mxu1 %v9873_v22  ;;  %5309 = vmatmul.mubr.bf16.gmra.mrb[68].mxu1 %v1528_v33  ;;  %v9879_v33 = vld [vmem:[%s13438_s1 + $0x6b0] sm:$0xff]  }
  0xe7   : > { %8912 = vmatpush3.bf16.msra.mxu0 %v9874_v37  ;;  %v10168_v37 = vld [vmem:[%s10393_s30 + $0xa8] sm:$0xff] }
  0xe8   : > { %8946 = vmatpush3.bf16.msra.mxu1 %v9875_v12  ;;  %8913 = vmatprep.subr.bf16.mxu0 %v9876_v5  ;;  %v11716_v5 = vld [vmem:[%s10393_s30 + $0xd8] sm:$0xff] }
  0xe9   : > { %8947 = vmatprep.subr.bf16.mxu1 %v9877_v60  ;;  %v9882_v60 = vld [vmem:[%s13438_s1 + $0x638] sm:$0xff]  }
  0xec   : > { %8948 = vmatpush3.bf16.msra.mxu1 %v9879_v33  ;;  %v13585_v33 = vrot.slane %v13559_v7, 2 }
 0x104   : > { %v8509_v1 = vpop.f32.mrb[0].mxu0 }
 0x105   : > { %v8543_v47 = vpop.f32.mrb[0].mxu1  ;;  %v8510_v59 = vpop.f32.mrb[1].mxu0 }
 0x106   : > { %v11688_v48 = vadd.f32 %v8510_v59, %v8509_v1  ;;  %v8544_v63 = vpop.f32.mrb[1].mxu1  ;;  %v8512_v13 = vpop.f32.mrb[2].mxu0  ;;  %v9878_v1 = vld [vmem:[%s13438_s1 + $0x630] sm:$0xff]   ;;  %v947_v59 = vrot.slane %v10168_v37, 2 }
 0x107   : > { %v11693_v9 = vadd.f32 %v8544_v63, %v8543_v47  ;;  %v8546_v41 = vpop.f32.mrb[2].mxu1  ;;  %v8513_v32 = vpop.f32.mrb[3].mxu0  ;;  %v9881_v63 = vld [vmem:[%s13438_s1 + $0x6f8] sm:$0xff]   ;;  %8914 = vmatpush3.bf16.msra.mxu0 %v9878_v1  ;;  %v11727_v37 = vld [vmem:[%s10393_s30 + $0xd0] sm:$0xff]  ;;  %v13584_v1 = vrot.slane %v11587_v20, 2 }
 0x108   : > { %v11704_v22 = vadd.f32 %v8513_v32, %v8512_v13  ;;  %v8547_v47 = vpop.f32.mrb[3].mxu1  ;;  %v10170_v32 = vld [vmem:[%s10393_s30 + $0xa0] sm:$0xff]  ;;  %8915 = vmatprep.subr.bf16.mxu0 %v9880_v54  ;;  %8949 = vmatprep.subr.bf16.mxu1 %v9881_v63  ;;  %v544_v13 = vld [vmem:[%s10393_s30 + $0x8] sm:$0xfc]  ;;  %v920_v54 = vrot.slane %v546_v38, 2  ;;  %v13586_v63 = vrot.slane %v11594_v40, 2 }
 0x109   : > { %v11710_v12 = vadd.f32 %v8547_v47, %v8546_v41  ;;  %v945_v41 = vrot.slane %v10170_v32, 2  ;;  %v9883_v47 = vld [vmem:[%s13438_s1 + $0x6b8] sm:$0xff]   ;;  %v932_v34 = vsel %vm910_vm1, %v13585_v33, %v13584_v1  ;;  %v914_v32 = vrot.slane %v544_v13, 2  ;;  %v9885_v13 = vld [vmem:[%s13438_s1 + $0x7c0] sm:$0xff]  }
 0x10a   : > { %v936_v43 = vsel %vm910_vm1, %v13587_v62, %v13586_v63  ;;  %8950 = vmatpush3.bf16.msra.mxu1 %v9883_v47  ;;  %v13588_v38 = vrot.slane %v11601_v3, 2  ;;  %v13592_v47 = vrot.slane %v13559_v7, 2  ;;  %v922_v20 = vsel %vm910_vm1, %v920_v54, %v13593_v51  ;;  %v9889_v54 = vld [vmem:[%s13438_s1 + $0x7c8] sm:$0xff]  }
 0x10b   : > { %8916 = vmatpush3.bf16.msra.mxu0 %v9882_v60  ;;  %v13591_v60 = vrot.slane %v11594_v40, 2  ;;  %v13595_v3 = vrot.slane %v11716_v5, 2  ;;  %v13597_v7 = vrot.slane %v10411_v42, 2  ;;  %9003 = vmatprep.subr.bf16.mxu1 %v9885_v13  ;;  %v9888_v42 = vld [vmem:[%s13438_s1 + $0x748] sm:$0xff]   ;;  %v13599_v13 = vrot.slane %v11621_v31, 2 }
 0x10c   : > { %v944_v33 = vsel %vm910_vm1, %v13584_v1, %v13588_v38  ;;  %v13590_v62 = vmov %v13588_v38  ;;  %v916_v24 = vsel %vm910_vm1, %v914_v32, %v13592_v47  ;;  %v13594_v38 = vrot.slane %v10407_v39, 2  ;;  %8969 = vmatprep.subr.bf16.mxu0 %v9884_v21  ;;  %v9886_v39 = vld [vmem:[%s13438_s1 + $0x700] sm:$0xff]   ;;  %v8515_v51 = vpop.f32.mrb[4].mxu0 }
 0x10d   : > { %v956_v63 = vsel %vm910_vm1, %v13590_v62, %v13589_v14  ;;  %v948_v29 = vsel %vm910_vm1, %v13591_v60, %v947_v59  ;;  %v960_v14 = vsel %vm910_vm1, %v947_v59, %v13595_v3  ;;  %v1435_v40 = vpack.c.bf16 %v932_v34, %v916_v24  ;;  %v13596_v60 = vld [vmem:[#allocation16_spill] sm:$0xff]  ;;  %v8516_v24 = vpop.f32.mrb[5].mxu0 }
 0x10e   : > { %v913_v1 = vsel %vm910_vm1, %v911_v26, %v13594_v38  ;;  %v1437_v62 = vpack.c.bf16 %v936_v43, %v922_v20  ;;  %v919_v32 = vsel %vm910_vm1, %v917_v19, %v13597_v7  ;;  %v13598_v26 = vld [vmem:[#allocation17_spill] sm:$0xff]  ;;  %v9887_v21 = vld [vmem:[%s13438_s1 + $0x780] sm:$0xff]   ;;  %v1483_v19 = vpack.c.bf16 %v956_v63, %v944_v33  ;;  %v8518_v59 = vpop.f32.mrb[6].mxu0  ;;  %v8549_v38 = vpop.f32.mrb[4].mxu1 }
 0x10f   : > { %v1434_v18 = vpack.c.bf16 %v13596_v60, %v913_v1  ;;  %v1436_v10 = vpack.c.bf16 %v13598_v26, %v919_v32  ;;  %5349 = vmatprep.mubr.bf16.mxu0 %v1435_v40  ;;  %v1485_v43 = vpack.c.bf16 %v960_v14, %v948_v29  ;;  %v11789_v34 = vadd.f32 %v8516_v24, %v8515_v51  ;;  %v9890_v33 = vld [vmem:[%s13438_s1 + $0x708] sm:$0xff]   ;;  %v8519_v40 = vpop.f32.mrb[7].mxu0  ;;  %v8550_v31 = vpop.f32.mrb[5].mxu1  ;;  %v9895_v24 = vld [vmem:[%s13438_s1 + $0x790] sm:$0xff]  }
 0x110   : > { %5406 = vmatprep.mubr.bf16.mxu1 %v1437_v62  ;;  %v13600_v47 = vrot.slane %v10474_v2, 2  ;;  %v13602_v63 = vmov %v13599_v13  ;;  %v13603_v1 = vrot.slane %v10489_v8, 2  ;;  %v13604_v2 = vrot.slane %v11727_v37, 2  ;;  %v9891_v62 = vld [vmem:[%s13438_s1 + $0x788] sm:$0xff]   ;;  %v9892_v8 = vld [vmem:[%s13438_s1 + $0x750] sm:$0xff]   ;;  %v8552_v32 = vpop.f32.mrb[6].mxu1 }
 0x111   : > { %5350 = vmatmul.mubr.bf16.vlgmr.msra.gmra.mrb[72].mxu0 %v1434_v18  ;;  %5407 = vmatmul.mubr.bf16.vlgmr.msra.gmra.mrb[72].mxu1 %v1436_v10  ;;  %v13601_v18 = vrot.slane %v11628_v30, 2  ;;  %v11816_v60 = vadd.f32 %v8519_v40, %v8518_v59  ;;  %v11821_v7 = vadd.f32 %v8550_v31, %v8549_v38  ;;  %v8553_v26 = vpop.f32.mrb[7].mxu1  ;;  %v9894_v10 = vld [vmem:[%s13438_s1 + $0x710] sm:$0xff]   ;;  %v11847_v38 = vld [vmem:[%s10393_s30 + $0xf8] sm:$0xff] }
 0x112   : > { %v942_v20 = vsel %vm910_vm1, %v13600_v47, %v13599_v13  ;;  %8970 = vmatpush3.bf16.msra.mxu0 %v9886_v39  ;;  %9004 = vmatpush3.bf16.msra.mxu1 %v9887_v21  ;;  %v946_v3 = vsel %vm910_vm1, %v13603_v1, %v945_v41  ;;  %v958_v14 = vsel %vm910_vm1, %v945_v41, %v13604_v2  ;;  %v9893_v39 = vld [vmem:[%s13438_s1 + $0x7d0] sm:$0xff]   ;;  %v9900_v1 = vld [vmem:[%s13438_s1 + $0x760] sm:$0xff]  }
 0x113   : > { %v954_v29 = vsel %vm910_vm1, %v13602_v63, %v13601_v18  ;;  %8971 = vmatprep.subr.bf16.mxu0 %v9888_v42  ;;  %9005 = vmatprep.subr.bf16.mxu1 %v9889_v54  ;;  %v1484_v51 = vpack.c.bf16 %v958_v14, %v946_v3  ;;  %v11829_v21 = vadd.f32 %v8553_v26, %v8552_v32  ;;  %v9896_v42 = vld [vmem:[%s13438_s1 + $0x758] sm:$0xff]   ;;  %v967_v63 = vrot.slane %v11847_v38, 2  ;;  %v11857_v2 = vld [vmem:[%s10393_s30 + $0x80] sm:$0xff]  ;;  %v11868_v32 = vld [vmem:[%s10393_s30 + $0x108] sm:$0xff] }
 0x114   : > { %5357 = vmatprep.mubr.bf16.mxu0 %v1483_v19  ;;  %5414 = vmatprep.mubr.bf16.mxu1 %v1485_v43  ;;  %v1482_v41 = vpack.c.bf16 %v954_v29, %v942_v20  ;;  %v8521_v19 = vpop.f32.mrb[8].mxu0  ;;  %v9897_v43 = vld [vmem:[%s13438_s1 + $0x7d8] sm:$0xff]   ;;  %v11851_v29 = vld [vmem:[%s10393_s30 + $0xf0] sm:$0xff] }
 0x115   : > { %v8522_v59 = vpop.f32.mrb[9].mxu0  ;;  %v9898_v54 = vld [vmem:[%s13438_s1 + $0x718] sm:$0xff]   ;;  %v965_v40 = vrot.slane %v11851_v29, 2 }
 0x116   : > { %8972 = vmatpush3.bf16.msra.mxu0 %v9890_v33  ;;  %9006 = vmatpush3.bf16.msra.mxu1 %v9891_v62  ;;  %v8523_v13 = vadd.f32 %v8522_v59, %v8521_v19  ;;  %v8524_v47 = vpop.f32.mrb[10].mxu0  ;;  %v9899_v20 = vld [vmem:[%s13438_s1 + $0x798] sm:$0xff]   ;;  %v8555_v33 = vpop.f32.mrb[8].mxu1  ;;  %v13605_v62 = vrot.slane %v11608_v35, 2  ;;  %v9902_v59 = vld [vmem:[%s13438_s1 + $0x720] sm:$0xff]  }
 0x117   : > { %8973 = vmatprep.subr.bf16.mxu0 %v9892_v8  ;;  %9007 = vmatprep.subr.bf16.mxu1 %v9893_v39  ;;  %v8525_v18 = vpop.f32.mrb[11].mxu0  ;;  %v9901_v8 = vld [vmem:[%s13438_s1 + $0x7e0] sm:$0xff]  }
 0x118   : > { %v8526_v3 = vadd.f32 %v8525_v18, %v8524_v47  ;;  %v968_v31 = vsel %vm910_vm1, %v13605_v62, %v967_v63  ;;  %v9903_v18 = vld [vmem:[%s13438_s1 + $0x7a0] sm:$0xff]  }
 0x119   : > { %5358 = vmatmul.mubr.bf16.gmra.mrb[76].mxu0 %v1482_v41  ;;  %5415 = vmatmul.mubr.bf16.gmra.mrb[76].mxu1 %v1484_v51  ;;  %v11871_v41 = vld [vmem:[%s10393_s30 + $0x58] sm:$0xff]  ;;  %v8556_v51 = vpop.f32.mrb[9].mxu1  ;;  %v1531_v26 = vpack.c.bf16 %v967_v63, %v968_v31  ;;  %v11892_v63 = vld [vmem:[%s10393_s30 + $0x100] sm:$0xff] }
 0x11a   : > { %8974 = vmatpush3.bf16.msra.mxu0 %v9894_v10  ;;  %9008 = vmatpush3.bf16.msra.mxu1 %v9895_v24  ;;  %v927_v39 = vrot.slane %v11871_v41, 2  ;;  %v13606_v10 = vrot.slane %v11628_v30, 2  ;;  %v971_v24 = vrot.slane %v11868_v32, 2  ;;  %v8558_v47 = vpop.f32.mrb[10].mxu1  ;;  %v13607_v30 = vrot.slane %v11716_v5, 2 }
 0x11b   : > { %8975 = vmatprep.subr.bf16.mxu0 %v9896_v42  ;;  %9009 = vmatprep.subr.bf16.mxu1 %v9897_v43  ;;  %v11879_v42 = vld [vmem:[%s10393_s30 + $0x88] sm:$0xff]  ;;  %v8559_v62 = vpop.f32.mrb[11].mxu1  ;;  %v969_v5 = vrot.slane %v11892_v63, 2 }
 0x11c   : > { %v966_v35 = vsel %vm910_vm1, %v13606_v10, %v965_v40  ;;  %v939_v19 = vrot.slane %v11879_v42, 2  ;;  %5365 = vmatprep.mubr.bf16.mxu0 %v1531_v26  ;;  %v9904_v10 = vld [vmem:[%s13438_s1 + $0x768] sm:$0xff]  }
 0x11d   : > { %v1530_v43 = vpack.c.bf16 %v965_v40, %v966_v35  ;;  %v11898_v40 = vld [vmem:[%s10393_s30 + $0x50] sm:$0xff] }
 0x11e   : > { %8976 = vmatpush3.bf16.msra.mxu0 %v9898_v54  ;;  %9010 = vmatpush3.bf16.msra.mxu1 %v9899_v20  ;;  %v8557_v54 = vadd.f32 %v8556_v51, %v8555_v33  ;;  %v972_v20 = vsel %vm910_vm1, %v13607_v30, %v971_v24  ;;  %v11904_v51 = vld [vmem:[%s10393_s30 + $0xb8] sm:$0xff] }
 0x11f   : > { %8977 = vmatprep.subr.bf16.mxu0 %v9900_v1  ;;  %9011 = vmatprep.subr.bf16.mxu1 %v9901_v8  ;;  %v8005_v1 = vld [vmem:[%s13439_s2] ss:$0 sm:$0xff]  ;;  %v1533_v31 = vpack.c.bf16 %v971_v24, %v972_v20 }
 0x120   : > { %v4668_v8 = vadd.f32 %v11688_v48, %v8005_v1  ;;  %v4671_v35 = vadd.f32 %v11704_v22, %v8005_v1  ;;  %v4676_v30 = vadd.f32 %v11789_v34, %v8005_v1  ;;  %v4679_v24 = vadd.f32 %v11816_v60, %v8005_v1  ;;  %v9906_v34 = vld [vmem:[%s13438_s1 + $0x728] sm:$0xff]  }
 0x121   : > { %5366 = vmatmul.mubr.bf16.gmra.mrb[80].mxu0 %v1530_v43  ;;  %5422 = vmatprep.mubr.bf16.mxu1 %v1533_v31  ;;  %v13608_v48 = vrot.slane %v11727_v37, 2  ;;  %v4687_v33 = vadd.f32 %v8526_v3, %v8005_v1 }
 0x122   : > { %8978 = vmatpush3.bf16.msra.mxu0 %v9902_v59  ;;  %9012 = vmatpush3.bf16.msra.mxu1 %v9903_v18  ;;  %v4725_v26 = vadd.f32 %v11693_v9, %v4668_v8  ;;  %v9905_v59 = vld [vmem:[%s13438_s1 + $0x7e8] sm:$0xff]   ;;  %v4684_v18 = vadd.f32 %v8523_v13, %v8005_v1  ;;  %v4728_v60 = vadd.f32 %v11710_v12, %v4671_v35  ;;  %v9908_v12 = vld [vmem:[%s13438_s1 + $0x770] sm:$0xff]  }
 0x123   : > { %v970_v20 = vsel %vm910_vm1, %v13608_v48, %v969_v5  ;;  %8979 = vmatprep.subr.bf16.mxu0 %v9904_v10  ;;  %v11925_v37 = vadd.f32 %v11821_v7, %v4676_v30  ;;  %v11928_v9 = vadd.f32 %v11829_v21, %v4679_v24  ;;  %9013 = vmatprep.subr.bf16.mxu1 %v9905_v59  ;;  %v9907_v13 = vld [vmem:[%s13438_s1 + $0x7a8] sm:$0xff]   ;;  %v9909_v10 = vld [vmem:[%s13438_s1 + $0x7f0] sm:$0xff]  }
 0x124   : > { %v8577_v43 = vpop.f32.mrb[12].mxu0  ;;  %v1532_v22 = vpack.c.bf16 %v969_v5, %v970_v20  ;;  %v11933_v3 = vadd.f32 %v8557_v54, %v4684_v18  ;;  %v8560_v1 = vadd.f32 %v8559_v62, %v8558_v47  ;;  %v9910_v62 = vld [vmem:[%s13438_s1 + $0x730] sm:$0xff]   ;;  %v11955_v48 = vld [vmem:[%s10393_s30 + $0xe8] sm:$0xff]  ;;  %v9913_v18 = vld [vmem:[%s13438_s1 + $0x7f8] sm:$0xff]  }
 0x125   : > { %v8611_v14 = vpop.f32.mrb[12].mxu1  ;;  %v8578_v31 = vpop.f32.mrb[13].mxu0  ;;  %v963_v20 = vrot.slane %v11955_v48, 2 }
 0x126   : > { %v8579_v5 = vadd.f32 %v8578_v31, %v8577_v43  ;;  %v8612_v8 = vpop.f32.mrb[13].mxu1  ;;  %5423 = vmatmul.mubr.bf16.gmra.mrb[80].mxu1 %v1532_v22  ;;  %8980 = vmatpush3.bf16.msra.mxu0 %v9906_v34  ;;  %v8580_v21 = vpop.f32.mrb[14].mxu0  ;;  %v11941_v35 = vadd.f32 %v8560_v1, %v4687_v33  ;;  %v10178_v22 = vld [vmem:[%s10393_s30 + $0xb0] sm:$0xff]  ;;  %v11966_v1 = vld [vmem:[%s10393_s30 + $0xe0] sm:$0xff] }
 0x127   : > { %v8613_v7 = vadd.f32 %v8612_v8, %v8611_v14  ;;  %9014 = vmatpush3.bf16.msra.mxu1 %v9907_v13  ;;  %v8614_v47 = vpop.f32.mrb[14].mxu1  ;;  %8981 = vmatprep.subr.bf16.mxu0 %v9908_v12  ;;  %v8581_v30 = vpop.f32.mrb[15].mxu0  ;;  %v9911_v14 = vld [vmem:[%s13438_s1 + $0x7b0] sm:$0xff]   ;;  %v949_v34 = vrot.slane %v10178_v22, 2  ;;  %v9914_v13 = vld [vmem:[%s13438_s1 + $0x738] sm:$0xff]   ;;  %v13611_v22 = vrot.slane %v10585_v49, 2 }
 0x128   : > { %v4782_v54 = vadd.f32 %v8579_v5, %v4725_v26  ;;  %9015 = vmatprep.subr.bf16.mxu1 %v9909_v10  ;;  %v8582_v43 = vadd.f32 %v8581_v30, %v8580_v21  ;;  %v8615_v33 = vpop.f32.mrb[15].mxu1  ;;  %v9912_v26 = vld [vmem:[%s13438_s1 + $0x778] sm:$0xff]   ;;  %v961_v5 = vrot.slane %v11966_v1, 2  ;;  %v548_v12 = vld [vmem:[%s10393_s30 + $0x28] sm:$0xfc]  ;;  %v9935_v1 = vld [vmem:[%s13438_s1 + $0x8a0] sm:$0xff]  }
 0x129   : > { %v8616_v59 = vadd.f32 %v8615_v33, %v8614_v47  ;;  %v9915_v8 = vld [vmem:[%s13438_s1 + $0x7b8] sm:$0xff]   ;;  %v926_v10 = vrot.slane %v548_v12, 2  ;;  %v555_v30 = vld [vmem:[%s10393_s30 + $0x150] sm:$0xfc]  ;;  %v13610_v33 = vrot.slane %v11898_v40, 2 }
 0x12a   : > { %v11949_v24 = vadd.f32 %v8613_v7, %v4782_v54  ;;  %8982 = vmatpush3.bf16.msra.mxu0 %v9910_v62  ;;  %v4785_v31 = vadd.f32 %v8582_v43, %v4728_v60  ;;  %v556_v7 = vld [vmem:[%s10393_s30 + $0x158] sm:$0xfc]  ;;  %v940_v54 = vsel %vm910_vm1, %v927_v39, %v939_v19  ;;  %v547_v62 = vld [vmem:[%s10393_s30 + $0x20] sm:$0xfc]  ;;  %v13609_v43 = vrot.slane %v11857_v2, 2 }
 0x12b   : > { %9016 = vmatpush3.bf16.msra.mxu1 %v9911_v14  ;;  %8983 = vmatprep.subr.bf16.mxu0 %v9912_v26  ;;  %v1028_v47 = vrot.slane %v556_v7, 2  ;;  %v923_v14 = vrot.slane %v547_v62, 2 }
 0x12c   : > { %9017 = vmatprep.subr.bf16.mxu1 %v9913_v18  ;;  %v11974_v21 = vadd.f32 %v8616_v59, %v4785_v31  ;;  %v8583_v60 = vpop.f32.mrb[16].mxu0  ;;  %v938_v26 = vsel %vm910_vm1, %v13610_v33, %v13609_v43  ;;  %v1025_v59 = vrot.slane %v555_v30, 2  ;;  %v928_v18 = vsel %vm910_vm1, %v926_v10, %v927_v39 }
 0x12d   : > { %v1030_v31 = vsel %vm910_vm1, %v1028_v47, %v13611_v22  ;;  %v8584_v7 = vpop.f32.mrb[17].mxu0  ;;  %v1439_v49 = vpack.c.bf16 %v940_v54, %v928_v18  ;;  %v13614_v47 = vmov %v13610_v33  ;;  %v13615_v30 = vrot.slane %v10592_v55, 2  ;;  %v9919_v55 = vld [vmem:[%s13438_s1 + $0x880] sm:$0xff]  }
 0x12e   : > { %8984 = vmatpush3.bf16.msra.mxu0 %v9914_v13  ;;  %v9916_v13 = vld [vmem:[%s13438_s1 + $0x840] sm:$0xff]   ;;  %v1441_v10 = vpack.c.bf16 %v11137_v44, %v1030_v31  ;;  %v925_v62 = vsel %vm910_vm1, %v923_v14, %v13614_v47  ;;  %v8586_v43 = vpop.f32.mrb[18].mxu0  ;;  %v8585_v40 = vadd.f32 %v8584_v7, %v8583_v60 }
 0x12f   : > { %9018 = vmatpush3.bf16.msra.mxu1 %v9915_v8  ;;  %v13612_v8 = vrot.slane %v11904_v51, 2  ;;  %v1027_v42 = vsel %vm910_vm1, %v1025_v59, %v13615_v30  ;;  %v1438_v51 = vpack.c.bf16 %v938_v26, %v925_v62  ;;  %9037 = vmatprep.subr.bf16.mxu0 %v9916_v13  ;;  %v9918_v44 = vld [vmem:[%s13438_s1 + $0x800] sm:$0xff]   ;;  %v8587_v54 = vpop.f32.mrb[19].mxu0  ;;  %v8617_v59 = vpop.f32.mrb[16].mxu1  ;;  %v13616_v26 = vrot.slane %v11857_v2, 2  ;;  %v9921_v13 = vld [vmem:[%s13438_s1 + $0x8c8] sm:$0xff]  }
 0x130   : > { %v1440_v33 = vpack.c.bf16 %v11149_v4, %v1027_v42  ;;  %5463 = vmatprep.mubr.bf16.mxu0 %v1439_v49  ;;  %5520 = vmatprep.mubr.bf16.mxu1 %v1441_v10  ;;  %v8588_v18 = vadd.f32 %v8587_v54, %v8586_v43  ;;  %v9920_v4 = vld [vmem:[%s13438_s1 + $0x848] sm:$0xff]   ;;  %v4790_v22 = vadd.f32 %v8585_v40, %v11925_v37  ;;  %v8618_v31 = vpop.f32.mrb[17].mxu1  ;;  %v9925_v30 = vld [vmem:[%s13438_s1 + $0x8d0] sm:$0xff]   ;;  %v9928_v40 = vld [vmem:[%s13438_s1 + $0x858] sm:$0xff]  }
 0x131   : > { %v952_v12 = vsel %vm910_vm1, %v939_v19, %v13612_v8  ;;  %v13613_v41 = vmov %v13612_v8  ;;  %v9917_v19 = vld [vmem:[%s13438_s1 + $0x8c0] sm:$0xff]   ;;  %5464 = vmatmul.mubr.bf16.vlgmr.msra.gmra.mrb[84].mxu0 %v1438_v51  ;;  %v950_v60 = vsel %vm910_vm1, %v13616_v26, %v949_v34  ;;  %v962_v8 = vsel %vm910_vm1, %v949_v34, %v961_v5  ;;  %v9922_v37 = vld [vmem:[%s13438_s1 + $0x808] sm:$0xff]   ;;  %v9926_v43 = vld [vmem:[%s13438_s1 + $0x810] sm:$0xff]  }
 0x132   : > { %v964_v39 = vsel %vm910_vm1, %v13613_v41, %v963_v20  ;;  %5521 = vmatmul.mubr.bf16.vlgmr.msra.gmra.mrb[84].mxu1 %v1440_v33  ;;  %9071 = vmatprep.subr.bf16.mxu1 %v9917_v19  ;;  %v8619_v41 = vadd.f32 %v8618_v31, %v8617_v59  ;;  %v9923_v49 = vld [vmem:[%s13438_s1 + $0x888] sm:$0xff]   ;;  %v1486_v47 = vpack.c.bf16 %v962_v8, %v950_v60  ;;  %v553_v26 = vld [vmem:[%s10393_s30 + $0x110] sm:$0xff] }
 0x133   : > { %v1487_v14 = vpack.c.bf16 %v964_v39, %v952_v12  ;;  %9038 = vmatpush3.bf16.msra.mxu0 %v9918_v44  ;;  %v4793_v12 = vadd.f32 %v8588_v18, %v11928_v9  ;;  %v8620_v39 = vpop.f32.mrb[18].mxu1  ;;  %9072 = vmatpush3.bf16.msra.mxu1 %v9919_v55  ;;  %v9924_v9 = vld [vmem:[%s13438_s1 + $0x850] sm:$0xff]   ;;  %v13617_v62 = vpack.c.bf16 %v11205_v23, %v11200_v11  ;;  %v9929_v55 = vld [vmem:[%s13438_s1 + $0x8d8] sm:$0xff]   ;;  %v973_v31 = vrot.slane %v553_v26, 2 }
 0x134   : > { %9039 = vmatprep.subr.bf16.mxu0 %v9920_v4  ;;  %v8621_v7 = vpop.f32.mrb[19].mxu1  ;;  %9073 = vmatprep.subr.bf16.mxu1 %v9921_v13  ;;  %v12044_v10 = vadd.f32 %v8619_v41, %v4790_v22  ;;  %v8589_v19 = vpop.f32.mrb[20].mxu0  ;;  %v9927_v11 = vld [vmem:[%s13438_s1 + $0x890] sm:$0xff]   ;;  %v13618_v44 = vpack.c.bf16 %v11225_v27, %v11216_v25  ;;  %v9930_v25 = vld [vmem:[%s13438_s1 + $0x818] sm:$0xff]   ;;  %v9932_v13 = vld [vmem:[%s13438_s1 + $0x860] sm:$0xff]  }
 0x135   : > { %5471 = vmatprep.mubr.bf16.mxu0 %v1487_v14  ;;  %v8622_v34 = vadd.f32 %v8621_v7, %v8620_v39  ;;  %5528 = vmatprep.mubr.bf16.mxu1 %v13617_v62  ;;  %v8590_v51 = vpop.f32.mrb[21].mxu0  ;;  %v8623_v27 = vpop.f32.mrb[20].mxu1  ;;  %v9931_v18 = vld [vmem:[%s13438_s1 + $0x898] sm:$0xff]   ;;  %v9933_v39 = vld [vmem:[%s13438_s1 + $0x8e0] sm:$0xff]  }
 0x136   : > { %v8591_v23 = vadd.f32 %v8590_v51, %v8589_v19  ;;  %v8592_v33 = vpop.f32.mrb[22].mxu0  ;;  %v554_v4 = vld [vmem:[%s10393_s30 + $0x118] sm:$0xff]  ;;  %v8624_v22 = vpop.f32.mrb[21].mxu1  ;;  %v13619_v19 = vrot.slane %v10696_v0, 2  ;;  %v561_v51 = vld [vmem:[%s10393_s30 + $0x240] sm:$0xff] }
 0x137   : > { %9040 = vmatpush3.bf16.msra.mxu0 %v9922_v37  ;;  %v12055_v42 = vadd.f32 %v8622_v34, %v4793_v12  ;;  %9074 = vmatpush3.bf16.msra.mxu1 %v9923_v49  ;;  %v8593_v54 = vpop.f32.mrb[23].mxu0  ;;  %v8625_v8 = vadd.f32 %v8624_v22, %v8623_v27  ;;  %v8626_v12 = vpop.f32.mrb[22].mxu1  ;;  %v562_v37 = vld [vmem:[%s10393_s30 + $0x248] sm:$0xff]  ;;  %v12104_v62 = vld [vmem:[%s10393_s30 + $0x38] sm:$0xff] }
 0x138   : > { %9041 = vmatprep.subr.bf16.mxu0 %v9924_v9  ;;  %9075 = vmatprep.subr.bf16.mxu1 %v9925_v30  ;;  %v4798_v14 = vadd.f32 %v8591_v23, %v11933_v3  ;;  %v8594_v59 = vadd.f32 %v8593_v54, %v8592_v33  ;;  %v975_v3 = vrot.slane %v554_v4, 2  ;;  %v8627_v7 = vpop.f32.mrb[23].mxu1  ;;  %v9934_v9 = vld [vmem:[%s13438_s1 + $0x820] sm:$0xff]   ;;  %v1144_v30 = vrot.slane %v12104_v62, 3  ;;  %v9936_v33 = vld [vmem:[%s13438_s1 + $0x868] sm:$0xff]  }
 0x139   : > { %5472 = vmatmul.mubr.bf16.gmra.mrb[88].mxu0 %v1486_v47  ;;  %v1081_v47 = vrot.slane %v562_v37, 2  ;;  %v1079_v23 = vrot.slane %v561_v51, 2  ;;  %v9937_v54 = vld [vmem:[%s13438_s1 + $0x8e8] sm:$0xff]   ;;  %v9944_v37 = vld [vmem:[%s13438_s1 + $0x878] sm:$0xff]  }
 0x13a   : > { %5529 = vmatmul.mubr.bf16.gmra.mrb[88].mxu1 %v13618_v44  ;;  %v4801_v60 = vadd.f32 %v8594_v59, %v11941_v35  ;;  %v976_v41 = vsel %vm910_vm1, %v963_v20, %v975_v3  ;;  %v974_v35 = vsel %vm910_vm1, %v961_v5, %v973_v31  ;;  %v12098_v20 = vadd.f32 %v8625_v8, %v4798_v14  ;;  %v12134_v4 = vld [vmem:[%s10393_s30 + $0x68] sm:$0xff]  ;;  %v9942_v8 = vld [vmem:[%s13438_s1 + $0x830] sm:$0xff]   ;;  %v13641_v62 = vld [vmem:[#allocation11_spill] sm:$0xff] }
 0x13b   : > { %9042 = vmatpush3.bf16.msra.mxu0 %v9926_v43  ;;  %9076 = vmatpush3.bf16.msra.mxu1 %v9927_v11  ;;  %v1535_v49 = vpack.c.bf16 %v975_v3, %v976_v41  ;;  %v1534_v34 = vpack.c.bf16 %v973_v31, %v974_v35  ;;  %v8628_v5 = vadd.f32 %v8627_v7, %v8626_v12  ;;  %v13620_v14 = vrot.slane %v10708_v17, 2  ;;  %v9940_v17 = vld [vmem:[%s13438_s1 + $0x870] sm:$0xff]   ;;  %v12148_v31 = vld [vmem:[%s10393_s30 + $0x98] sm:$0xff]  ;;  %v12155_v12 = vld [vmem:[%s10393_s30 + $0xc8] sm:$0xff] }
 0x13c   : > { %9043 = vmatprep.subr.bf16.mxu0 %v9928_v40  ;;  %9077 = vmatprep.subr.bf16.mxu1 %v9929_v55  ;;  %v1082_v43 = vsel %vm910_vm1, %v13619_v19, %v1081_v47  ;;  %v12117_v40 = vld [vmem:[%s10393_s30 + $0x48] sm:$0xff]  ;;  %v1166_v55 = vrot.slane %v11857_v2, 3  ;;  %v1160_v26 = vrot.slane %v12134_v4, 3  ;;  %v9941_v3 = vld [vmem:[%s13438_s1 + $0x8f0] sm:$0xff]   ;;  %v1184_v41 = vrot.slane %v12155_v12, 3  ;;  %v9997_v12 = vld [vmem:[%s13438_s1 + $0xae0] sm:$0xff]  }
 0x13d   : > { %5479 = vmatprep.mubr.bf16.mxu0 %v1535_v49  ;;  %v1537_v11 = vpack.c.bf16 %v1081_v47, %v1082_v43  ;;  %v12114_v44 = vadd.f32 %v8628_v5, %v4801_v60  ;;  %v1150_v0 = vrot.slane %v12117_v40, 3  ;;  %v1080_v59 = vsel %vm910_vm1, %v13620_v14, %v1079_v23  ;;  %v12141_v60 = vld [vmem:[%s10393_s30 + $0x78] sm:$0xff]  ;;  %v9943_v35 = vld [vmem:[%s13438_s1 + $0x8b0] sm:$0xff]   ;;  %v558_v19 = vld [vmem:[%s10393_s30 + $0x168] sm:$0xfc] }
 0x13e   : > { %v1536_v27 = vpack.c.bf16 %v1079_v23, %v1080_v59  ;;  %v1164_v22 = vrot.slane %v12141_v60, 3  ;;  %v9945_v49 = vld [vmem:[%s13438_s1 + $0x8f8] sm:$0xff]   ;;  %v1034_v23 = vrot.slane %v558_v19, 2  ;;  %v559_v14 = vld [vmem:[%s10393_s30 + $0x170] sm:$0xfc]  ;;  %v10018_v2 = vld [vmem:[%s13438_s1 + $0xb08] sm:$0xff]  }
 0x13f   : > { %9044 = vmatpush3.bf16.msra.mxu0 %v9930_v25  ;;  %9078 = vmatpush3.bf16.msra.mxu1 %v9931_v18  ;;  %v9938_v25 = vld [vmem:[%s13438_s1 + $0x828] sm:$0xff]   ;;  %v9946_v47 = vld [vmem:[%s13438_s1 + $0x838] sm:$0xff]  }
 0x140   : > { %9045 = vmatprep.subr.bf16.mxu0 %v9932_v13  ;;  %9079 = vmatprep.subr.bf16.mxu1 %v9933_v39  ;;  %v9939_v18 = vld [vmem:[%s13438_s1 + $0x8a8] sm:$0xff]   ;;  %v1172_v13 = vrot.slane %v12148_v31, 3  ;;  %v9947_v5 = vld [vmem:[%s13438_s1 + $0x8b8] sm:$0xff]  }
 0x141   : > { %5480 = vmatmul.mubr.bf16.gmra.mrb[92].mxu0 %v1534_v34  ;;  %5536 = vmatprep.mubr.bf16.mxu1 %v1537_v11  ;;  %v560_v43 = vld [vmem:[%s10393_s30 + $0x178] sm:$0xfc] }
 0x142   : > { %5537 = vmatmul.mubr.bf16.gmra.mrb[92].mxu1 %v1536_v27  ;;  %v1037_v27 = vrot.slane %v559_v14, 2 }
 0x143   : > { %9046 = vmatpush3.bf16.msra.mxu0 %v9934_v9  ;;  %9080 = vmatpush3.bf16.msra.mxu1 %v9935_v1 }
 0x144   : > { %9047 = vmatprep.subr.bf16.mxu0 %v9936_v33  ;;  %9081 = vmatprep.subr.bf16.mxu1 %v9937_v54  ;;  %v8645_v39 = vpop.f32.mrb[24].mxu0  ;;  %v1040_v33 = vrot.slane %v560_v43, 2  ;;  %v557_v54 = vld [vmem:[%s10393_s30 + $0x160] sm:$0xfc] }
 0x145   : > { %v8679_v7 = vpop.f32.mrb[24].mxu1  ;;  %v8646_v34 = vpop.f32.mrb[25].mxu0 }
 0x146   : > { %v8647_v9 = vadd.f32 %v8646_v34, %v8645_v39  ;;  %v8680_v1 = vpop.f32.mrb[25].mxu1  ;;  %v8648_v11 = vpop.f32.mrb[26].mxu0  ;;  %v13624_v34 = vrot.slane %v10779_v15, 2  ;;  %v9951_v15 = vld [vmem:[%s13438_s1 + $0x980] sm:$0xff]  }
 0x147   : > { %9048 = vmatpush3.bf16.msra.mxu0 %v9938_v25  ;;  %9082 = vmatpush3.bf16.msra.mxu1 %v9939_v18  ;;  %v8681_v51 = vadd.f32 %v8680_v1, %v8679_v7  ;;  %v1031_v25 = vrot.slane %v557_v54, 2  ;;  %v13621_v18 = vrot.slane %v10765_v56, 2  ;;  %v9954_v54 = vld [vmem:[%s13438_s1 + $0x908] sm:$0xff]  }
 0x148   : > { %9049 = vmatprep.subr.bf16.mxu0 %v9940_v17  ;;  %9083 = vmatprep.subr.bf16.mxu1 %v9941_v3  ;;  %v4896_v59 = vadd.f32 %v8647_v9, %v11949_v24  ;;  %v13622_v3 = vrot.slane %v10769_v58, 2  ;;  %v1039_v58 = vsel %vm910_vm1, %v1037_v27, %v13624_v34  ;;  %v8649_v9 = vpop.f32.mrb[27].mxu0  ;;  %v13627_v34 = vpack.c.bf16 %v11455_v53, %v11448_v52  ;;  %v12266_v53 = vld [vmem:[%s10393_s30 + $0xa8] sm:$0xff] }
 0x149   : > { %v1036_v17 = vsel %vm910_vm1, %v1034_v23, %v13621_v18 }
 0x14a   : > { %v12187_v39 = vadd.f32 %v8681_v51, %v4896_v59  ;;  %v1443_v24 = vpack.c.bf16 %v11359_v28, %v1036_v17  ;;  %v8650_v28 = vadd.f32 %v8649_v9, %v8648_v11  ;;  %v9953_v11 = vld [vmem:[%s13438_s1 + $0x9c8] sm:$0xff]   ;;  %v12228_v17 = vld [vmem:[%s10393_s30 + $0x90] sm:$0xff]  ;;  %v9960_v9 = vld [vmem:[%s13438_s1 + $0x958] sm:$0xff]  }
 0x14b   : > { %9050 = vmatpush3.bf16.msra.mxu0 %v9942_v8  ;;  %9084 = vmatpush3.bf16.msra.mxu1 %v9943_v35  ;;  %v1042_v8 = vsel %vm910_vm1, %v1040_v33, %v13622_v3  ;;  %v9948_v35 = vld [vmem:[%s13438_s1 + $0x940] sm:$0xff]   ;;  %v9955_v59 = vld [vmem:[%s13438_s1 + $0x988] sm:$0xff]   ;;  %v1170_v3 = vrot.slane %v12228_v17, 3 }
 0x14c   : > { %9051 = vmatprep.subr.bf16.mxu0 %v9944_v37  ;;  %9085 = vmatprep.subr.bf16.mxu1 %v9945_v49  ;;  %v8682_v37 = vpop.f32.mrb[26].mxu1  ;;  %v1445_v7 = vpack.c.bf16 %v11370_v46, %v1042_v8  ;;  %v13623_v49 = vrot.slane %v10774_v6, 2  ;;  %v9950_v6 = vld [vmem:[%s13438_s1 + $0x900] sm:$0xff]   ;;  %v8651_v43 = vpop.f32.mrb[28].mxu0  ;;  %v9956_v8 = vld [vmem:[%s13438_s1 + $0x950] sm:$0xff]  }
 0x14d   : > { %v8683_v46 = vpop.f32.mrb[27].mxu1  ;;  %5577 = vmatprep.mubr.bf16.mxu0 %v1443_v24  ;;  %v8652_v51 = vpop.f32.mrb[29].mxu0 }
 0x14e   : > { %v1033_v56 = vsel %vm910_vm1, %v1031_v25, %v13623_v49  ;;  %5634 = vmatprep.mubr.bf16.mxu1 %v1445_v7  ;;  %v8684_v19 = vadd.f32 %v8683_v46, %v8682_v37  ;;  %v8653_v23 = vadd.f32 %v8652_v51, %v8651_v43  ;;  %v8654_v33 = vpop.f32.mrb[30].mxu0  ;;  %v13625_v25 = vpack.c.bf16 %v11436_v50, %v11429_v45  ;;  %v12238_v37 = vld [vmem:[%s10393_s30 + $0xc0] sm:$0xff]  ;;  %v9957_v50 = vld [vmem:[%s13438_s1 + $0x9d0] sm:$0xff]   ;;  %v9963_v43 = vld [vmem:[%s13438_s1 + $0x998] sm:$0xff]  }
 0x14f   : > { %9052 = vmatpush3.bf16.msra.mxu0 %v9946_v47  ;;  %9086 = vmatpush3.bf16.msra.mxu1 %v9947_v5  ;;  %v9949_v47 = vld [vmem:[%s13438_s1 + $0x9c0] sm:$0xff]   ;;  %v1442_v1 = vpack.c.bf16 %v11380_v36, %v1033_v56  ;;  %v1444_v5 = vpack.c.bf16 %v11387_v16, %v1039_v58  ;;  %v9952_v36 = vld [vmem:[%s13438_s1 + $0x948] sm:$0xff]   ;;  %v4899_v16 = vadd.f32 %v8650_v28, %v11974_v21  ;;  %v8655_v21 = vpop.f32.mrb[31].mxu0  ;;  %v1182_v45 = vrot.slane %v12238_v37, 3  ;;  %v9959_v7 = vld [vmem:[%s13438_s1 + $0x990] sm:$0xff]  }
 0x150   : > { %9105 = vmatprep.subr.bf16.mxu0 %v9948_v35  ;;  %9139 = vmatprep.subr.bf16.mxu1 %v9949_v47  ;;  %v4904_v27 = vadd.f32 %v8653_v23, %v12044_v10  ;;  %v8656_v18 = vadd.f32 %v8655_v21, %v8654_v33  ;;  %v13626_v35 = vpack.c.bf16 %v11474_v61, %v11467_v57  ;;  %v8685_v10 = vpop.f32.mrb[28].mxu1  ;;  %v9958_v57 = vld [vmem:[%s13438_s1 + $0x910] sm:$0xff]   ;;  %v1176_v28 = vrot.slane %v12266_v53, 3  ;;  %v12282_v23 = vld [vmem:[%s10393_s30 + $0xd8] sm:$0xff]  ;;  %v9983_v53 = vld [vmem:[%s13438_s1 + $0xa80] sm:$0xff]  }
 0x151   : > { %v12218_v14 = vadd.f32 %v8684_v19, %v4899_v16  ;;  %v8686_v61 = vpop.f32.mrb[29].mxu1  ;;  %v13629_v58 = vld [vmem:[#allocation25_spill] sm:$0xff]  ;;  %v1196_v46 = vrot.slane %v11847_v38, 3  ;;  %v1194_v19 = vrot.slane %v11851_v29, 3  ;;  %v1188_v33 = vrot.slane %v12282_v23, 3  ;;  %v9998_v38 = vld [vmem:[%s13438_s1 + $0xa20] sm:$0xff]  }
 0x152   : > { %5578 = vmatmul.mubr.bf16.vlgmr.msra.gmra.mrb[96].mxu0 %v1442_v1  ;;  %5635 = vmatmul.mubr.bf16.vlgmr.msra.gmra.mrb[96].mxu1 %v1444_v5  ;;  %v4907_v24 = vadd.f32 %v8656_v18, %v12055_v42  ;;  %v8687_v49 = vadd.f32 %v8686_v61, %v8685_v10  ;;  %v8688_v56 = vpop.f32.mrb[30].mxu1  ;;  %v13628_v42 = vld [vmem:[#allocation26_spill] sm:$0xff]  ;;  %v13631_v18 = vld [vmem:[#allocation13_spill] sm:$0xff]  ;;  %v9999_v29 = vld [vmem:[%s13438_s1 + $0xaa0] sm:$0xff]  }
 0x153   : > { %9106 = vmatpush3.bf16.msra.mxu0 %v9950_v6  ;;  %9140 = vmatpush3.bf16.msra.mxu1 %v9951_v15  ;;  %v13630_v47 = vpack.c.bf16 %v13628_v42, %v13629_v58  ;;  %v8689_v1 = vpop.f32.mrb[31].mxu1  ;;  %v9961_v5 = vld [vmem:[%s13438_s1 + $0x9d8] sm:$0xff]   ;;  %v563_v16 = vld [vmem:[%s10393_s30 + $0x250] sm:$0xff]  ;;  %v566_v61 = vld [vmem:[%s10393_s30 + $0x268] sm:$0xff]  ;;  %v1189_v60 = vsel %vm1139_vm2, %v1176_v28, %v1188_v33 }
 0x154   : > { %9107 = vmatprep.subr.bf16.mxu0 %v9952_v36  ;;  %9141 = vmatprep.subr.bf16.mxu1 %v9953_v11  ;;  %v12263_v6 = vadd.f32 %v8687_v49, %v4904_v27  ;;  %v8690_v52 = vadd.f32 %v8689_v1, %v8688_v56  ;;  %v9962_v15 = vld [vmem:[%s13438_s1 + $0x918] sm:$0xff]   ;;  %v8657_v11 = vpop.f32.mrb[32].mxu0  ;;  %v1083_v21 = vrot.slane %v563_v16, 2  ;;  %v1200_v27 = vrot.slane %v11868_v32, 3  ;;  %v9966_v58 = vld [vmem:[%s13438_s1 + $0x920] sm:$0xff]   ;;  %v10001_v32 = vld [vmem:[%s13438_s1 + $0xae8] sm:$0xff]  }
 0x155   : > { %5585 = vmatprep.mubr.bf16.mxu0 %v13625_v25  ;;  %5642 = vmatprep.mubr.bf16.mxu1 %v13626_v35  ;;  %v564_v36 = vld [vmem:[%s10393_s30 + $0x258] sm:$0xff]  ;;  %v8658_v25 = vpop.f32.mrb[33].mxu0  ;;  %v1089_v42 = vrot.slane %v566_v61, 2  ;;  %v9971_v61 = vld [vmem:[%s13438_s1 + $0x9a8] sm:$0xff]  }
 0x156   : > { %v12279_v51 = vadd.f32 %v8690_v52, %v4907_v24  ;;  %v8660_v49 = vpop.f32.mrb[34].mxu0 }
 0x157   : > { %9108 = vmatpush3.bf16.msra.mxu0 %v9954_v54  ;;  %9142 = vmatpush3.bf16.msra.mxu1 %v9955_v59  ;;  %v1085_v54 = vrot.slane %v564_v36, 2  ;;  %v9964_v59 = vld [vmem:[%s13438_s1 + $0x960] sm:$0xff]   ;;  %v8661_v52 = vpop.f32.mrb[35].mxu0 }
 0x158   : > { %9109 = vmatprep.subr.bf16.mxu0 %v9956_v8  ;;  %9143 = vmatprep.subr.bf16.mxu1 %v9957_v50  ;;  %v13632_v8 = vrot.slane %v13631_v18, 2  ;;  %v13633_v50 = vld [vmem:[#allocation14_spill] sm:$0xff] }
 0x159   : > { %v13634_v10 = vrot.slane %v13633_v50, 2 }
 0x15a   : > { %5586 = vmatmul.mubr.bf16.gmra.mrb[100].mxu0 %v13627_v34  ;;  %5643 = vmatmul.mubr.bf16.gmra.mrb[100].mxu1 %v13630_v47  ;;  %v1086_v35 = vsel %vm910_vm1, %v13632_v8, %v1085_v54  ;;  %v9967_v47 = vld [vmem:[%s13438_s1 + $0x9a0] sm:$0xff]  }
 0x15b   : > { %9110 = vmatpush3.bf16.msra.mxu0 %v9958_v57  ;;  %9144 = vmatpush3.bf16.msra.mxu1 %v9959_v7  ;;  %v1084_v24 = vsel %vm910_vm1, %v13634_v10, %v1083_v21  ;;  %v9965_v57 = vld [vmem:[%s13438_s1 + $0x9e0] sm:$0xff]   ;;  %v8659_v7 = vadd.f32 %v8658_v25, %v8657_v11  ;;  %v1539_v56 = vpack.c.bf16 %v1085_v54, %v1086_v35  ;;  %v9968_v11 = vld [vmem:[%s13438_s1 + $0x968] sm:$0xff]  }
 0x15c   : > { %9111 = vmatprep.subr.bf16.mxu0 %v9960_v9  ;;  %9145 = vmatprep.subr.bf16.mxu1 %v9961_v5  ;;  %v1538_v34 = vpack.c.bf16 %v1083_v21, %v1084_v24  ;;  %v565_v9 = vld [vmem:[%s10393_s30 + $0x260] sm:$0xff]  ;;  %v8691_v5 = vpop.f32.mrb[32].mxu1  ;;  %v8662_v54 = vadd.f32 %v8661_v52, %v8660_v49  ;;  %v9970_v35 = vld [vmem:[%s13438_s1 + $0x928] sm:$0xff]   ;;  %v9972_v49 = vld [vmem:[%s13438_s1 + $0x970] sm:$0xff]  }
 0x15d   : > { %v4912_v1 = vadd.f32 %v8659_v7, %v12098_v20  ;;  %5593 = vmatprep.mubr.bf16.mxu0 %v1539_v56  ;;  %v1087_v16 = vrot.slane %v565_v9, 2  ;;  %v9969_v20 = vld [vmem:[%s13438_s1 + $0x9e8] sm:$0xff]   ;;  %v9974_v9 = vld [vmem:[%s13438_s1 + $0x930] sm:$0xff]  }
 0x15e   : > { %v13637_v25 = vld [vmem:[#allocation20_spill] sm:$0xff]  ;;  %v4915_v50 = vadd.f32 %v8662_v54, %v12114_v44 }
 0x15f   : > { %9112 = vmatpush3.bf16.msra.mxu0 %v9962_v15  ;;  %9146 = vmatpush3.bf16.msra.mxu1 %v9963_v43  ;;  %v13635_v15 = vld [vmem:[#allocation18_spill] sm:$0xff]  ;;  %v13638_v18 = vrot.slane %v13637_v25, 2 }
 0x160   : > { %9113 = vmatprep.subr.bf16.mxu0 %v9964_v59  ;;  %9147 = vmatprep.subr.bf16.mxu1 %v9965_v57  ;;  %v13636_v43 = vrot.slane %v13635_v15, 2  ;;  %v8692_v59 = vpop.f32.mrb[33].mxu1  ;;  %v9975_v15 = vld [vmem:[%s13438_s1 + $0x9b0] sm:$0xff]   ;;  %v9978_v25 = vld [vmem:[%s13438_s1 + $0x938] sm:$0xff]  }
 0x161   : > { %v1088_v8 = vsel %vm910_vm1, %v13638_v18, %v1087_v16  ;;  %v8693_v10 = vadd.f32 %v8692_v59, %v8691_v5  ;;  %v8694_v24 = vpop.f32.mrb[34].mxu1  ;;  %v12345_v5 = vld [vmem:[%s10393_s30 + $0xd0] sm:$0xff]  ;;  %v12373_v18 = vld [vmem:[%s10393_s30 + $0xb8] sm:$0xff] }
 0x162   : > { %v1090_v36 = vsel %vm910_vm1, %v13636_v43, %v1089_v42  ;;  %5594 = vmatmul.mubr.bf16.gmra.mrb[104].mxu0 %v1538_v34  ;;  %v1540_v57 = vpack.c.bf16 %v1087_v16, %v1088_v8  ;;  %v8695_v7 = vpop.f32.mrb[35].mxu1  ;;  %v12332_v34 = vld [vmem:[%s10393_s30 + $0xa0] sm:$0xff]  ;;  %v1186_v52 = vrot.slane %v12345_v5, 3  ;;  %v12352_v43 = vld [vmem:[%s10393_s30 + $0x58] sm:$0xff]  ;;  %v1180_v8 = vrot.slane %v12373_v18, 3  ;;  %v10002_v5 = vld [vmem:[%s13438_s1 + $0xa28] sm:$0xff]  }
 0x163   : > { %9114 = vmatpush3.bf16.msra.mxu0 %v9966_v58  ;;  %v1541_v21 = vpack.c.bf16 %v1089_v42, %v1090_v36  ;;  %9148 = vmatpush3.bf16.msra.mxu1 %v9967_v47  ;;  %v12329_v56 = vadd.f32 %v8693_v10, %v4912_v1  ;;  %v8696_v44 = vadd.f32 %v8695_v7, %v8694_v24  ;;  %v1174_v42 = vrot.slane %v12332_v34, 3  ;;  %v9973_v47 = vld [vmem:[%s13438_s1 + $0x9f0] sm:$0xff]   ;;  %v9976_v16 = vld [vmem:[%s13438_s1 + $0x978] sm:$0xff]   ;;  %v568_v10 = vld [vmem:[%s10393_s30 + $0x8] sm:$0xf8] }
 0x164   : > { %9115 = vmatprep.subr.bf16.mxu0 %v9968_v11  ;;  %9149 = vmatprep.subr.bf16.mxu1 %v9969_v20  ;;  %v1198_v58 = vrot.slane %v11892_v63, 3  ;;  %v1156_v36 = vrot.slane %v12352_v43, 3  ;;  %v12359_v11 = vld [vmem:[%s10393_s30 + $0x88] sm:$0xff]  ;;  %v12366_v20 = vld [vmem:[%s10393_s30 + $0x50] sm:$0xff]  ;;  %v1161_v24 = vsel %vm1139_vm2, %v1144_v30, %v1160_v26  ;;  %v1143_v7 = vrot.slane %v568_v10, 3  ;;  %v10012_v43 = vld [vmem:[%s13438_s1 + $0xb40] sm:$0xff]  }
 0x165   : > { %5650 = vmatprep.mubr.bf16.mxu1 %v1541_v21  ;;  %v12342_v1 = vadd.f32 %v8696_v44, %v4915_v50  ;;  %v1168_v54 = vrot.slane %v12359_v11, 3  ;;  %v9977_v21 = vld [vmem:[%s13438_s1 + $0x9f8] sm:$0xff]   ;;  %v1153_v59 = vrot.slane %v12366_v20, 3  ;;  %v1192_v50 = vrot.slane %v11955_v48, 3  ;;  %v10004_v63 = vld [vmem:[%s13438_s1 + $0xa70] sm:$0xff]  }
 0x166   : > { %5651 = vmatmul.mubr.bf16.gmra.mrb[104].mxu1 %v1540_v57  ;;  %v570_v57 = vld [vmem:[%s10393_s30 + $0x18] sm:$0xf8]  ;;  %v1165_v44 = vsel %vm1139_vm2, %v1150_v0, %v1164_v22  ;;  %v1185_v10 = vsel %vm1139_vm2, %v1172_v13, %v1184_v41  ;;  %v1187_v17 = vsel %vm1139_vm2, %v1174_v42, %v1186_v52  ;;  %v1199_v23 = vsel %vm1139_vm2, %v1186_v52, %v1198_v58 }
 0x167   : > { %9116 = vmatpush3.bf16.msra.mxu0 %v9970_v35  ;;  %9150 = vmatpush3.bf16.msra.mxu1 %v9971_v61  ;;  %v9979_v35 = vld [vmem:[%s13438_s1 + $0x9b8] sm:$0xff]   ;;  %v567_v61 = vld [vmem:[%s10393_s30] sm:$0xf8] }
 0x168   : > { %9117 = vmatprep.subr.bf16.mxu0 %v9972_v49  ;;  %9151 = vmatprep.subr.bf16.mxu1 %v9973_v47  ;;  %v1149_v49 = vrot.slane %v570_v57, 3  ;;  %v1140_v47 = vrot.slane %v567_v61, 3  ;;  %v1145_v57 = vsel %vm1139_vm2, %v1143_v7, %v1144_v30  ;;  %v13642_v30 = vld [vmem:[#allocation9_spill] sm:$0xff] }
 0x169   : > { %v13643_v7 = vrot.slane %v13642_v30, 3 }
 0x16a   : > { %v1151_v4 = vsel %vm1139_vm2, %v1149_v49, %v1150_v0  ;;  %v9982_v0 = vld [vmem:[%s13438_s1 + $0xa00] sm:$0xff]   ;;  %v8713_v49 = vpop.f32.mrb[36].mxu0 }
 0x16b   : > { %9118 = vmatpush3.bf16.msra.mxu0 %v9974_v9  ;;  %9152 = vmatpush3.bf16.msra.mxu1 %v9975_v15  ;;  %v569_v9 = vld [vmem:[%s10393_s30 + $0x10] sm:$0xf8]  ;;  %v9980_v15 = vld [vmem:[%s13438_s1 + $0xa40] sm:$0xff]  }
 0x16c   : > { %9119 = vmatprep.subr.bf16.mxu0 %v9976_v16  ;;  %9153 = vmatprep.subr.bf16.mxu1 %v9977_v21  ;;  %v1146_v16 = vrot.slane %v569_v9, 3  ;;  %v9981_v21 = vld [vmem:[%s13438_s1 + $0xac0] sm:$0xff]  }
 0x16e   : > { %v1148_v40 = vsel %vm1139_vm2, %v1146_v16, %v13643_v7 }
 0x16f   : > { %9120 = vmatpush3.bf16.msra.mxu0 %v9978_v25  ;;  %9154 = vmatpush3.bf16.msra.mxu1 %v9979_v35  ;;  %v1173_v25 = vsel %vm1139_vm2, %v1160_v26, %v1172_v13  ;;  %v1177_v35 = vsel %vm1139_vm2, %v1164_v22, %v1176_v28  ;;  %v13639_v26 = vld [vmem:[#allocation5_spill] sm:$0xff]  ;;  %v1447_v22 = vpack.c.bf16 %v1161_v24, %v1145_v57  ;;  %v8747_v28 = vpop.f32.mrb[36].mxu1 }
 0x170   : > { %v13640_v61 = vrot.slane %v13639_v26, 3  ;;  %9173 = vmatprep.subr.bf16.mxu0 %v9980_v15  ;;  %v1449_v13 = vpack.c.bf16 %v1165_v44, %v1151_v4  ;;  %9207 = vmatprep.subr.bf16.mxu1 %v9981_v21  ;;  %v9984_v24 = vld [vmem:[%s13438_s1 + $0xa48] sm:$0xff]   ;;  %v1495_v44 = vpack.c.bf16 %v1185_v10, %v1173_v25  ;;  %v1497_v16 = vpack.c.bf16 %v1189_v60, %v1177_v35  ;;  %v8714_v21 = vpop.f32.mrb[37].mxu0  ;;  %v13645_v4 = vld [vmem:[#allocation6_spill] sm:$0xff]  ;;  %v8748_v35 = vpop.f32.mrb[37].mxu1 }
 0x171   : > { %5691 = vmatprep.mubr.bf16.mxu0 %v1447_v22  ;;  %v9985_v57 = vld [vmem:[%s13438_s1 + $0xac8] sm:$0xff]   ;;  %v13646_v26 = vrot.slane %v13645_v4, 3  ;;  %v1183_v25 = vsel %vm1139_vm2, %v1170_v3, %v1182_v45  ;;  %v8715_v10 = vadd.f32 %v8714_v21, %v8713_v49  ;;  %v13647_v60 = vld [vmem:[#allocation22_spill] sm:$0xff]  ;;  %v8750_v7 = vpop.f32.mrb[38].mxu1 }
 0x172   : > { %v1142_v31 = vsel %vm1139_vm2, %v1140_v47, %v13640_v61  ;;  %v13644_v47 = vld [vmem:[#allocation24_spill] sm:$0xff]  ;;  %5748 = vmatprep.mubr.bf16.mxu1 %v1449_v13  ;;  %v13648_v22 = vrot.slane %v13647_v60, 3  ;;  %v9995_v60 = vld [vmem:[%s13438_s1 + $0xa98] sm:$0xff]  }
 0x173   : > { %v1446_v9 = vpack.c.bf16 %v13641_v62, %v1142_v31  ;;  %v1448_v15 = vpack.c.bf16 %v13644_v47, %v1148_v40  ;;  %v1171_v61 = vsel %vm1139_vm2, %v13646_v26, %v1170_v3  ;;  %v9986_v31 = vld [vmem:[%s13438_s1 + $0xa08] sm:$0xff]   ;;  %v8749_v3 = vadd.f32 %v8748_v35, %v8747_v28  ;;  %v8716_v62 = vpop.f32.mrb[38].mxu0  ;;  %v9988_v40 = vld [vmem:[%s13438_s1 + $0xa50] sm:$0xff]  }
 0x174   : > { %v1175_v13 = vsel %vm1139_vm2, %v13648_v22, %v1174_v42  ;;  %v5010_v30 = vadd.f32 %v8715_v10, %v12187_v39  ;;  %v8717_v34 = vpop.f32.mrb[39].mxu0  ;;  %v9989_v42 = vld [vmem:[%s13438_s1 + $0xad0] sm:$0xff]   ;;  %v574_v22 = vld [vmem:[%s10393_s30 + $0x128] sm:$0x1] }
 0x175   : > { %5692 = vmatmul.mubr.bf16.vlgmr.msra.gmra.mrb[108].mxu0 %v1446_v9  ;;  %5749 = vmatmul.mubr.bf16.vlgmr.msra.gmra.mrb[108].mxu1 %v1448_v15  ;;  %v9987_v9 = vld [vmem:[%s13438_s1 + $0xa88] sm:$0xff]   ;;  %v1496_v49 = vpack.c.bf16 %v1187_v17, %v1175_v13  ;;  %v8718_v15 = vadd.f32 %v8717_v34, %v8716_v62  ;;  %v9990_v39 = vld [vmem:[%s13438_s1 + $0xa10] sm:$0xff]   ;;  %v1208_v62 = vrot.slane %v574_v22, 3 }
 0x176   : > { %9174 = vmatpush3.bf16.msra.mxu0 %v9982_v0  ;;  %9208 = vmatpush3.bf16.msra.mxu1 %v9983_v53  ;;  %v1494_v0 = vpack.c.bf16 %v1183_v25, %v1171_v61  ;;  %v12479_v47 = vadd.f32 %v8749_v3, %v5010_v30  ;;  %v8751_v53 = vpop.f32.mrb[39].mxu1  ;;  %v9993_v61 = vld [vmem:[%s13438_s1 + $0xad8] sm:$0xff]   ;;  %v1197_v3 = vsel %vm1139_vm2, %v1184_v41, %v1196_v46 }
 0x177   : > { %9175 = vmatprep.subr.bf16.mxu0 %v9984_v24  ;;  %9209 = vmatprep.subr.bf16.mxu1 %v9985_v57  ;;  %v8752_v28 = vadd.f32 %v8751_v53, %v8750_v7  ;;  %v8719_v24 = vpop.f32.mrb[40].mxu0  ;;  %v9992_v57 = vld [vmem:[%s13438_s1 + $0xa58] sm:$0xff]   ;;  %v8753_v10 = vpop.f32.mrb[40].mxu1  ;;  %v1195_v7 = vsel %vm1139_vm2, %v1182_v45, %v1194_v19  ;;  %v1209_v34 = vsel %vm1139_vm2, %v1196_v46, %v1208_v62 }
 0x178   : > { %5699 = vmatprep.mubr.bf16.mxu0 %v1495_v44  ;;  %5756 = vmatprep.mubr.bf16.mxu1 %v1497_v16  ;;  %v9991_v44 = vld [vmem:[%s13438_s1 + $0xa90] sm:$0xff]   ;;  %v5013_v16 = vadd.f32 %v8718_v15, %v12218_v14  ;;  %v8720_v21 = vpop.f32.mrb[41].mxu0  ;;  %v9994_v14 = vld [vmem:[%s13438_s1 + $0xa18] sm:$0xff]   ;;  %v8754_v17 = vpop.f32.mrb[41].mxu1  ;;  %v1543_v37 = vpack.c.bf16 %v1209_v34, %v1197_v3  ;;  %v12598_v34 = vld [vmem:[%s10393_s30 + $0xe0] sm:$0xff] }
 0x179   : > { %v8721_v4 = vadd.f32 %v8720_v21, %v8719_v24  ;;  %v8722_v26 = vpop.f32.mrb[42].mxu0  ;;  %v8755_v30 = vadd.f32 %v8754_v17, %v8753_v10  ;;  %v575_v15 = vld [vmem:[%s10393_s30 + $0x130] sm:$0x1]  ;;  %v10003_v21 = vld [vmem:[%s13438_s1 + $0xaa8] sm:$0xff]   ;;  %v10008_v17 = vld [vmem:[%s13438_s1 + $0xa78] sm:$0xff]  }
 0x17a   : > { %9176 = vmatpush3.bf16.msra.mxu0 %v9986_v31  ;;  %9210 = vmatpush3.bf16.msra.mxu1 %v9987_v9  ;;  %v12494_v25 = vadd.f32 %v8752_v28, %v5013_v16  ;;  %v8723_v31 = vpop.f32.mrb[43].mxu0  ;;  %v573_v9 = vld [vmem:[%s10393_s30 + $0x120] sm:$0x1] }
 0x17b   : > { %9177 = vmatprep.subr.bf16.mxu0 %v9988_v40  ;;  %9211 = vmatprep.subr.bf16.mxu1 %v9989_v42  ;;  %v5018_v35 = vadd.f32 %v8721_v4, %v12263_v6  ;;  %v8724_v13 = vadd.f32 %v8723_v31, %v8722_v26  ;;  %v9996_v6 = vld [vmem:[%s13438_s1 + $0xa60] sm:$0xff]   ;;  %v1206_v40 = vrot.slane %v573_v9, 3 }
 0x17d   : > { %5700 = vmatmul.mubr.bf16.gmra.mrb[112].mxu0 %v1494_v0  ;;  %5757 = vmatmul.mubr.bf16.gmra.mrb[112].mxu1 %v1496_v49  ;;  %v5021_v41 = vadd.f32 %v8724_v13, %v12279_v51  ;;  %v576_v0 = vld [vmem:[%s10393_s30 + $0x138] sm:$0x1]  ;;  %v12526_v42 = vadd.f32 %v8755_v30, %v5018_v35  ;;  %v1207_v45 = vsel %vm1139_vm2, %v1194_v19, %v1206_v40  ;;  %v8756_v19 = vpop.f32.mrb[42].mxu1 }
 0x17e   : > { %9178 = vmatpush3.bf16.msra.mxu0 %v9990_v39  ;;  %9212 = vmatpush3.bf16.msra.mxu1 %v9991_v44  ;;  %v1201_v51 = vsel %vm1139_vm2, %v1188_v33, %v1200_v27  ;;  %v1212_v49 = vrot.slane %v576_v0, 3  ;;  %v1542_v46 = vpack.c.bf16 %v1207_v45, %v1195_v7  ;;  %v1210_v33 = vrot.slane %v575_v15, 3  ;;  %v10000_v39 = vld [vmem:[%s13438_s1 + $0xa68] sm:$0xff]   ;;  %v8757_v24 = vpop.f32.mrb[43].mxu1  ;;  %v8725_v44 = vpop.f32.mrb[44].mxu0  ;;  %v10010_v30 = vld [vmem:[%s13438_s1 + $0xa38] sm:$0xff]  }
 0x17f   : > { %9179 = vmatprep.subr.bf16.mxu0 %v9992_v57  ;;  %9213 = vmatprep.subr.bf16.mxu1 %v9993_v61  ;;  %v8758_v52 = vadd.f32 %v8757_v24, %v8756_v19  ;;  %v8726_v57 = vpop.f32.mrb[45].mxu0  ;;  %v10005_v61 = vld [vmem:[%s13438_s1 + $0xaf0] sm:$0xff]   ;;  %v8759_v10 = vpop.f32.mrb[44].mxu1  ;;  %v1190_v0 = vrot.slane %v12598_v34, 3  ;;  %v12616_v19 = vld [vmem:[%s10393_s30 + $0x1b8] sm:$0xff]  ;;  %v10029_v34 = vld [vmem:[%s13438_s1 + $0xbe0] sm:$0xff]  }
 0x180   : > { %5707 = vmatprep.mubr.bf16.mxu0 %v1543_v37  ;;  %v1213_v53 = vsel %vm1139_vm2, %v1200_v27, %v1212_v49  ;;  %v1211_v27 = vsel %vm1139_vm2, %v1198_v58, %v1210_v33  ;;  %v8727_v4 = vadd.f32 %v8726_v57, %v8725_v44  ;;  %v8728_v26 = vpop.f32.mrb[46].mxu0  ;;  %v8760_v13 = vpop.f32.mrb[45].mxu1  ;;  %v12602_v37 = vld [vmem:[%s10393_s30 + $0x118] sm:$0xff]  ;;  %v1169_v49 = vsel %vm1139_vm2, %v1156_v36, %v1168_v54  ;;  %v571_v33 = vld [vmem:[%s10393_s30 + $0x20] sm:$0xf8] }
 0x181   : > { %v1545_v28 = vpack.c.bf16 %v1213_v53, %v1201_v51  ;;  %v1544_v16 = vpack.c.bf16 %v1211_v27, %v1199_v23  ;;  %v12569_v58 = vadd.f32 %v8758_v52, %v5021_v41  ;;  %v8729_v31 = vpop.f32.mrb[47].mxu0  ;;  %v8761_v3 = vadd.f32 %v8760_v13, %v8759_v10  ;;  %v8762_v62 = vpop.f32.mrb[46].mxu1  ;;  %v572_v51 = vld [vmem:[%s10393_s30 + $0x28] sm:$0xf8]  ;;  %v579_v24 = vld [vmem:[%s10393_s30 + $0x150] sm:$0xf8] }
 0x182   : > { %9180 = vmatpush3.bf16.msra.mxu0 %v9994_v14  ;;  %9214 = vmatpush3.bf16.msra.mxu1 %v9995_v60  ;;  %v10006_v14 = vld [vmem:[%s13438_s1 + $0xa30] sm:$0xff]   ;;  %v5026_v35 = vadd.f32 %v8727_v4, %v12329_v56  ;;  %v8730_v22 = vadd.f32 %v8729_v31, %v8728_v26  ;;  %v10009_v56 = vld [vmem:[%s13438_s1 + $0xaf8] sm:$0xff]   ;;  %v1204_v45 = vrot.slane %v12602_v37, 3  ;;  %v1155_v15 = vrot.slane %v572_v51, 3  ;;  %v585_v27 = vld [vmem:[%s10393_s30 + $0x180] sm:$0xff] }
 0x183   : > { %9181 = vmatprep.subr.bf16.mxu0 %v9996_v6  ;;  %9215 = vmatprep.subr.bf16.mxu1 %v9997_v12  ;;  %v10007_v60 = vld [vmem:[%s13438_s1 + $0xab0] sm:$0xff]   ;;  %v8763_v6 = vpop.f32.mrb[47].mxu1  ;;  %v1181_v52 = vsel %vm1139_vm2, %v1168_v54, %v1180_v8  ;;  %v1193_v44 = vsel %vm1139_vm2, %v1180_v8, %v1192_v50  ;;  %v1296_v57 = vrot.slane %v579_v24, 3  ;;  %v10016_v13 = vld [vmem:[%s13438_s1 + $0xb48] sm:$0xff]  }
 0x184   : > { %5764 = vmatprep.mubr.bf16.mxu1 %v1545_v28  ;;  %v5029_v9 = vadd.f32 %v8730_v22, %v12342_v1  ;;  %v12591_v7 = vadd.f32 %v8761_v3, %v5026_v35  ;;  %v8764_v40 = vadd.f32 %v8763_v6, %v8762_v62  ;;  %v10196_v12 = vld [vmem:[%s10393_s30 + $0xb0] sm:$0xff]  ;;  %v10011_v1 = vld [vmem:[%s13438_s1 + $0xab8] sm:$0xff]   ;;  %v1316_v28 = vrot.slane %v12616_v19, 3 }
 0x185   : > { %5708 = vmatmul.mubr.bf16.gmra.mrb[116].mxu0 %v1542_v46  ;;  %5765 = vmatmul.mubr.bf16.gmra.mrb[116].mxu1 %v1544_v16  ;;  %v1178_v41 = vrot.slane %v10196_v12, 3  ;;  %v586_v46 = vld [vmem:[%s10393_s30 + $0x188] sm:$0xff]  ;;  %v1157_v16 = vsel %vm1139_vm2, %v1155_v15, %v1156_v36  ;;  %v1499_v10 = vpack.c.bf16 %v1193_v44, %v1181_v52  ;;  %v8815_v35 = vpop.f32.mrb[48].mxu1  ;;  %v10020_v51 = vld [vmem:[%s13438_s1 + $0xb50] sm:$0xff]  }
 0x186   : > { %9216 = vmatpush3.bf16.msra.mxu1 %v9999_v29  ;;  %9182 = vmatpush3.bf16.msra.mxu0 %v9998_v38  ;;  %v580_v38 = vld [vmem:[%s10393_s30 + $0x158] sm:$0xf8]  ;;  %v12613_v29 = vadd.f32 %v8764_v40, %v5029_v9  ;;  %v1300_v23 = vrot.slane %v586_v46, 3  ;;  %v1451_v4 = vpack.c.bf16 %v1169_v49, %v1157_v16  ;;  %v10017_v9 = vld [vmem:[%s13438_s1 + $0xbc8] sm:$0xff]   ;;  %v12692_v15 = vld [vmem:[%s10393_s30 + $0x110] sm:$0xff] }
 0x187   : > { %9183 = vmatprep.subr.bf16.mxu0 %v10000_v39  ;;  %9217 = vmatprep.subr.bf16.mxu1 %v10001_v32  ;;  %v1299_v53 = vrot.slane %v580_v38, 3  ;;  %v1167_v39 = vsel %vm1139_vm2, %v1153_v59, %v1166_v55  ;;  %v1152_v32 = vrot.slane %v571_v33, 3  ;;  %v1191_v3 = vsel %vm1139_vm2, %v1178_v41, %v1190_v0  ;;  %v10019_v12 = vld [vmem:[%s13438_s1 + $0xb88] sm:$0xff]   ;;  %v12700_v33 = vld [vmem:[%s10393_s30 + $0x218] sm:$0xff]  ;;  %v10022_v16 = vld [vmem:[%s13438_s1 + $0xb10] sm:$0xff]  }
 0x188   : > { %v1317_v11 = vsel %vm1139_vm2, %v1300_v23, %v1316_v28  ;;  %5805 = vmatprep.mubr.bf16.mxu0 %v1451_v4  ;;  %v1340_v52 = vrot.slane %v12700_v33, 3  ;;  %v10023_v4 = vld [vmem:[%s13438_s1 + $0xb90] sm:$0xff]   ;;  %v10032_v33 = vld [vmem:[%s13438_s1 + $0xb68] sm:$0xff]  }
 0x189   : > { %v1154_v54 = vsel %vm1139_vm2, %v1152_v32, %v1153_v59  ;;  %v10014_v59 = vld [vmem:[%s13438_s1 + $0xb00] sm:$0xff]  }
 0x18a   : > { %9184 = vmatpush3.bf16.msra.mxu0 %v10002_v5  ;;  %9218 = vmatpush3.bf16.msra.mxu1 %v10003_v21  ;;  %v12628_v5 = vld [vmem:[%s10393_s30 + $0x1b0] sm:$0xff]  ;;  %v1301_v21 = vsel %vm1139_vm2, %v1299_v53, %v1300_v23  ;;  %v1450_v8 = vpack.c.bf16 %v1167_v39, %v1154_v54  ;;  %v598_v23 = vld [vmem:[%s10393_s30 + $0x1e8] sm:$0xff] }
 0x18b   : > { %9185 = vmatprep.subr.bf16.mxu0 %v10004_v63  ;;  %9219 = vmatprep.subr.bf16.mxu1 %v10005_v61  ;;  %v1297_v63 = vrot.slane %v585_v27, 3  ;;  %v1314_v18 = vrot.slane %v12628_v5, 3  ;;  %v1453_v36 = vpack.c.bf16 %v1317_v11, %v1301_v21  ;;  %v10013_v61 = vld [vmem:[%s13438_s1 + $0xbc0] sm:$0xff]   ;;  %v10021_v53 = vld [vmem:[%s13438_s1 + $0xbd0] sm:$0xff]   ;;  %v1328_v27 = vrot.slane %v598_v23, 3 }
 0x18c   : > { %v12718_v11 = vld [vmem:[%s10393_s30 + $0x210] sm:$0xff] }
 0x18d   : > { %v1298_v26 = vsel %vm1139_vm2, %v1296_v57, %v1297_v63  ;;  %v1315_v20 = vsel %vm1139_vm2, %v1297_v63, %v1314_v18  ;;  %5862 = vmatprep.mubr.bf16.mxu1 %v1453_v36  ;;  %v1329_v57 = vsel %vm1139_vm2, %v1316_v28, %v1328_v27  ;;  %v1341_v63 = vsel %vm1139_vm2, %v1328_v27, %v1340_v52 }
 0x18e   : > { %9186 = vmatpush3.bf16.msra.mxu0 %v10006_v14  ;;  %9220 = vmatpush3.bf16.msra.mxu1 %v10007_v60  ;;  %v8781_v14 = vpop.f32.mrb[48].mxu0  ;;  %v1452_v31 = vpack.c.bf16 %v1315_v20, %v1298_v26  ;;  %v10015_v60 = vld [vmem:[%s13438_s1 + $0xb80] sm:$0xff]   ;;  %v1501_v26 = vpack.c.bf16 %v1341_v63, %v1329_v57  ;;  %v1338_v28 = vrot.slane %v12718_v11, 3  ;;  %v10035_v11 = vld [vmem:[%s13438_s1 + $0xba8] sm:$0xff]  }
 0x18f   : > { %9187 = vmatprep.subr.bf16.mxu0 %v10008_v17  ;;  %9221 = vmatprep.subr.bf16.mxu1 %v10009_v56  ;;  %v8782_v22 = vpop.f32.mrb[49].mxu0  ;;  %v1179_v17 = vsel %vm1139_vm2, %v1166_v55, %v1178_v41  ;;  %v8816_v56 = vpop.f32.mrb[49].mxu1 }
 0x190   : > { %v8783_v62 = vadd.f32 %v8782_v22, %v8781_v14  ;;  %v8817_v6 = vadd.f32 %v8816_v56, %v8815_v35  ;;  %v8818_v40 = vpop.f32.mrb[50].mxu1  ;;  %v1498_v41 = vpack.c.bf16 %v1191_v3, %v1179_v17  ;;  %v578_v3 = vld [vmem:[%s10393_s30 + $0x148] sm:$0x1] }
 0x191   : > { %v8819_v46 = vpop.f32.mrb[51].mxu1 }
 0x192   : > { %9188 = vmatpush3.bf16.msra.mxu0 %v10010_v30  ;;  %9222 = vmatpush3.bf16.msra.mxu1 %v10011_v1  ;;  %v8784_v30 = vpop.f32.mrb[50].mxu0  ;;  %v5124_v55 = vadd.f32 %v8783_v62, %v12479_v47  ;;  %v1202_v47 = vrot.slane %v12692_v15, 3  ;;  %v8820_v39 = vadd.f32 %v8819_v46, %v8818_v40  ;;  %v8821_v24 = vpop.f32.mrb[52].mxu1  ;;  %v577_v62 = vld [vmem:[%s10393_s30 + $0x140] sm:$0x1] }
 0x193   : > { %9241 = vmatprep.subr.bf16.mxu0 %v10012_v43  ;;  %9275 = vmatprep.subr.bf16.mxu1 %v10013_v61  ;;  %v8785_v1 = vpop.f32.mrb[51].mxu0 }
 0x194   : > { %v12689_v49 = vadd.f32 %v8817_v6, %v5124_v55  ;;  %v8786_v38 = vadd.f32 %v8785_v1, %v8784_v30  ;;  %v8787_v32 = vpop.f32.mrb[52].mxu0  ;;  %v1205_v6 = vsel %vm1139_vm2, %v1192_v50, %v1204_v45  ;;  %v1216_v30 = vrot.slane %v578_v3, 3 }
 0x195   : > { %5806 = vmatmul.mubr.bf16.vlgmr.msra.gmra.mrb[120].mxu0 %v1450_v8  ;;  %5863 = vmatmul.mubr.bf16.vlgmr.msra.gmra.mrb[120].mxu1 %v1452_v31  ;;  %v8788_v21 = vpop.f32.mrb[53].mxu0  ;;  %v8822_v8 = vpop.f32.mrb[53].mxu1  ;;  %v10025_v31 = vld [vmem:[%s13438_s1 + $0xbd8] sm:$0xff]   ;;  %v1214_v55 = vrot.slane %v577_v62, 3 }
 0x196   : > { %9242 = vmatpush3.bf16.msra.mxu0 %v10014_v59  ;;  %5813 = vmatprep.mubr.bf16.mxu0 %v1499_v10  ;;  %v5127_v44 = vadd.f32 %v8786_v38, %v12494_v25  ;;  %v597_v25 = vld [vmem:[%s10393_s30 + $0x1e0] sm:$0xff]  ;;  %v8789_v43 = vadd.f32 %v8788_v21, %v8787_v32  ;;  %v8790_v36 = vpop.f32.mrb[54].mxu0  ;;  %v8823_v61 = vadd.f32 %v8822_v8, %v8821_v24  ;;  %v10024_v10 = vld [vmem:[%s13438_s1 + $0xb58] sm:$0xff]   ;;  %v8824_v22 = vpop.f32.mrb[54].mxu1  ;;  %v615_v24 = vld [vmem:[%s10393_s30 + $0x270] sm:$0x1] }
 0x197   : > { %9276 = vmatpush3.bf16.msra.mxu1 %v10015_v60  ;;  %9243 = vmatprep.subr.bf16.mxu0 %v10016_v13  ;;  %v1326_v19 = vrot.slane %v597_v25, 3  ;;  %v8791_v20 = vpop.f32.mrb[55].mxu0  ;;  %v8825_v5 = vpop.f32.mrb[55].mxu1  ;;  %v1217_v48 = vsel %vm1139_vm2, %v1204_v45, %v1216_v30  ;;  %v1215_v50 = vsel %vm1139_vm2, %v1202_v47, %v1214_v55  ;;  %v10030_v45 = vld [vmem:[%s13438_s1 + $0xb20] sm:$0xff]   ;;  %v1362_v57 = vrot.slane %v615_v24, 3 }
 0x198   : > { %9277 = vmatprep.subr.bf16.mxu1 %v10017_v9  ;;  %v12720_v54 = vadd.f32 %v8820_v39, %v5127_v44  ;;  %v5132_v14 = vadd.f32 %v8789_v43, %v12526_v42  ;;  %5870 = vmatprep.mubr.bf16.mxu1 %v1501_v26  ;;  %v8792_v60 = vadd.f32 %v8791_v20, %v8790_v36  ;;  %v10026_v42 = vld [vmem:[%s13438_s1 + $0xb18] sm:$0xff]   ;;  %v10031_v39 = vld [vmem:[%s13438_s1 + $0xba0] sm:$0xff]   ;;  %v8827_v27 = vpop.f32.mrb[56].mxu1  ;;  %v10033_v36 = vld [vmem:[%s13438_s1 + $0xbe8] sm:$0xff]  }
 0x199   : > { %v1327_v59 = vsel %vm1139_vm2, %v1314_v18, %v1326_v19  ;;  %v1339_v35 = vsel %vm1139_vm2, %v1326_v19, %v1338_v28  ;;  %v10027_v18 = vld [vmem:[%s13438_s1 + $0xb98] sm:$0xff]   ;;  %v8826_v9 = vadd.f32 %v8825_v5, %v8824_v22  ;;  %v609_v32 = vld [vmem:[%s10393_s30 + $0x240] sm:$0xff]  ;;  %v10034_v19 = vld [vmem:[%s13438_s1 + $0xb28] sm:$0xff]  }
 0x19a   : > { %9244 = vmatpush3.bf16.msra.mxu0 %v10018_v2  ;;  %v1500_v13 = vpack.c.bf16 %v1339_v35, %v1327_v59  ;;  %v12739_v17 = vadd.f32 %v8823_v61, %v5132_v14  ;;  %v5135_v56 = vadd.f32 %v8792_v60, %v12569_v58  ;;  %v1203_v2 = vsel %vm1139_vm2, %v1190_v0, %v1202_v47  ;;  %v10028_v58 = vld [vmem:[%s13438_s1 + $0xb60] sm:$0xff]   ;;  %v610_v0 = vld [vmem:[%s10393_s30 + $0x248] sm:$0xff]  ;;  %v10036_v20 = vld [vmem:[%s13438_s1 + $0xb70] sm:$0xff]  }
 0x19b   : > { %9278 = vmatpush3.bf16.msra.mxu1 %v10019_v12  ;;  %9245 = vmatprep.subr.bf16.mxu0 %v10020_v51  ;;  %v8793_v12 = vpop.f32.mrb[56].mxu0  ;;  %v1547_v51 = vpack.c.bf16 %v1217_v48, %v1205_v6  ;;  %v1546_v38 = vpack.c.bf16 %v1215_v50, %v1203_v2  ;;  %v1352_v46 = vrot.slane %v610_v0, 3  ;;  %v1350_v21 = vrot.slane %v609_v32, 3  ;;  %v10038_v35 = vld [vmem:[%s13438_s1 + $0xb30] sm:$0xff]   ;;  %v10040_v60 = vld [vmem:[%s13438_s1 + $0xb78] sm:$0xff]   ;;  %v590_v2 = vld [vmem:[%s10393_s30 + $0x1a8] sm:$0xff] }
 0x19c   : > { %9279 = vmatprep.subr.bf16.mxu1 %v10021_v53  ;;  %v12760_v40 = vadd.f32 %v8826_v9, %v5135_v56  ;;  %v8794_v1 = vpop.f32.mrb[57].mxu0  ;;  %v10041_v22 = vld [vmem:[%s13438_s1 + $0xbf8] sm:$0xff]   ;;  %v582_v5 = vld [vmem:[%s10393_s30 + $0x168] sm:$0xf8]  ;;  %v1312_v48 = vrot.slane %v590_v2, 3 }
 0x19d   : > { %5814 = vmatmul.mubr.bf16.gmra.mrb[124].mxu0 %v1498_v41  ;;  %5871 = vmatmul.mubr.bf16.gmra.mrb[124].mxu1 %v1500_v13  ;;  %v616_v41 = vld [vmem:[%s10393_s30 + $0x278] sm:$0x1]  ;;  %v8795_v15 = vadd.f32 %v8794_v1, %v8793_v12  ;;  %v8796_v47 = vpop.f32.mrb[58].mxu0  ;;  %v1353_v53 = vsel %vm1139_vm2, %v1340_v52, %v1352_v46  ;;  %v1351_v25 = vsel %vm1139_vm2, %v1338_v28, %v1350_v21  ;;  %v594_v56 = vld [vmem:[%s10393_s30 + $0x1c8] sm:$0xff]  ;;  %v1305_v9 = vrot.slane %v582_v5, 3  ;;  %v593_v1 = vld [vmem:[%s10393_s30 + $0x1c0] sm:$0xff] }
 0x19e   : > { %9246 = vmatpush3.bf16.msra.mxu0 %v10022_v16  ;;  %v1364_v37 = vrot.slane %v616_v41, 3  ;;  %5821 = vmatprep.mubr.bf16.mxu0 %v1547_v51  ;;  %v8797_v44 = vpop.f32.mrb[59].mxu0  ;;  %v1363_v43 = vsel %vm1139_vm2, %v1350_v21, %v1362_v57  ;;  %v10042_v13 = vld [vmem:[%s13438_s1 + $0xb38] sm:$0xff]   ;;  %v1320_v55 = vrot.slane %v594_v56, 3  ;;  %v581_v50 = vld [vmem:[%s10393_s30 + $0x160] sm:$0xf8] }
 0x19f   : > { %9280 = vmatpush3.bf16.msra.mxu1 %v10023_v4  ;;  %9247 = vmatprep.subr.bf16.mxu0 %v10024_v10  ;;  %v5140_v63 = vadd.f32 %v8795_v15, %v12591_v7  ;;  %v8798_v52 = vadd.f32 %v8797_v44, %v8796_v47  ;;  %v8828_v4 = vpop.f32.mrb[57].mxu1  ;;  %v1548_v26 = vpack.c.bf16 %v1363_v43, %v1351_v25  ;;  %v584_v30 = vld [vmem:[%s10393_s30 + $0x178] sm:$0xf8]  ;;  %v587_v41 = vld [vmem:[%s10393_s30 + $0x190] sm:$0xff]  ;;  %v1302_v51 = vrot.slane %v581_v50, 3  ;;  %v589_v47 = vld [vmem:[%s10393_s30 + $0x1a0] sm:$0xff] }
 0x1a0   : > { %9281 = vmatprep.subr.bf16.mxu1 %v10025_v31  ;;  %v1365_v23 = vsel %vm1139_vm2, %v1352_v46, %v1364_v37  ;;  %v8829_v7 = vadd.f32 %v8828_v4, %v8827_v27  ;;  %v8830_v8 = vpop.f32.mrb[58].mxu1  ;;  %v10039_v31 = vld [vmem:[%s13438_s1 + $0xbb0] sm:$0xff]   ;;  %v1311_v12 = vrot.slane %v584_v30, 3  ;;  %v1318_v15 = vrot.slane %v593_v1, 3  ;;  %v602_v21 = vld [vmem:[%s10393_s30 + $0x208] sm:$0xff]  ;;  %v12861_v57 = vld [vmem:[%s10393_s30 + $0x238] sm:$0xff] }
 0x1a1   : > { %v1549_v16 = vpack.c.bf16 %v1365_v23, %v1353_v53  ;;  %v5143_v61 = vadd.f32 %v8798_v52, %v12613_v29  ;;  %v8831_v10 = vpop.f32.mrb[59].mxu1  ;;  %v10037_v29 = vld [vmem:[%s13438_s1 + $0xbf0] sm:$0xff]   ;;  %v600_v23 = vld [vmem:[%s10393_s30 + $0x1f8] sm:$0xff]  ;;  %v1309_v44 = vrot.slane %v589_v47, 3  ;;  %v614_v56 = vld [vmem:[%s10393_s30 + $0x268] sm:$0xff] }
 0x1a2   : > { %9248 = vmatpush3.bf16.msra.mxu0 %v10026_v42  ;;  %v12803_v28 = vadd.f32 %v8829_v7, %v5140_v63  ;;  %v8832_v14 = vadd.f32 %v8831_v10, %v8830_v8  ;;  %v10043_v42 = vld [vmem:[%s13438_s1 + $0xbb8] sm:$0xff]   ;;  %v1313_v37 = vsel %vm1139_vm2, %v1311_v12, %v1312_v48  ;;  %v12850_v53 = vld [vmem:[%s10393_s30 + $0x1d0] sm:$0xff]  ;;  %v617_v50 = vld [vmem:[%s10393_s30 + $0x280] sm:$0x1] }
 0x1a3   : > { %9282 = vmatpush3.bf16.msra.mxu1 %v10027_v18  ;;  %9249 = vmatprep.subr.bf16.mxu0 %v10028_v58  ;;  %v588_v18 = vld [vmem:[%s10393_s30 + $0x198] sm:$0xff]  ;;  %v1322_v25 = vrot.slane %v12850_v53, 3  ;;  %v599_v43 = vld [vmem:[%s10393_s30 + $0x1f0] sm:$0xff] }
 0x1a4   : > { %9283 = vmatprep.subr.bf16.mxu1 %v10029_v34  ;;  %5878 = vmatprep.mubr.bf16.mxu1 %v1549_v16  ;;  %v12811_v59 = vadd.f32 %v8832_v14, %v5143_v61  ;;  %v1306_v6 = vrot.slane %v588_v18, 3  ;;  %v596_v58 = vld [vmem:[%s10393_s30 + $0x1d8] sm:$0xff]  ;;  %v12857_v16 = vld [vmem:[%s10393_s30 + $0x228] sm:$0xff]  ;;  %v1332_v61 = vrot.slane %v600_v23, 3  ;;  %v12880_v14 = vld [vmem:[%s10393_s30 + $0x230] sm:$0xff]  ;;  %v1360_v23 = vrot.slane %v614_v56, 3 }
 0x1a5   : > { %5822 = vmatmul.mubr.bf16.gmra.mrb[128].mxu0 %v1546_v38  ;;  %5879 = vmatmul.mubr.bf16.gmra.mrb[128].mxu1 %v1548_v26  ;;  %v12833_v3 = vpop.f32.mrb[60].mxu0  ;;  %v12835_v62 = vpop.f32.mrb[60].mxu1  ;;  %v1324_v0 = vrot.slane %v596_v58, 3  ;;  %v583_v38 = vld [vmem:[%s10393_s30 + $0x170] sm:$0xf8]  ;;  %v1344_v10 = vrot.slane %v12857_v16, 3 }
 0x1a6   : > { %9250 = vmatpush3.bf16.msra.mxu0 %v10030_v45  ;;  %v1307_v34 = vsel %vm1139_vm2, %v1305_v9, %v1306_v6  ;;  %v1321_v46 = vsel %vm1139_vm2, %v1306_v6, %v1320_v55  ;;  %v1303_v45 = vrot.slane %v587_v41, 3  ;;  %v1308_v27 = vrot.slane %v583_v38, 3  ;;  %v12863_v63 = vpop.f32.mrb[61].mxu1  ;;  %v620_v9 = vld [vmem:[%s10393_s30 + $0x298] sm:$0x1]  ;;  %v611_v6 = vld [vmem:[%s10393_s30 + $0x250] sm:$0xff] }
 0x1a7   : > { %9284 = vmatpush3.bf16.msra.mxu1 %v10031_v39  ;;  %9251 = vmatprep.subr.bf16.mxu0 %v10032_v33  ;;  %v12853_v39 = vpop.f32.mrb[61].mxu0  ;;  %v1455_v32 = vpack.c.bf16 %v1321_v46, %v1307_v34  ;;  %v1325_v24 = vsel %vm1139_vm2, %v1312_v48, %v1324_v0  ;;  %v12874_v8 = vpop.f32.mrb[62].mxu1  ;;  %v1345_v5 = vsel %vm1139_vm2, %v1332_v61, %v1344_v10  ;;  %v1346_v38 = vrot.slane %v12880_v14, 3  ;;  %v619_v46 = vld [vmem:[%s10393_s30 + $0x290] sm:$0x1] }
 0x1a8   : > { %9285 = vmatprep.subr.bf16.mxu1 %v10033_v36  ;;  %v1457_v33 = vpack.c.bf16 %v1325_v24, %v1313_v37  ;;  %v1304_v52 = vsel %vm1139_vm2, %v1302_v51, %v1303_v45  ;;  %v1319_v4 = vsel %vm1139_vm2, %v1303_v45, %v1318_v15  ;;  %v12870_v36 = vld [vmem:[%s10393_s30 + $0x220] sm:$0xff]  ;;  %v12872_v7 = vpop.f32.mrb[62].mxu0  ;;  %v8887_v34 = vpop.f32.mrb[63].mxu1  ;;  %v1372_v16 = vrot.slane %v620_v9, 3 }
 0x1a9   : > { %5919 = vmatprep.mubr.bf16.mxu0 %v1455_v32  ;;  %v1454_v26 = vpack.c.bf16 %v1319_v4, %v1304_v52  ;;  %v1342_v18 = vrot.slane %v12870_v36, 3  ;;  %v8853_v30 = vpop.f32.mrb[63].mxu0 }
 0x1aa   : > { %9252 = vmatpush3.bf16.msra.mxu0 %v10034_v19  ;;  %v1310_v19 = vsel %vm1139_vm2, %v1308_v27, %v1309_v44  ;;  %5976 = vmatprep.mubr.bf16.mxu1 %v1457_v33 }
 0x1ab   : > { %9286 = vmatpush3.bf16.msra.mxu1 %v10035_v11  ;;  %9253 = vmatprep.subr.bf16.mxu0 %v10036_v20  ;;  %v601_v11 = vld [vmem:[%s10393_s30 + $0x200] sm:$0xff]  ;;  %v1323_v20 = vsel %vm1139_vm2, %v1309_v44, %v1322_v25 }
 0x1ac   : > { %9287 = vmatprep.subr.bf16.mxu1 %v10037_v29  ;;  %v1336_v29 = vrot.slane %v602_v21, 3  ;;  %v1334_v51 = vrot.slane %v601_v11, 3  ;;  %v1354_v21 = vrot.slane %v611_v6, 3 }
 0x1ad   : > { %v8889_v45 = vpop.f32.mrb[64].mxu1 }
 0x1ae   : > { %9254 = vmatpush3.bf16.msra.mxu0 %v10038_v35  ;;  %v1348_v35 = vrot.slane %v12861_v57, 3  ;;  %v1337_v58 = vsel %vm1139_vm2, %v1324_v0, %v1336_v29  ;;  %v8890_v24 = vpop.f32.mrb[65].mxu1  ;;  %v1335_v27 = vsel %vm1139_vm2, %v1322_v25, %v1334_v51  ;;  %v1347_v44 = vsel %vm1139_vm2, %v1334_v51, %v1346_v38 }
 0x1af   : > { %9288 = vmatpush3.bf16.msra.mxu1 %v10039_v31  ;;  %9255 = vmatprep.subr.bf16.mxu0 %v10040_v60  ;;  %v1330_v31 = vrot.slane %v599_v43, 3  ;;  %v612_v60 = vld [vmem:[%s10393_s30 + $0x258] sm:$0xff]  ;;  %v8892_v33 = vpop.f32.mrb[66].mxu1  ;;  %v1504_v52 = vpack.c.bf16 %v1347_v44, %v1335_v27  ;;  %v1355_v11 = vsel %vm1139_vm2, %v1342_v18, %v1354_v21  ;;  %v1366_v25 = vrot.slane %v617_v50, 3 }
 0x1b0   : > { %9289 = vmatprep.subr.bf16.mxu1 %v10041_v22  ;;  %v618_v22 = vld [vmem:[%s10393_s30 + $0x288] sm:$0x1]  ;;  %v1349_v12 = vsel %vm1139_vm2, %v1336_v29, %v1348_v35  ;;  %v1356_v47 = vrot.slane %v612_v60, 3  ;;  %v1361_v36 = vsel %vm1139_vm2, %v1348_v35, %v1360_v23  ;;  %v1370_v29 = vrot.slane %v619_v46, 3 }
 0x1b1   : > { %v1331_v48 = vsel %vm1139_vm2, %v1318_v15, %v1330_v31  ;;  %v1505_v41 = vpack.c.bf16 %v1349_v12, %v1337_v58  ;;  %v1343_v1 = vsel %vm1139_vm2, %v1330_v31, %v1342_v18  ;;  %v1368_v53 = vrot.slane %v618_v22, 3  ;;  %v613_v15 = vld [vmem:[%s10393_s30 + $0x260] sm:$0xff]  ;;  %s10215_s30 = smov 64  }
 0x1b2   : > { %9256 = vmatpush3.bf16.msra.mxu0 %v10042_v13  ;;  %v1456_v13 = vpack.c.bf16 %v1323_v20, %v1310_v19  ;;  %v1502_v0 = vpack.c.bf16 %v1343_v1, %v1331_v48  ;;  %v1357_v4 = vsel %vm1139_vm2, %v1344_v10, %v1356_v47  ;;  %v1358_v20 = vrot.slane %v613_v15, 3 }
 0x1b3   : > { %9290 = vmatpush3.bf16.msra.mxu1 %v10043_v42  ;;  %v1333_v42 = vsel %vm1139_vm2, %v1320_v55, %v1332_v61  ;;  %v8855_v55 = vpop.f32.mrb[64].mxu0  ;;  %v1369_v43 = vsel %vm1139_vm2, %v1356_v47, %v1368_v53  ;;  %v1373_v61 = vsel %vm1139_vm2, %v1360_v23, %v1372_v16  ;;  %v8851_v31 = vadd.f32 %v12853_v39, %v12833_v3 }
 0x1b4   : > { %v1503_v2 = vpack.c.bf16 %v1345_v5, %v1333_v42  ;;  %v8856_v37 = vpop.f32.mrb[65].mxu0  ;;  %v1551_v19 = vpack.c.bf16 %v1369_v43, %v1357_v4  ;;  %v1553_v14 = vpack.c.bf16 %v1373_v61, %v1361_v36  ;;  %v1367_v10 = vsel %vm1139_vm2, %v1354_v21, %v1366_v25 }
 0x1b5   : > { %5920 = vmatmul.mubr.bf16.vlgmr.msra.gmra.mrb[132].mxu0 %v1454_v26  ;;  %v8858_v32 = vpop.f32.mrb[66].mxu0  ;;  %v8893_v26 = vpop.f32.mrb[67].mxu1  ;;  %v8885_v60 = vadd.f32 %v12863_v63, %v12835_v62  ;;  %v8854_v35 = vadd.f32 %v8853_v30, %v12872_v7  ;;  %v8888_v22 = vadd.f32 %v8887_v34, %v12874_v8  ;;  %v1550_v42 = vpack.c.bf16 %v1367_v10, %v1355_v11 }
 0x1b6   : > { %5977 = vmatmul.mubr.bf16.vlgmr.msra.gmra.mrb[132].mxu1 %v1456_v13  ;;  %5927 = vmatprep.mubr.bf16.mxu0 %v1503_v2  ;;  %v8859_v57 = vpop.f32.mrb[67].mxu0  ;;  %v1359_v5 = vsel %vm1139_vm2, %v1346_v38, %v1358_v20  ;;  %v5238_v18 = vadd.f32 %v8851_v31, %v12689_v49  ;;  %v1371_v3 = vsel %vm1139_vm2, %v1358_v20, %v1370_v29 }
 0x1b7   : > { %5984 = vmatprep.mubr.bf16.mxu1 %v1505_v41  ;;  %v8861_v13 = vpop.f32.mrb[68].mxu0  ;;  %v5241_v39 = vadd.f32 %v8854_v35, %v12720_v54  ;;  %v8857_v9 = vadd.f32 %v8856_v37, %v8855_v55  ;;  %v8860_v6 = vadd.f32 %v8859_v57, %v8858_v32  ;;  %v8891_v7 = vadd.f32 %v8890_v24, %v8889_v45 }
 0x1b8   : > { %v8862_v56 = vpop.f32.mrb[69].mxu0  ;;  %v5295_v63 = vadd.f32 %v8885_v60, %v5238_v18  ;;  %v8894_v8 = vadd.f32 %v8893_v26, %v8892_v33  ;;  %v1552_v34 = vpack.c.bf16 %v1371_v3, %v1359_v5 }
 0x1b9   : > { %v8864_v62 = vpop.f32.mrb[70].mxu0  ;;  %v8863_v30 = vadd.f32 %v8862_v56, %v8861_v13  ;;  %v5298_v58 = vadd.f32 %v8888_v22, %v5241_v39  ;;  %v5246_v12 = vadd.f32 %v8857_v9, %v12739_v17  ;;  %v5249_v49 = vadd.f32 %v8860_v6, %v12760_v40  ;;  %v8895_v48 = vpop.f32.mrb[68].mxu1 }
 0x1ba   : > { %v8865_v2 = vpop.f32.mrb[71].mxu0  ;;  %v8896_v54 = vpop.f32.mrb[69].mxu1 }
 0x1bb   : > { %v8866_v50 = vadd.f32 %v8865_v2, %v8864_v62  ;;  %v5254_v41 = vadd.f32 %v8863_v30, %v12803_v28  ;;  %v5303_v55 = vadd.f32 %v8891_v7, %v5246_v12  ;;  %v5306_v1 = vadd.f32 %v8894_v8, %v5249_v49  ;;  %v8898_v46 = vpop.f32.mrb[70].mxu1 }
 0x1bc   : > { %v8897_v38 = vadd.f32 %v8896_v54, %v8895_v48  ;;  %v8899_v37 = vpop.f32.mrb[71].mxu1 }
 0x1bd   : > { %5928 = vmatmul.mubr.bf16.gmra.mrb[136].mxu0 %v1502_v0  ;;  %v5257_v51 = vadd.f32 %v8866_v50, %v12811_v59  ;;  %v8900_v0 = vadd.f32 %v8899_v37, %v8898_v46 }
 0x1be   : > { %5935 = vmatprep.mubr.bf16.mxu0 %v1551_v19  ;;  %5985 = vmatmul.mubr.bf16.gmra.mrb[136].mxu1 %v1504_v52  ;;  %v5311_v45 = vadd.f32 %v8897_v38, %v5254_v41 }
 0x1bf   : > { %5992 = vmatprep.mubr.bf16.mxu1 %v1553_v14  ;;  %v5314_v17 = vadd.f32 %v8900_v0, %v5257_v51 }
 0x1c5   : > { %5936 = vmatmul.mubr.bf16.gmra.mrb[140].mxu0 %v1550_v42 }
 0x1c6   : > { %5993 = vmatmul.mubr.bf16.gmra.mrb[140].mxu1 %v1552_v34 }
 0x1e4   : > { %v8917_v47 = vpop.f32.mrb[72].mxu0  ;;  %v8951_v40 = vpop.f32.mrb[72].mxu1 }
 0x1e5   : > { %v8918_v53 = vpop.f32.mrb[73].mxu0  ;;  %v8952_v23 = vpop.f32.mrb[73].mxu1 }
 0x1e6   : > { %v8919_v15 = vadd.f32 %v8918_v53, %v8917_v47  ;;  %v8953_v32 = vadd.f32 %v8952_v23, %v8951_v40  ;;  %v8920_v28 = vpop.f32.mrb[74].mxu0  ;;  %v8954_v24 = vpop.f32.mrb[74].mxu1 }
 0x1e7   : > { %v8921_v27 = vpop.f32.mrb[75].mxu0  ;;  %v8955_v44 = vpop.f32.mrb[75].mxu1 }
 0x1e8   : > { %v5352_v16 = vadd.f32 %v8919_v15, %v5295_v63  ;;  %v8922_v59 = vadd.f32 %v8921_v27, %v8920_v28  ;;  %v8956_v21 = vadd.f32 %v8955_v44, %v8954_v24 }
 0x1ea   : > { %v5409_v57 = vadd.f32 %v8953_v32, %v5352_v16  ;;  %v5355_v33 = vadd.f32 %v8922_v59, %v5298_v58 }
 0x1ec   : > { %v5412_v52 = vadd.f32 %v8956_v21, %v5355_v33  ;;  %v8923_v4 = vpop.f32.mrb[76].mxu0  ;;  %v8957_v43 = vpop.f32.mrb[76].mxu1 }
 0x1ed   : > { %v8924_v36 = vpop.f32.mrb[77].mxu0  ;;  %v8958_v26 = vpop.f32.mrb[77].mxu1 }
 0x1ee   : > { %v8925_v19 = vadd.f32 %v8924_v36, %v8923_v4  ;;  %v8926_v61 = vpop.f32.mrb[78].mxu0  ;;  %v8959_v11 = vadd.f32 %v8958_v26, %v8957_v43  ;;  %v8960_v25 = vpop.f32.mrb[78].mxu1 }
 0x1ef   : > { %v8927_v14 = vpop.f32.mrb[79].mxu0  ;;  %v8961_v20 = vpop.f32.mrb[79].mxu1 }
 0x1f0   : > { %v5360_v29 = vadd.f32 %v8925_v19, %v5303_v55  ;;  %v8928_v31 = vadd.f32 %v8927_v14, %v8926_v61  ;;  %v8962_v10 = vadd.f32 %v8961_v20, %v8960_v25 }
 0x1f2   : > { %v5363_v60 = vadd.f32 %v8928_v31, %v5306_v1  ;;  %v5417_v35 = vadd.f32 %v8959_v11, %v5360_v29 }
 0x1f4   : > { %v5420_v22 = vadd.f32 %v8962_v10, %v5363_v60  ;;  %v8929_v13 = vpop.f32.mrb[80].mxu0 }
 0x1f5   : > { %v8930_v42 = vpop.f32.mrb[81].mxu0 }
 0x1f6   : > { %v8931_v5 = vadd.f32 %v8930_v42, %v8929_v13  ;;  %v8932_v18 = vpop.f32.mrb[82].mxu0  ;;  %v10044_v13 = vld [vmem:[%s13440_s3 + $0x40] sm:$0xff]  }
 0x1f7   : > { %v8933_v56 = vpop.f32.mrb[83].mxu0  ;;  %v10045_v42 = vld [vmem:[%s13440_s3] sm:$0xff]   ;;  %9309 = vmatprep.subr.bf16.mxu0 %v10044_v13  ;;  %v10069_v13 = vld [vmem:[%s13440_s3 + $0xa8] sm:$0xff]  }
 0x1f8   : > { %v5368_v3 = vadd.f32 %v8931_v5, %v5311_v45  ;;  %v8934_v39 = vadd.f32 %v8933_v56, %v8932_v18  ;;  %9310 = vmatpush3.bf16.msra.mxu0 %v10045_v42  ;;  %v10046_v56 = vld [vmem:[%s13440_s3 + $0x48] sm:$0xff]  }
 0x1f9   : > { %v8963_v9 = vpop.f32.mrb[80].mxu1  ;;  %9311 = vmatprep.subr.bf16.mxu0 %v10046_v56  ;;  %v10070_v56 = vld [vmem:[%s13440_s3 + $0x78] sm:$0xff]  }
 0x1fa   : > { %v5371_v6 = vadd.f32 %v8934_v39, %v5314_v17  ;;  %v8964_v62 = vpop.f32.mrb[81].mxu1 }
 0x1fb   : > { %v8965_v63 = vadd.f32 %v8964_v62, %v8963_v9  ;;  %v8966_v7 = vpop.f32.mrb[82].mxu1  ;;  %v10047_v9 = vld [vmem:[%s13440_s3 + $0x8] sm:$0xff]  }
 0x1fc   : > { %v8967_v8 = vpop.f32.mrb[83].mxu1  ;;  %9312 = vmatpush3.bf16.msra.mxu0 %v10047_v9  ;;  %v10071_v9 = vld [vmem:[%s13440_s3 + $0x38] sm:$0xff]  }
 0x1fd   : > { %v5425_v30 = vadd.f32 %v8965_v63, %v5368_v3  ;;  %v8968_v2 = vadd.f32 %v8967_v8, %v8966_v7 }
 0x1ff   : > { %v5428_v58 = vadd.f32 %v8968_v2, %v5371_v6  ;;  %v10048_v6 = vld [vmem:[%s13440_s3 + $0xc0] sm:$0xff]  }
 0x200   : > { %9337 = vmatprep.subr.bf16.mxu1 %v10048_v6 }
 0x204   : > { %v8985_v12 = vpop.f32.mrb[84].mxu0 }
 0x205   : > { %v9019_v49 = vpop.f32.mrb[84].mxu1  ;;  %v8986_v48 = vpop.f32.mrb[85].mxu0 }
 0x206   : > { %v9020_v50 = vpop.f32.mrb[85].mxu1  ;;  %v8987_v34 = vadd.f32 %v8986_v48, %v8985_v12  ;;  %v8988_v54 = vpop.f32.mrb[86].mxu0 }
 0x207   : > { %v9021_v41 = vadd.f32 %v9020_v50, %v9019_v49  ;;  %v9022_v55 = vpop.f32.mrb[86].mxu1  ;;  %v8989_v1 = vpop.f32.mrb[87].mxu0  ;;  %v10050_v50 = vld [vmem:[%s13440_s3 + $0x50] sm:$0xff]  }
 0x208   : > { %v9023_v51 = vpop.f32.mrb[87].mxu1  ;;  %v5466_v38 = vadd.f32 %v8987_v34, %v5409_v57  ;;  %v8990_v46 = vadd.f32 %v8989_v1, %v8988_v54  ;;  %v10051_v34 = vld [vmem:[%s13440_s3 + $0x10] sm:$0xff]   ;;  %9313 = vmatprep.subr.bf16.mxu0 %v10050_v50  ;;  %v10053_v1 = vld [vmem:[%s13440_s3 + $0x88] sm:$0xff]  }
 0x209   : > { %v9024_v37 = vadd.f32 %v9023_v51, %v9022_v55  ;;  %9314 = vmatpush3.bf16.msra.mxu0 %v10051_v34 }
 0x20a   : > { %v5523_v45 = vadd.f32 %v9021_v41, %v5466_v38  ;;  %v5469_v0 = vadd.f32 %v8990_v46, %v5412_v52  ;;  %v10052_v41 = vld [vmem:[%s13440_s3 + $0xc8] sm:$0xff]  }
 0x20c   : > { %v5526_v17 = vadd.f32 %v9024_v37, %v5469_v0  ;;  %v8991_v47 = vpop.f32.mrb[88].mxu0  ;;  %v10054_v37 = vld [vmem:[%s13440_s3 + $0x58] sm:$0xff]  }
 0x20d   : > { %v9025_v40 = vpop.f32.mrb[88].mxu1  ;;  %v8992_v53 = vpop.f32.mrb[89].mxu0  ;;  %9315 = vmatprep.subr.bf16.mxu0 %v10054_v37 }
 0x20e   : > { %v9026_v23 = vpop.f32.mrb[89].mxu1  ;;  %v8993_v15 = vadd.f32 %v8992_v53, %v8991_v47  ;;  %v8994_v32 = vpop.f32.mrb[90].mxu0  ;;  %v10056_v47 = vld [vmem:[%s13440_s3 + $0xd0] sm:$0xff]  }
 0x20f   : > { %v9027_v28 = vadd.f32 %v9026_v23, %v9025_v40  ;;  %v9028_v24 = vpop.f32.mrb[90].mxu1  ;;  %v8995_v27 = vpop.f32.mrb[91].mxu0 }
 0x210   : > { %v9029_v44 = vpop.f32.mrb[91].mxu1  ;;  %v5474_v16 = vadd.f32 %v8993_v15, %v5417_v35  ;;  %v8996_v59 = vadd.f32 %v8995_v27, %v8994_v32  ;;  %v10057_v32 = vld [vmem:[%s13440_s3 + $0x90] sm:$0xff]  }
 0x211   : > { %v9030_v21 = vadd.f32 %v9029_v44, %v9028_v24 }
 0x212   : > { %v5477_v33 = vadd.f32 %v8996_v59, %v5420_v22  ;;  %v12922_v57 = vadd.f32 %v9027_v28, %v5474_v16  ;;  %v10058_v59 = vld [vmem:[%s13440_s3 + $0x60] sm:$0xff]  }
 0x214   : > { %v12924_v4 = vadd.f32 %v9030_v21, %v5477_v33  ;;  %v8997_v52 = vpop.f32.mrb[92].mxu0  ;;  %v10059_v21 = vld [vmem:[%s13440_s3 + $0x20] sm:$0xff]   ;;  %v10060_v33 = vld [vmem:[%s13440_s3 + $0xd8] sm:$0xff]  }
 0x215   : > { %v8998_v43 = vpop.f32.mrb[93].mxu0  ;;  %v9031_v25 = vpop.f32.mrb[92].mxu1 }
 0x216   : > { %v8999_v36 = vadd.f32 %v8998_v43, %v8997_v52  ;;  %v9000_v26 = vpop.f32.mrb[94].mxu0  ;;  %v9032_v20 = vpop.f32.mrb[93].mxu1 }
 0x217   : > { %v9001_v19 = vpop.f32.mrb[95].mxu0  ;;  %v9033_v29 = vadd.f32 %v9032_v20, %v9031_v25  ;;  %v9034_v31 = vpop.f32.mrb[94].mxu1 }
 0x218   : > { %v5482_v61 = vadd.f32 %v8999_v36, %v5425_v30  ;;  %v9002_v11 = vadd.f32 %v9001_v19, %v9000_v26  ;;  %v9035_v10 = vpop.f32.mrb[95].mxu1  ;;  %v10049_v30 = vld [vmem:[%s13440_s3 + $0x80] sm:$0xff]   ;;  %v10062_v26 = vld [vmem:[%s13440_s3 + $0x68] sm:$0xff]  }
 0x219   : > { %v9036_v35 = vadd.f32 %v9035_v10, %v9034_v31  ;;  %9338 = vmatpush3.bf16.msra.mxu1 %v10049_v30  ;;  %v10064_v19 = vld [vmem:[%s13440_s3 + $0xe0] sm:$0xff]   ;;  %v10067_v10 = vld [vmem:[%s13440_s3 + $0x30] sm:$0xff]  }
 0x21a   : > { %v5485_v14 = vadd.f32 %v9002_v11, %v5428_v58  ;;  %v12926_v60 = vadd.f32 %v9033_v29, %v5482_v61  ;;  %9339 = vmatprep.subr.bf16.mxu1 %v10052_v41  ;;  %v10065_v11 = vld [vmem:[%s13440_s3 + $0xa0] sm:$0xff]   ;;  %v10066_v29 = vld [vmem:[%s13440_s3 + $0x70] sm:$0xff]  }
 0x21c   : > { %v12928_v22 = vadd.f32 %v9036_v35, %v5485_v14  ;;  %v10068_v35 = vld [vmem:[%s13440_s3 + $0xe8] sm:$0xff]  }
 0x21d   : > { %9340 = vmatpush3.bf16.msra.mxu1 %v10053_v1 }
 0x21e   : > { %9341 = vmatprep.subr.bf16.mxu1 %v10056_v47 }
 0x221   : > { %9342 = vmatpush3.bf16.msra.mxu1 %v10057_v32 }
 0x222   : > { %9343 = vmatprep.subr.bf16.mxu1 %v10060_v33 }
 0x225   : > { %v9053_v5 = vpop.f32.mrb[96].mxu0  ;;  %v9087_v18 = vpop.f32.mrb[96].mxu1 }
 0x226   : > { %v9054_v3 = vpop.f32.mrb[97].mxu0  ;;  %v9088_v39 = vpop.f32.mrb[97].mxu1 }
 0x227   : > { %v9055_v62 = vadd.f32 %v9054_v3, %v9053_v5  ;;  %v9089_v63 = vadd.f32 %v9088_v39, %v9087_v18  ;;  %v9056_v7 = vpop.f32.mrb[98].mxu0  ;;  %v9090_v8 = vpop.f32.mrb[98].mxu1  ;;  %v10072_v3 = vld [vmem:[%s13440_s3 + $0xf0] sm:$0xff]  }
 0x228   : > { %v9057_v2 = vpop.f32.mrb[99].mxu0  ;;  %v9091_v58 = vpop.f32.mrb[99].mxu1 }
 0x229   : > { %v5580_v12 = vadd.f32 %v9055_v62, %v5523_v45  ;;  %v9058_v49 = vadd.f32 %v9057_v2, %v9056_v7  ;;  %v9092_v48 = vadd.f32 %v9091_v58, %v9090_v8  ;;  %v10074_v58 = vld [vmem:[%s13440_s3 + $0x140] sm:$0xff]  }
 0x22b   : > { %v12957_v54 = vadd.f32 %v9089_v63, %v5580_v12  ;;  %v5583_v55 = vadd.f32 %v9058_v49, %v5526_v17  ;;  %v10055_v17 = vld [vmem:[%s13440_s3 + $0x18] sm:$0xff]   ;;  %v10073_v63 = vld [vmem:[%s13440_s3 + $0xb0] sm:$0xff]   ;;  %v10080_v49 = vld [vmem:[%s13440_s3 + $0x1c0] sm:$0xff]  }
 0x22c   : > { %9316 = vmatpush3.bf16.msra.mxu0 %v10055_v17  ;;  %v10077_v12 = vld [vmem:[%s13440_s3 + $0xb8] sm:$0xff]  }
 0x22d   : > { %v12962_v51 = vadd.f32 %v9092_v48, %v5583_v55  ;;  %v9059_v38 = vpop.f32.mrb[100].mxu0  ;;  %v9093_v46 = vpop.f32.mrb[100].mxu1  ;;  %9317 = vmatprep.subr.bf16.mxu0 %v10058_v59 }
 0x22e   : > { %v9060_v45 = vpop.f32.mrb[101].mxu0  ;;  %v9094_v0 = vpop.f32.mrb[101].mxu1 }
 0x22f   : > { %v9061_v40 = vadd.f32 %v9060_v45, %v9059_v38  ;;  %v9062_v53 = vpop.f32.mrb[102].mxu0  ;;  %v9095_v23 = vadd.f32 %v9094_v0, %v9093_v46  ;;  %v9096_v15 = vpop.f32.mrb[102].mxu1 }
 0x230   : > { %v9063_v28 = vpop.f32.mrb[103].mxu0  ;;  %v9097_v24 = vpop.f32.mrb[103].mxu1  ;;  %9318 = vmatpush3.bf16.msra.mxu0 %v10059_v21 }
 0x231   : > { %v5588_v27 = vadd.f32 %v9061_v40, %v12922_v57  ;;  %v9064_v44 = vadd.f32 %v9063_v28, %v9062_v53  ;;  %v9098_v16 = vadd.f32 %v9097_v24, %v9096_v15  ;;  %v10061_v57 = vld [vmem:[%s13440_s3 + $0x98] sm:$0xff]   ;;  %9319 = vmatprep.subr.bf16.mxu0 %v10062_v26 }
 0x232   : > { %9344 = vmatpush3.bf16.msra.mxu1 %v10061_v57 }
 0x233   : > { %v5591_v52 = vadd.f32 %v9064_v44, %v12924_v4  ;;  %v12987_v43 = vadd.f32 %v9095_v23, %v5588_v27  ;;  %v10063_v4 = vld [vmem:[%s13440_s3 + $0x28] sm:$0xff]   ;;  %9345 = vmatprep.subr.bf16.mxu1 %v10064_v19 }
 0x234   : > { %9320 = vmatpush3.bf16.msra.mxu0 %v10063_v4 }
 0x235   : > { %v12992_v36 = vadd.f32 %v9098_v16, %v5591_v52  ;;  %v9065_v61 = vpop.f32.mrb[104].mxu0  ;;  %9321 = vmatprep.subr.bf16.mxu0 %v10066_v29 }
 0x236   : > { %v9066_v25 = vpop.f32.mrb[105].mxu0  ;;  %9346 = vmatpush3.bf16.msra.mxu1 %v10065_v11 }
 0x237   : > { %v9067_v14 = vadd.f32 %v9066_v25, %v9065_v61  ;;  %v9068_v20 = vpop.f32.mrb[106].mxu0  ;;  %9347 = vmatprep.subr.bf16.mxu1 %v10068_v35 }
 0x238   : > { %v9069_v31 = vpop.f32.mrb[107].mxu0  ;;  %9322 = vmatpush3.bf16.msra.mxu0 %v10067_v10 }
 0x239   : > { %v5596_v42 = vadd.f32 %v9067_v14, %v12926_v60  ;;  %v9099_v5 = vpop.f32.mrb[104].mxu1  ;;  %v9070_v18 = vadd.f32 %v9069_v31, %v9068_v20  ;;  %9323 = vmatprep.subr.bf16.mxu0 %v10070_v56 }
 0x23a   : > { %v9100_v39 = vpop.f32.mrb[105].mxu1  ;;  %9348 = vmatpush3.bf16.msra.mxu1 %v10069_v13 }
 0x23b   : > { %v5599_v60 = vadd.f32 %v9070_v18, %v12928_v22  ;;  %v9101_v6 = vadd.f32 %v9100_v39, %v9099_v5  ;;  %v9102_v62 = vpop.f32.mrb[106].mxu1  ;;  %9349 = vmatprep.subr.bf16.mxu1 %v10072_v3  ;;  %v10075_v22 = vld [vmem:[%s13440_s3 + $0xf8] sm:$0xff]  }
 0x23c   : > { %v9103_v7 = vpop.f32.mrb[107].mxu1  ;;  %9324 = vmatpush3.bf16.msra.mxu0 %v10071_v9 }
 0x23d   : > { %v5653_v8 = vadd.f32 %v9101_v6, %v5596_v42  ;;  %v9104_v30 = vadd.f32 %v9103_v7, %v9102_v62  ;;  %9365 = vmatprep.subr.bf16.mxu0 %v10074_v58 }
 0x23e   : > { %9350 = vmatpush3.bf16.msra.mxu1 %v10073_v63 }
 0x23f   : > { %v5656_v2 = vadd.f32 %v9104_v30, %v5599_v60  ;;  %9351 = vmatprep.subr.bf16.mxu1 %v10075_v22 }
 0x242   : > { %9352 = vmatpush3.bf16.msra.mxu1 %v10077_v12 }
 0x243   : > { %9393 = vmatprep.subr.bf16.mxu1 %v10080_v49 }
 0x248   : > { %v9121_v48 = vpop.f32.mrb[108].mxu0  ;;  %v9155_v50 = vpop.f32.mrb[108].mxu1 }
 0x249   : > { %v9122_v34 = vpop.f32.mrb[109].mxu0  ;;  %v9156_v41 = vpop.f32.mrb[109].mxu1 }
 0x24a   : > { %v9123_v55 = vadd.f32 %v9122_v34, %v9121_v48  ;;  %v9157_v1 = vadd.f32 %v9156_v41, %v9155_v50  ;;  %v9124_v38 = vpop.f32.mrb[110].mxu0  ;;  %v9158_v46 = vpop.f32.mrb[110].mxu1 }
 0x24b   : > { %v9125_v37 = vpop.f32.mrb[111].mxu0  ;;  %v9159_v45 = vpop.f32.mrb[111].mxu1 }
 0x24c   : > { %v5694_v0 = vadd.f32 %v9123_v55, %v12957_v54  ;;  %v9126_v17 = vadd.f32 %v9125_v37, %v9124_v38  ;;  %v9160_v47 = vadd.f32 %v9159_v45, %v9158_v46 }
 0x24e   : > { %v5751_v40 = vadd.f32 %v9157_v1, %v5694_v0  ;;  %v5697_v53 = vadd.f32 %v9126_v17, %v12962_v51 }
 0x250   : > { %v5754_v23 = vadd.f32 %v9160_v47, %v5697_v53  ;;  %v9127_v15 = vpop.f32.mrb[112].mxu0  ;;  %v9161_v32 = vpop.f32.mrb[112].mxu1 }
 0x251   : > { %v9128_v28 = vpop.f32.mrb[113].mxu0  ;;  %v9162_v24 = vpop.f32.mrb[113].mxu1 }
 0x252   : > { %v9129_v27 = vadd.f32 %v9128_v28, %v9127_v15  ;;  %v9130_v44 = vpop.f32.mrb[114].mxu0  ;;  %v9163_v16 = vadd.f32 %v9162_v24, %v9161_v32  ;;  %v9164_v59 = vpop.f32.mrb[114].mxu1 }
 0x253   : > { %v9131_v21 = vpop.f32.mrb[115].mxu0  ;;  %v9165_v33 = vpop.f32.mrb[115].mxu1 }
 0x254   : > { %v5702_v52 = vadd.f32 %v9129_v27, %v12987_v43  ;;  %v9132_v57 = vadd.f32 %v9131_v21, %v9130_v44  ;;  %v9166_v54 = vadd.f32 %v9165_v33, %v9164_v59 }
 0x256   : > { %v5705_v26 = vadd.f32 %v9132_v57, %v12992_v36  ;;  %v5759_v4 = vadd.f32 %v9163_v16, %v5702_v52 }
 0x258   : > { %v5762_v19 = vadd.f32 %v9166_v54, %v5705_v26  ;;  %v9133_v51 = vpop.f32.mrb[116].mxu0  ;;  %v9167_v29 = vpop.f32.mrb[116].mxu1 }
 0x259   : > { %v9134_v61 = vpop.f32.mrb[117].mxu0  ;;  %v9168_v10 = vpop.f32.mrb[117].mxu1 }
 0x25a   : > { %v9135_v11 = vadd.f32 %v9134_v61, %v9133_v51  ;;  %v9136_v25 = vpop.f32.mrb[118].mxu0  ;;  %v9169_v13 = vadd.f32 %v9168_v10, %v9167_v29  ;;  %v9170_v42 = vpop.f32.mrb[118].mxu1 }
 0x25b   : > { %v9137_v14 = vpop.f32.mrb[119].mxu0  ;;  %v9171_v5 = vpop.f32.mrb[119].mxu1 }
 0x25c   : > { %v5710_v20 = vadd.f32 %v9135_v11, %v5653_v8  ;;  %v9138_v31 = vadd.f32 %v9137_v14, %v9136_v25  ;;  %v9172_v18 = vadd.f32 %v9171_v5, %v9170_v42 }
 0x25e   : > { %v5713_v35 = vadd.f32 %v9138_v31, %v5656_v2  ;;  %v5767_v43 = vadd.f32 %v9169_v13, %v5710_v20 }
 0x260   : > { %v5770_v56 = vadd.f32 %v9172_v18, %v5713_v35 }
 0x268   : > { %v9189_v3 = vpop.f32.mrb[120].mxu0  ;;  %v9223_v39 = vpop.f32.mrb[120].mxu1 }
 0x269   : > { %v9190_v36 = vpop.f32.mrb[121].mxu0  ;;  %v9224_v6 = vpop.f32.mrb[121].mxu1 }
 0x26a   : > { %v9191_v9 = vadd.f32 %v9190_v36, %v9189_v3  ;;  %v9192_v60 = vpop.f32.mrb[122].mxu0  ;;  %v9225_v7 = vadd.f32 %v9224_v6, %v9223_v39  ;;  %v9226_v8 = vpop.f32.mrb[122].mxu1 }
 0x26b   : > { %v9193_v62 = vpop.f32.mrb[123].mxu0  ;;  %v9227_v58 = vpop.f32.mrb[123].mxu1 }
 0x26c   : > { %v5808_v63 = vadd.f32 %v9191_v9, %v5751_v40  ;;  %v9194_v30 = vadd.f32 %v9193_v62, %v9192_v60  ;;  %v9228_v12 = vadd.f32 %v9227_v58, %v9226_v8 }
 0x26e   : > { %v5865_v22 = vadd.f32 %v9225_v7, %v5808_v63  ;;  %v5811_v2 = vadd.f32 %v9194_v30, %v5754_v23 }
 0x270   : > { %v5868_v49 = vadd.f32 %v9228_v12, %v5811_v2  ;;  %v9195_v48 = vpop.f32.mrb[124].mxu0  ;;  %v9229_v37 = vpop.f32.mrb[124].mxu1 }
 0x271   : > { %v9196_v50 = vpop.f32.mrb[125].mxu0  ;;  %v9230_v45 = vpop.f32.mrb[125].mxu1 }
 0x272   : > { %v9197_v34 = vadd.f32 %v9196_v50, %v9195_v48  ;;  %v9198_v41 = vpop.f32.mrb[126].mxu0  ;;  %v9231_v0 = vadd.f32 %v9230_v45, %v9229_v37  ;;  %v9232_v17 = vpop.f32.mrb[126].mxu1 }
 0x273   : > { %v9199_v55 = vpop.f32.mrb[127].mxu0  ;;  %v9233_v47 = vpop.f32.mrb[127].mxu1 }
 0x274   : > { %v5816_v1 = vadd.f32 %v9197_v34, %v5759_v4  ;;  %v9200_v38 = vadd.f32 %v9199_v55, %v9198_v41  ;;  %v9234_v53 = vadd.f32 %v9233_v47, %v9232_v17 }
 0x276   : > { %v5819_v46 = vadd.f32 %v9200_v38, %v5762_v19  ;;  %v5873_v40 = vadd.f32 %v9231_v0, %v5816_v1 }
 0x278   : > { %v5876_v15 = vadd.f32 %v9234_v53, %v5819_v46  ;;  %v9201_v32 = vpop.f32.mrb[128].mxu0  ;;  %v9235_v59 = vpop.f32.mrb[128].mxu1 }
 0x279   : > { %v9202_v23 = vpop.f32.mrb[129].mxu0  ;;  %v9236_v33 = vpop.f32.mrb[129].mxu1 }
 0x27a   : > { %v9203_v28 = vadd.f32 %v9202_v23, %v9201_v32  ;;  %v9204_v24 = vpop.f32.mrb[130].mxu0  ;;  %v9237_v52 = vadd.f32 %v9236_v33, %v9235_v59  ;;  %v9238_v57 = vpop.f32.mrb[130].mxu1 }
 0x27b   : > { %v9205_v27 = vpop.f32.mrb[131].mxu0  ;;  %v9239_v54 = vpop.f32.mrb[131].mxu1 }
 0x27c   : > { %v5824_v44 = vadd.f32 %v9203_v28, %v5767_v43  ;;  %v9206_v16 = vadd.f32 %v9205_v27, %v9204_v24  ;;  %v9240_v4 = vadd.f32 %v9239_v54, %v9238_v57 }
 0x27e   : > { %v5827_v21 = vadd.f32 %v9206_v16, %v5770_v56  ;;  %v5881_v26 = vadd.f32 %v9237_v52, %v5824_v44 }
 0x280   : > { %v13048_v19 = vadd.f32 %v9240_v4, %v5827_v21 }
 0x288   : > { %v9257_v51 = vpop.f32.mrb[132].mxu0 }
 0x289   : > { %v9258_v61 = vpop.f32.mrb[133].mxu0  ;;  %v9291_v11 = vpop.f32.mrb[132].mxu1 }
 0x28a   : > { %v9259_v25 = vadd.f32 %v9258_v61, %v9257_v51  ;;  %v9260_v14 = vpop.f32.mrb[134].mxu0  ;;  %v9292_v20 = vpop.f32.mrb[133].mxu1 }
 0x28b   : > { %v9261_v29 = vpop.f32.mrb[135].mxu0  ;;  %v9293_v10 = vadd.f32 %v9292_v20, %v9291_v11  ;;  %v9294_v35 = vpop.f32.mrb[134].mxu1 }
 0x28c   : > { %v5922_v31 = vadd.f32 %v9259_v25, %v5865_v22  ;;  %v9262_v13 = vadd.f32 %v9261_v29, %v9260_v14  ;;  %v9295_v42 = vpop.f32.mrb[135].mxu1 }
 0x28d   : > { %v9296_v18 = vadd.f32 %v9295_v42, %v9294_v35 }
 0x28e   : > { %v5979_v5 = vadd.f32 %v9293_v10, %v5922_v31  ;;  %v5925_v43 = vadd.f32 %v9262_v13, %v5868_v49 }
 0x290   : > { %v6001_v56 = vmax.f32 %v5979_v5, 0.0  ;;  %v5982_v3 = vadd.f32 %v9296_v18, %v5925_v43  ;;  %v9263_v36 = vpop.f32.mrb[136].mxu0 }
 0x291   : > { %v9264_v39 = vpop.f32.mrb[137].mxu0  ;;  %v9297_v60 = vpop.f32.mrb[136].mxu1 }
 0x292   : > { %v6002_v9 = vmax.f32 %v5982_v3, 0.0  ;;  %v9265_v6 = vadd.f32 %v9264_v39, %v9263_v36  ;;  %v9266_v62 = vpop.f32.mrb[138].mxu0  ;;  %v6013_v63 = vrot.slane %v6001_v56, 1  ;;  %v6036_v7 = vrot.slane %v6001_v56, 2  ;;  %v9298_v8 = vpop.f32.mrb[137].mxu1 }
 0x293   : > { %v9267_v30 = vpop.f32.mrb[139].mxu0  ;;  %v9299_v12 = vadd.f32 %v9298_v8, %v9297_v60  ;;  %v9300_v48 = vpop.f32.mrb[138].mxu1 }
 0x294   : > { %v6014_v58 = vrot.slane %v6002_v9, 1  ;;  %v6037_v22 = vrot.slane %v6002_v9, 2  ;;  %v5930_v2 = vadd.f32 %v9265_v6, %v5873_v40  ;;  %v9268_v50 = vadd.f32 %v9267_v30, %v9266_v62  ;;  %v9301_v49 = vpop.f32.mrb[139].mxu1 }
 0x295   : > { %v9302_v1 = vadd.f32 %v9301_v49, %v9300_v48 }
 0x296   : > { %v6015_v34 = vsel %vm657_vm0, %v6013_v63, %v6014_v58  ;;  %v6038_v41 = vsel %vm910_vm1, %v6036_v7, %v6037_v22  ;;  %v5987_v55 = vadd.f32 %v9299_v12, %v5930_v2  ;;  %v5933_v46 = vadd.f32 %v9268_v50, %v5876_v15  ;;  %v10076_v12 = vld [vmem:[%s13440_s3 + $0x100] sm:$0xff]   ;;  %v10078_v50 = vld [vmem:[%s13440_s3 + $0x148] sm:$0xff]  }
 0x297   : > { %v6030_v38 = vmax.f32 %v6001_v56, %v6015_v34 }
 0x298   : > { %v6003_v37 = vmax.f32 %v5987_v55, 0.0  ;;  %v9269_v45 = vpop.f32.mrb[140].mxu0  ;;  %v5990_v17 = vadd.f32 %v9302_v1, %v5933_v46 }
 0x299   : > { %v6053_v0 = vmax.f32 %v6030_v38, %v6038_v41  ;;  %v9270_v47 = vpop.f32.mrb[141].mxu0  ;;  %v9303_v40 = vpop.f32.mrb[140].mxu1 }
 0x29a   : > { %v6016_v53 = vrot.slane %v6003_v37, 1  ;;  %v6039_v32 = vrot.slane %v6003_v37, 2  ;;  %v9271_v23 = vadd.f32 %v9270_v47, %v9269_v45  ;;  %v9272_v28 = vpop.f32.mrb[142].mxu0  ;;  %v6004_v24 = vmax.f32 %v5990_v17, 0.0  ;;  %v9304_v27 = vpop.f32.mrb[141].mxu1 }
 0x29b   : > { %6059 = vst [vmem:[#allocation2] sm:$0xff] %v6053_v0  ;;  %v9273_v44 = vpop.f32.mrb[143].mxu0  ;;  %v9305_v15 = vadd.f32 %v9304_v27, %v9303_v40  ;;  %v9306_v33 = vpop.f32.mrb[142].mxu1  ;;  %v10079_v0 = vld [vmem:[%s13440_s3 + $0x108] sm:$0xff]   ;;  %v10082_v40 = vld [vmem:[%s13440_s3 + $0x150] sm:$0xff]   ;;  %v10081_v27 = vld [vmem:[%s13440_s3 + $0x180] sm:$0xff]  }
 0x29c   : > { %v6017_v16 = vsel %vm657_vm0, %v6014_v58, %v6016_v53  ;;  %v6040_v59 = vsel %vm910_vm1, %v6037_v22, %v6039_v32  ;;  %v5938_v21 = vadd.f32 %v9271_v23, %v5881_v26  ;;  %v6018_v57 = vrot.slane %v6004_v24, 1  ;;  %v9307_v51 = vpop.f32.mrb[143].mxu1 }
 0x29d   : > { %v6031_v52 = vmax.f32 %v6002_v9, %v6017_v16  ;;  %v6041_v54 = vrot.slane %v6004_v24, 2  ;;  %v9274_v4 = vadd.f32 %v9273_v44, %v9272_v28  ;;  %v9308_v11 = vadd.f32 %v9307_v51, %v9306_v33  ;;  %v10084_v44 = vld [vmem:[%s13440_s3 + $0x1c8] sm:$0xff]  }
 0x29e   : > { %v5995_v61 = vadd.f32 %v9305_v15, %v5938_v21  ;;  %v6019_v14 = vsel %vm657_vm0, %v6016_v53, %v6018_v57  ;;  %v10083_v15 = vld [vmem:[%s13440_s3 + $0x110] sm:$0xff]   ;;  %v10085_v51 = vld [vmem:[%s13440_s3 + $0x188] sm:$0xff]  }
 0x29f   : > { %v6054_v25 = vmax.f32 %v6031_v52, %v6040_v59  ;;  %v6042_v20 = vsel %vm910_vm1, %v6039_v32, %v6041_v54  ;;  %v5941_v29 = vadd.f32 %v9274_v4, %v13048_v19  ;;  %v6032_v31 = vmax.f32 %v6003_v37, %v6019_v14 }
 0x2a0   : > { %v6005_v10 = vmax.f32 %v5995_v61, 0.0  ;;  %v10088_v61 = vld [vmem:[%s13440_s3 + $0x1d0] sm:$0xff]  }
 0x2a1   : > { %6060 = vst [vmem:[#allocation2 + $0x8] sm:$0xff] %v6054_v25  ;;  %v5998_v26 = vadd.f32 %v9308_v11, %v5941_v29  ;;  %v6055_v35 = vmax.f32 %v6032_v31, %v6042_v20  ;;  %v10087_v25 = vld [vmem:[%s13440_s3 + $0x118] sm:$0xff]   ;;  %v10090_v29 = vld [vmem:[%s13440_s3 + $0x160] sm:$0xff]   ;;  %v10089_v31 = vld [vmem:[%s13440_s3 + $0x190] sm:$0xff]  }
 0x2a2   : > { %v6020_v13 = vrot.slane %v6005_v10, 1  ;;  %v6043_v42 = vrot.slane %v6005_v10, 2 }
 0x2a3   : > { %v6006_v5 = vmax.f32 %v5998_v26, 0.0  ;;  %6061 = vst [vmem:[#allocation2 + $0x10] sm:$0xff] %v6055_v35  ;;  %v10092_v35 = vld [vmem:[%s13440_s3 + $0x1d8] sm:$0xff]  }
 0x2a4   : > { %v6021_v43 = vsel %vm657_vm0, %v6018_v57, %v6020_v13  ;;  %v6044_v18 = vsel %vm910_vm1, %v6041_v54, %v6043_v42  ;;  %v10086_v57 = vld [vmem:[%s13440_s3 + $0x158] sm:$0xff]  }
 0x2a5   : > { %v6033_v56 = vmax.f32 %v6004_v24, %v6021_v43  ;;  %v6022_v3 = vrot.slane %v6006_v5, 1  ;;  %v6045_v36 = vrot.slane %v6006_v5, 2  ;;  %v10093_v43 = vld [vmem:[%s13440_s3 + $0x198] sm:$0xff]  }
 0x2a7   : > { %v6056_v39 = vmax.f32 %v6033_v56, %v6044_v18  ;;  %v6023_v9 = vsel %vm657_vm0, %v6020_v13, %v6022_v3  ;;  %v6035_v19 = vmax.f32 %v6006_v5, %v6022_v3  ;;  %v6046_v60 = vsel %vm910_vm1, %v6043_v42, %v6045_v36  ;;  %v10091_v42 = vld [vmem:[%s13440_s3 + $0x120] sm:$0xff]   ;;  %v10094_v5 = vld [vmem:[%s13440_s3 + $0x168] sm:$0xff]   ;;  %v10098_v3 = vld [vmem:[%s13440_s3 + $0x170] sm:$0xff]  }
 0x2a8   : > { %v6034_v6 = vmax.f32 %v6005_v10, %v6023_v9  ;;  %v13061_v7 = vld [vmem:[#allocation2 + $0x1] ss:$2 sm:$0xff]  ;;  %v13065_v30 = vld [vmem:[#allocation2] ss:$2 sm:$0xff]  ;;  %v10099_v9 = vld [vmem:[%s13440_s3 + $0x130] sm:$0xff]  }
 0x2a9   : > { %6062 = vst [vmem:[#allocation2 + $0x18] sm:$0xff] %v6056_v39  ;;  %v6058_v62 = vmax.f32 %v6035_v19, %v6045_v36  ;;  %v6090_v49 = vrot.slane %v13061_v7, 1  ;;  %v6079_v46 = vrot.slane %v13065_v30, 1  ;;  %v6106_v16 = vrot.slane %v13061_v7, 2  ;;  %v10096_v18 = vld [vmem:[%s13440_s3 + $0x1e0] sm:$0xff]   ;;  %v10095_v56 = vld [vmem:[%s13440_s3 + $0x128] sm:$0xff]  }
 0x2aa   : > { %v6057_v63 = vmax.f32 %v6034_v6, %v6046_v60  ;;  %v6122_v14 = vrot.slane %v13061_v7, 3  ;;  %v10097_v36 = vld [vmem:[%s13440_s3 + $0x1a0] sm:$0xff]   ;;  %v10100_v39 = vld [vmem:[%s13440_s3 + $0x1e8] sm:$0xff]   ;;  %v10102_v19 = vld [vmem:[%s13440_s3 + $0x178] sm:$0xff]  }
 0x2ab   : > { %6064 = vst [vmem:[#allocation2 + $0x28] sm:$0xf] %v6058_v62  ;;  %v10101_v60 = vld [vmem:[%s13440_s3 + $0x1a8] sm:$0xff]   ;;  %v10104_v62 = vld [vmem:[%s13440_s3 + $0x1f0] sm:$0xff]  }
 0x2ac   : > { %6063 = vst [vmem:[#allocation2 + $0x20] sm:$0xff] %v6057_v63  ;;  %v10103_v63 = vld [vmem:[%s13440_s3 + $0x138] sm:$0xff]  }
 0x2b0   : > { %v13063_v8 = vld [vmem:[#allocation2 + $0x11] ss:$2 sm:$0xff]  ;;  %v13067_v58 = vld [vmem:[#allocation2 + $0x10] ss:$2 sm:$0xff] }
 0x2b1   : > { %v6131_v22 = vpack.c.bf16 %v13063_v8, %v13061_v7  ;;  %v6130_v2 = vpack.c.bf16 %v13067_v58, %v13065_v30  ;;  %v6091_v48 = vrot.slane %v13063_v8, 1  ;;  %v6080_v34 = vrot.slane %v13067_v58, 1 }
 0x2b2   : > { %v6107_v23 = vrot.slane %v13063_v8, 2  ;;  %v6123_v11 = vrot.slane %v13063_v8, 3  ;;  %v6099_v7 = vrot.slane %v13067_v58, 2  ;;  %v10105_v8 = vld [vmem:[%s13440_s3 + $0x1b0] sm:$0xff]  }
 0x2b3   : > { %6697 = vmatprep.mubr.bf16.mxu0 %v6131_v22  ;;  %v6075_v41 = vld [vmem:[#allocation2 + $0x21] ss:$2 sm:$0x3f]  ;;  %v13082_v55 = vld [vmem:[#allocation2 + $0x20] ss:$2 sm:$0x3f]  ;;  %v6092_v45 = vsel %vm657_vm0, %v6090_v49, %v6091_v48  ;;  %v6081_v53 = vsel %vm657_vm0, %v6079_v46, %v6080_v34 }
 0x2b4   : > { %6698 = vmatmul.mubr.bf16.vlgmr.msra.gmra.mrb[144].mxu0 %v6130_v2  ;;  %v6139_v1 = vpack.c.bf16 %v6075_v41, %v6075_v41  ;;  %v6093_v38 = vrot.slane %v6075_v41, 1  ;;  %v6082_v37 = vrot.slane %v13082_v55, 1  ;;  %v13090_v17 = vrot.slane %v6075_v41, 2 }
 0x2b5   : > { %9366 = vmatpush3.bf16.msra.mxu0 %v10076_v12  ;;  %v6138_v33 = vpack.c.bf16 %v13082_v55, %v13082_v55  ;;  %v6108_v52 = vsel %vm910_vm1, %v6106_v16, %v6107_v23  ;;  %v13117_v54 = vrot.slane %v6075_v41, 3  ;;  %v6124_v26 = vsel %vm1139_vm2, %v6122_v14, %v6123_v11  ;;  %v10106_v12 = vld [vmem:[%s13440_s3 + $0x1f8] sm:$0xff]  }
 0x2b6   : > { %6705 = vmatprep.mubr.bf16.mxu0 %v6139_v1  ;;  %9367 = vmatprep.subr.bf16.mxu0 %v10078_v50  ;;  %v6094_v47 = vsel %vm657_vm0, %v6091_v48, %v6093_v38  ;;  %v6083_v32 = vsel %vm657_vm0, %v6080_v34, %v6082_v37  ;;  %v6110_v59 = vsel %vm910_vm1, %v6107_v23, %v13090_v17  ;;  %v6101_v6 = vrot.slane %v13082_v55, 2  ;;  %v10107_v41 = vld [vmem:[%s13440_s3 + $0x1b8] sm:$0xff]  }
 0x2b7   : > { %v6133_v28 = vpack.c.bf16 %v6094_v47, %v6092_v45  ;;  %v6132_v24 = vpack.c.bf16 %v6083_v32, %v6081_v53  ;;  %v6141_v21 = vpack.c.bf16 %v6093_v38, %v6093_v38  ;;  %v6135_v4 = vpack.c.bf16 %v6110_v59, %v6108_v52  ;;  %v6895_v53 = vld [vmem:[%s13442_s5] sm:$0xff]  ;;  %v6896_v32 = vld [vmem:[%s13442_s5 + $0x8] sm:$0xff]  ;;  %v6898_v16 = vld [vmem:[%s13442_s5 + $0x18] sm:$0xff] }
 0x2b8   : > { %v6126_v20 = vsel %vm1139_vm2, %v6123_v11, %v13117_v54  ;;  %v6140_v10 = vpack.c.bf16 %v6082_v37, %v6082_v37  ;;  %v6098_v22 = vrot.slane %v13065_v30, 2  ;;  %v6102_v2 = vsel %vm910_vm1, %v6099_v7, %v6101_v6  ;;  %v8459_v59 = vld [vmem:[%s13442_s5 + $0x60] sm:$0xff]  ;;  %v6900_v52 = vld [vmem:[%s13442_s5 + $0x28] sm:$0xff]  ;;  %v6901_v11 = vld [vmem:[%s13442_s5 + $0x30] sm:$0xff] }
 0x2b9   : > { %6745 = vmatprep.mubr.bf16.mxu1 %v6133_v28  ;;  %9368 = vmatpush3.bf16.msra.mxu0 %v10079_v0  ;;  %v6137_v13 = vpack.c.bf16 %v6126_v20, %v6124_v26  ;;  %v6117_v50 = vrot.slane %v13082_v55, 3  ;;  %v6143_v34 = vpack.c.bf16 %v13090_v17, %v13090_v17  ;;  %v6115_v1 = vrot.slane %v13067_v58, 3  ;;  %v8455_v58 = vld [vmem:[%s13442_s5 + $0x40] sm:$0xff]  ;;  %v8457_v28 = vld [vmem:[%s13442_s5 + $0x50] sm:$0xff] }
 0x2ba   : > { %6746 = vmatmul.mubr.bf16.vlgmr.msra.gmra.mrb[144].mxu1 %v6132_v24  ;;  %9369 = vmatprep.subr.bf16.mxu0 %v10082_v40  ;;  %v6100_v48 = vsel %vm910_vm1, %v6098_v22, %v6099_v7  ;;  %v6114_v38 = vrot.slane %v13065_v30, 3  ;;  %v6145_v45 = vpack.c.bf16 %v13117_v54, %v13117_v54  ;;  %v6142_v0 = vpack.c.bf16 %v6101_v6, %v6101_v6  ;;  %v8456_v30 = vld [vmem:[%s13442_s5 + $0x48] sm:$0xff]  ;;  %v8458_v24 = vld [vmem:[%s13442_s5 + $0x58] sm:$0xff] }
 0x2bb   : > { %9394 = vmatpush3.bf16.msra.mxu1 %v10081_v27  ;;  %6753 = vmatprep.mubr.bf16.mxu1 %v6141_v21  ;;  %v6134_v49 = vpack.c.bf16 %v6102_v2, %v6100_v48  ;;  %v6118_v46 = vsel %vm1139_vm2, %v6115_v1, %v6117_v50  ;;  %v6144_v17 = vpack.c.bf16 %v6117_v50, %v6117_v50  ;;  %v10208_v40 = vmov 0.0|0.0  }
 0x2bc   : > { %6706 = vmatmul.mubr.bf16.gmra.mrb[148].mxu0 %v6138_v33  ;;  %9395 = vmatprep.subr.bf16.mxu1 %v10084_v44  ;;  %v6116_v55 = vsel %vm1139_vm2, %v6114_v38, %v6115_v1  ;;  %v9582_v47 = vpack.c.bf16 %v8456_v30, %v8455_v58  ;;  %v9594_v23 = vpack.c.bf16 %v6896_v32, %v6895_v53  ;;  %v6897_v44 = vld [vmem:[%s13442_s5 + $0x10] sm:$0xff]  ;;  %v6899_v33 = vld [vmem:[%s13442_s5 + $0x20] sm:$0xff] }
 0x2bd   : > { %9370 = vmatpush3.bf16.msra.mxu0 %v10083_v15  ;;  %6793 = vmatprep.mubr.bf16.mxu0 %v6135_v4  ;;  %v6136_v37 = vpack.c.bf16 %v6118_v46, %v6116_v55  ;;  %v9585_v27 = vpack.c.bf16 %v8458_v24, %v8457_v28  ;;  %v9597_v21 = vpack.c.bf16 %v6898_v16, %v6897_v44  ;;  %v8460_v15 = vld [vmem:[%s13442_s5 + $0x68] sm:$0xff] }
 0x2be   : > { %9371 = vmatprep.subr.bf16.mxu0 %v10086_v57  ;;  %v10210_v57 = vmov 0.0   ;;  %v9588_v54 = vpack.c.bf16 %v8460_v15, %v8459_v59  ;;  %v9600_v4 = vpack.c.bf16 %v6900_v52, %v6899_v33 }
 0x2bf   : > { %9396 = vmatpush3.bf16.msra.mxu1 %v10085_v51  ;;  %v8461_v51 = vld [vmem:[%s13442_s5 + $0x70] sm:$0xff] }
 0x2c0   : > { %9397 = vmatprep.subr.bf16.mxu1 %v10088_v61  ;;  %v8462_v61 = vld [vmem:[%s13442_s5 + $0x78] sm:$0xff] }
 0x2c1   : > { %9372 = vmatpush3.bf16.msra.mxu0 %v10087_v25  ;;  %v6902_v25 = vld [vmem:[%s13442_s5 + $0x38] sm:$0xff]  ;;  %v9591_v14 = vpack.c.bf16 %v8462_v61, %v8461_v51 }
 0x2c2   : > { %6754 = vmatmul.mubr.bf16.gmra.mrb[148].mxu1 %v6140_v10  ;;  %9373 = vmatprep.subr.bf16.mxu0 %v10090_v29  ;;  %v9603_v20 = vpack.c.bf16 %v6902_v25, %v6901_v11 }
 0x2c3   : > { %9398 = vmatpush3.bf16.msra.mxu1 %v10089_v31  ;;  %6841 = vmatprep.mubr.bf16.mxu1 %v6137_v13 }
 0x2c4   : > { %9399 = vmatprep.subr.bf16.mxu1 %v10092_v35 }
 0x2c5   : > { %9374 = vmatpush3.bf16.msra.mxu0 %v10091_v42  ;;  %v8390_v42 = vld [vmem:[%s13441_s4] ss:$0 sm:$0xff] }
 0x2c6   : > { %9375 = vmatprep.subr.bf16.mxu0 %v10094_v5 }
 0x2c7   : > { %9400 = vmatpush3.bf16.msra.mxu1 %v10093_v43 }
 0x2c8   : > { %9401 = vmatprep.subr.bf16.mxu1 %v10096_v18 }
 0x2c9   : > { %9376 = vmatpush3.bf16.msra.mxu0 %v10095_v56 }
 0x2ca   : > { %9377 = vmatprep.subr.bf16.mxu0 %v10098_v3 }
 0x2cb   : > { %9402 = vmatpush3.bf16.msra.mxu1 %v10097_v36 }
 0x2cc   : > { %9403 = vmatprep.subr.bf16.mxu1 %v10100_v39 }
 0x2cd   : > { %9378 = vmatpush3.bf16.msra.mxu0 %v10099_v9 }
 0x2ce   : > { %9379 = vmatprep.subr.bf16.mxu0 %v10102_v19 }
 0x2cf   : > { %9404 = vmatpush3.bf16.msra.mxu1 %v10101_v60 }
 0x2d0   : > { %9405 = vmatprep.subr.bf16.mxu1 %v10104_v62 }
 0x2d1   : > { %9380 = vmatpush3.bf16.msra.mxu0 %v10103_v63 }
 0x2d2   : > { %9581 = vmatprep.subr.bf16.mxu0 %v10208_v40 }
 0x2d3   : > { %9406 = vmatpush3.bf16.msra.mxu1 %v10105_v8 }
 0x2d4   : > { %6794 = vmatmul.mubr.bf16.vlgmr.msra.gmra.mrb[152].mxu0 %v6134_v49  ;;  %9407 = vmatprep.subr.bf16.mxu1 %v10106_v12 }
 0x2d5   : > { %6801 = vmatprep.mubr.bf16.mxu0 %v6143_v34  ;;  %9583 = vmatpush3.bf16.msra.mxu0 %v9582_v47 }
 0x2d6   : > { %9584 = vmatprep.subr.bf16.mxu0 %v10208_v40 }
 0x2d7   : > { %9408 = vmatpush3.bf16.msra.mxu1 %v10107_v41 }
 0x2d8   : > { %9593 = vmatprep.subr.bf16.mxu1 %v10208_v40 }
 0x2d9   : > { %9586 = vmatpush3.bf16.msra.mxu0 %v9585_v27 }
 0x2da   : > { %6842 = vmatmul.mubr.bf16.vlgmr.msra.gmra.mrb[152].mxu1 %v6136_v37  ;;  %9587 = vmatprep.subr.bf16.mxu0 %v10208_v40 }
 0x2db   : > { %6849 = vmatprep.mubr.bf16.mxu1 %v6145_v45  ;;  %9595 = vmatpush3.bf16.msra.mxu1 %v9594_v23 }
 0x2dc   : > { %6802 = vmatmul.mubr.bf16.gmra.mrb[156].mxu0 %v6142_v0  ;;  %9596 = vmatprep.subr.bf16.mxu1 %v10208_v40 }
 0x2dd   : > { %9487 = vmatprep.mubr.msk.f32.mxu0 %vm10209_vm3, %v10210_v57  ;;  %9589 = vmatpush3.bf16.msra.mxu0 %v9588_v54 }
 0x2de   : > { %9590 = vmatprep.subr.bf16.mxu0 %v10208_v40 }
 0x2df   : > { %9598 = vmatpush3.bf16.msra.mxu1 %v9597_v21 }
 0x2e0   : > { %9599 = vmatprep.subr.bf16.mxu1 %v10208_v40 }
 0x2e1   : > { %9592 = vmatpush3.bf16.msra.mxu0 %v9591_v14 }
 0x2e2   : > { %6850 = vmatmul.mubr.bf16.gmra.mrb[156].mxu1 %v6144_v17  ;;  %9605 = vmatprep.subr.bf16.mxu0 %v10208_v40 }
 0x2e3   : > { %9506 = vmatprep.mubr.msk.f32.mxu1 %vm10209_vm3, %v10210_v57  ;;  %9601 = vmatpush3.bf16.msra.mxu1 %v9600_v4 }
 0x2e4   : > { %9602 = vmatprep.subr.bf16.mxu1 %v10208_v40 }
 0x2e7   : > { %9604 = vmatpush3.bf16.msra.mxu1 %v9603_v20 }
 0x2e8   : > { %9617 = vmatprep.subr.bf16.mxu1 %v10208_v40 }
 0x387   : > { %v9325_v29 = vpop.f32.mrb[144].mxu0 }
 0x388   : > { %v9326_v31 = vpop.f32.mrb[145].mxu0 }
 0x389   : > { %v9327_v10 = vadd.f32 %v9326_v31, %v9325_v29  ;;  %v9328_v26 = vpop.f32.mrb[146].mxu0 }
 0x38a   : > { %v9329_v35 = vpop.f32.mrb[147].mxu0 }
 0x38b   : > { %v9330_v13 = vadd.f32 %v9329_v35, %v9328_v26  ;;  %v6700_v18 = vadd.f32 %v9327_v10, %v8390_v42 }
 0x38d   : > { %v9353_v5 = vpop.f32.mrb[144].mxu1  ;;  %v6703_v19 = vadd.f32 %v9330_v13, %v8390_v42 }
 0x38e   : > { %v9354_v43 = vpop.f32.mrb[145].mxu1 }
 0x38f   : > { %v9355_v56 = vadd.f32 %v9354_v43, %v9353_v5  ;;  %v9356_v3 = vpop.f32.mrb[146].mxu1  ;;  %v9331_v36 = vpop.f32.mrb[148].mxu0 }
 0x390   : > { %v9357_v39 = vpop.f32.mrb[147].mxu1  ;;  %v9332_v9 = vpop.f32.mrb[149].mxu0 }
 0x391   : > { %v6748_v60 = vadd.f32 %v9355_v56, %v6700_v18  ;;  %v9358_v6 = vadd.f32 %v9357_v39, %v9356_v3  ;;  %v9333_v62 = vadd.f32 %v9332_v9, %v9331_v36  ;;  %v9334_v63 = vpop.f32.mrb[150].mxu0  ;;  %v8465_v9 = vld [vmem:[%s13442_s5 + $0x80] sm:$0xff] }
 0x392   : > { %v9335_v7 = vpop.f32.mrb[151].mxu0 }
 0x393   : > { %v6751_v8 = vadd.f32 %v9358_v6, %v6703_v19  ;;  %v6708_v12 = vadd.f32 %v9333_v62, %v8390_v42  ;;  %v8466_v19 = vld [vmem:[%s13442_s5 + $0x88] sm:$0xff]  ;;  %v8467_v6 = vld [vmem:[%s13442_s5 + $0x90] sm:$0xff]  ;;  %v8468_v62 = vld [vmem:[%s13442_s5 + $0x98] sm:$0xff] }
 0x395   : > { %v9359_v22 = vpop.f32.mrb[148].mxu1 }
 0x396   : > { %v9360_v2 = vpop.f32.mrb[149].mxu1 }
 0x397   : > { %v9361_v48 = vadd.f32 %v9360_v2, %v9359_v22  ;;  %v9362_v50 = vpop.f32.mrb[150].mxu1  ;;  %v8469_v22 = vld [vmem:[%s13442_s5 + $0xa0] sm:$0xff]  ;;  %v8470_v2 = vld [vmem:[%s13442_s5 + $0xa8] sm:$0xff] }
 0x398   : > { %v9363_v49 = vpop.f32.mrb[151].mxu1  ;;  %v8472_v50 = vld [vmem:[%s13442_s5 + $0xb8] sm:$0xff] }
 0x399   : > { %v6756_v34 = vadd.f32 %v9361_v48, %v6708_v12  ;;  %v9612_v12 = vpack.c.bf16 %v8470_v2, %v8469_v22  ;;  %v8471_v48 = vld [vmem:[%s13442_s5 + $0xb0] sm:$0xff] }
 0x3a7   : > { %v9381_v41 = vpop.f32.mrb[152].mxu0 }
 0x3a8   : > { %v9382_v1 = vpop.f32.mrb[153].mxu0 }
 0x3a9   : > { %v9383_v38 = vadd.f32 %v9382_v1, %v9381_v41  ;;  %v9384_v46 = vpop.f32.mrb[154].mxu0 }
 0x3aa   : > { %v9385_v55 = vpop.f32.mrb[155].mxu0 }
 0x3ab   : > { %v6796_v37 = vadd.f32 %v9383_v38, %v6748_v60  ;;  %v9386_v45 = vadd.f32 %v9385_v55, %v9384_v46  ;;  %v9606_v60 = vpack.c.bf16 %v8466_v19, %v8465_v9  ;;  %v7160_v46 = vld [vmem:[%s13444_s7] sm:$0xff]  ;;  %v7161_v55 = vld [vmem:[%s13444_s7 + $0x8] sm:$0xff] }
 0x3ad   : > { %v6799_v0 = vadd.f32 %v9386_v45, %v6751_v8  ;;  %v9409_v17 = vpop.f32.mrb[152].mxu1  ;;  %v9609_v8 = vpack.c.bf16 %v8468_v62, %v8467_v6  ;;  %v7162_v45 = vld [vmem:[%s13444_s7 + $0x10] sm:$0xff] }
 0x3ae   : > { %v9410_v58 = vpop.f32.mrb[153].mxu1 }
 0x3af   : > { %v9411_v30 = vadd.f32 %v9410_v58, %v9409_v17  ;;  %v9412_v47 = vpop.f32.mrb[154].mxu1  ;;  %v9387_v53 = vpop.f32.mrb[156].mxu0 }
 0x3b0   : > { %v9413_v32 = vpop.f32.mrb[155].mxu1  ;;  %v9388_v23 = vpop.f32.mrb[157].mxu0 }
 0x3b1   : > { %v6844_v28 = vadd.f32 %v9411_v30, %v6796_v37  ;;  %v9414_v24 = vadd.f32 %v9413_v32, %v9412_v47  ;;  %v9389_v27 = vadd.f32 %v9388_v23, %v9387_v53  ;;  %v9390_v44 = vpop.f32.mrb[158].mxu0  ;;  %v9618_v37 = vpack.c.bf16 %v7161_v55, %v7160_v46  ;;  %v7248_v46 = vld [vmem:[%s13446_s9 + $0x18] sm:$0xff] }
 0x3b2   : > { %v9391_v16 = vpop.f32.mrb[159].mxu0 }
 0x3b3   : > { %v6857_v59 = vmax.f32 %v6844_v28, 0.0  ;;  %v6847_v21 = vadd.f32 %v9414_v24, %v6799_v0  ;;  %v6804_v15 = vadd.f32 %v9389_v27, %v6756_v34  ;;  %v9615_v34 = vpack.c.bf16 %v8472_v50, %v8471_v48  ;;  %v7163_v0 = vld [vmem:[%s13444_s7 + $0x18] sm:$0xff]  ;;  %v8474_v28 = vld [vmem:[%s13443_s6] ss:$0 sm:$0xff] }
 0x3b4   : > { %v9621_v17 = vpack.c.bf16 %v7163_v0, %v7162_v45 }
 0x3b5   : > { %v6858_v33 = vmax.f32 %v6847_v21, 0.0  ;;  %v9415_v52 = vpop.f32.mrb[156].mxu1  ;;  %v6863_v54 = vrot.slane %v6857_v59, 1  ;;  %v6874_v51 = vrot.slane %v6857_v59, 2 }
 0x3b6   : > { %v9416_v4 = vpop.f32.mrb[157].mxu1 }
 0x3b7   : > { %v6864_v61 = vrot.slane %v6858_v33, 1  ;;  %v6875_v11 = vrot.slane %v6858_v33, 2  ;;  %v9417_v25 = vadd.f32 %v9416_v4, %v9415_v52  ;;  %v9418_v14 = vpop.f32.mrb[158].mxu1  ;;  %v8475_v52 = vld [vmem:[%s13445_s8] ss:$0 sm:$0xff] }
 0x3b8   : > { %v9419_v20 = vpop.f32.mrb[159].mxu1 }
 0x3b9   : > { %v6865_v29 = vsel %vm657_vm0, %v6863_v54, %v6864_v61  ;;  %v6876_v31 = vsel %vm910_vm1, %v6874_v51, %v6875_v11  ;;  %v6852_v10 = vadd.f32 %v9417_v25, %v6804_v15 }
 0x3ba   : > { %v6871_v26 = vmax.f32 %v6857_v59, %v6865_v29 }
 0x3bb   : > { %v6859_v35 = vmax.f32 %v6852_v10, 0.0 }
 0x3bc   : > { %v6882_v13 = vmax.f32 %v6871_v26, %v6876_v31 }
 0x3bd   : > { %v6866_v42 = vrot.slane %v6859_v35, 1  ;;  %v6877_v5 = vrot.slane %v6859_v35, 2 }
 0x3be   : > { %6886 = vst.msk [vmem:[#allocation3] sm:$0xff] %vm6885_vm4, %v6882_v13 }
 0x3bf   : > { %v6867_v43 = vsel %vm657_vm0, %v6864_v61, %v6866_v42  ;;  %v6873_v18 = vmax.f32 %v6859_v35, %v6866_v42  ;;  %v6878_v56 = vsel %vm910_vm1, %v6875_v11, %v6877_v5 }
 0x3c0   : > { %v6872_v3 = vmax.f32 %v6858_v33, %v6867_v43  ;;  %v7246_v43 = vld [vmem:[%s13446_s9 + $0x8] sm:$0xff] }
 0x3c1   : > { %v6884_v36 = vmax.f32 %v6873_v18, %v6877_v5  ;;  %v7245_v5 = vld [vmem:[%s13446_s9] sm:$0xff] }
 0x3c2   : > { %v6883_v39 = vmax.f32 %v6872_v3, %v6878_v56  ;;  %v9624_v18 = vpack.c.bf16 %v7246_v43, %v7245_v5 }
 0x3c3   : > { %6889 = vst.msk [vmem:[#allocation3 + $0x10] sm:$0x1] %vm6888_vm5, %v6884_v36 }
 0x3c4   : > { %6887 = vst.msk [vmem:[#allocation3 + $0x8] sm:$0xff] %vm6885_vm4, %v6883_v39 }
 0x3ca   : > { %v6892_v49 = vld [vmem:[#allocation3 + $0x10] ss:$2 sm:$0x1] }
 0x3cb   : > { %v6894_v63 = vld [vmem:[#allocation3 + $0x1] ss:$2 sm:$0xff]  ;;  %v6890_v7 = vld [vmem:[#allocation3] ss:$2 sm:$0xff]  ;;  %v7069_v1 = vrot.slane %v6892_v49, 1 }
 0x3cc   : > { %9488 = vmatmul.mubr.msk.f32.vlgmr.msra.gmra.mrb[160].mxu0 %vm6885_vm4, %v6894_v63  ;;  %9507 = vmatmul.mubr.msk.f32.vlgmr.msra.gmra.mrb[160].mxu1 %vm6885_vm4, %v6890_v7  ;;  %v7068_v41 = vrot.slane %v6890_v7, 1 }
 0x3cd   : > { %9607 = vmatpush3.bf16.msra.mxu0 %v9606_v60  ;;  %9525 = vmatprep.mubr.msk.f32.mxu0 %vm10209_vm3, %v10210_v57 }
 0x3ce   : > { %9608 = vmatprep.subr.bf16.mxu0 %v10208_v40  ;;  %9536 = vmatprep.mubr.msk.f32.mxu1 %vm10209_vm3, %v10210_v57  ;;  %v7070_v38 = vsel %vm657_vm0, %v7068_v41, %v7069_v1 }
 0x3cf   : > { %9619 = vmatpush3.bf16.msra.mxu1 %v9618_v37 }
 0x3d0   : > { %9620 = vmatprep.subr.bf16.mxu1 %v10208_v40 }
 0x3d1   : > { %9610 = vmatpush3.bf16.msra.mxu0 %v9609_v8 }
 0x3d2   : > { %9611 = vmatprep.subr.bf16.mxu0 %v10208_v40 }
 0x3d3   : > { %9622 = vmatpush3.bf16.msra.mxu1 %v9621_v17 }
 0x3d4   : > { %9623 = vmatprep.subr.bf16.mxu1 %v10208_v40 }
 0x3d5   : > { %9613 = vmatpush3.bf16.msra.mxu0 %v9612_v12 }
 0x3d6   : > { %9614 = vmatprep.subr.bf16.mxu0 %v10208_v40 }
 0x3d9   : > { %9616 = vmatpush3.bf16.msra.mxu0 %v9615_v34 }
 0x3da   : > { %9629 = vmatprep.subr.bf16.mxu0 %v10208_v40 }
 0x3dc   : > { %9526 = vmatmul.mubr.msk.f32.vlgmr.msra.gmra.mrb[162].mxu0 %vm6885_vm4, %v7070_v38  ;;  %v7247_v38 = vld [vmem:[%s13446_s9 + $0x10] sm:$0xff] }
 0x3dd   : > { %9557 = vmatprep.mubr.msk.f32.mxu0 %vm10209_vm3, %v10210_v57  ;;  %v9627_v55 = vpack.c.bf16 %v7248_v46, %v7247_v38 }
 0x49f   : > { %v6981_v58 = vpop.f32.mrb[160].mxu0  ;;  %v7054_v30 = vpop.f32.mrb[160].mxu1 }
 0x4a0   : > { %v7055_v47 = vadd.f32 %v7054_v30, %v6981_v58  ;;  %v9489_v53 = vpop.f32.mrb[161].mxu0  ;;  %v9508_v32 = vpop.f32.mrb[161].mxu1 }
 0x4af   : > { %v7139_v23 = vpop.f32.mrb[162].mxu0 }
 0x4b0   : > { %v7143_v24 = vadd.f32 %v7139_v23, %v7055_v47  ;;  %v9527_v27 = vpop.f32.mrb[163].mxu0 }
 0x4b2   : > { %v7151_v44 = vadd.f32 %v8474_v28, %v7143_v24 }
 0x4b4   : > { %v7152_v16 = vmax.f32 %v7151_v44, 0.0 }
 0x4b6   : > { %v7154_v59 = vrot.slane %v7152_v16, 1  ;;  %v7157_v15 = vrot.slane %v7152_v16, 2 }
 0x4b8   : > { %v7156_v21 = vmax.f32 %v7152_v16, %v7154_v59 }
 0x4ba   : > { %v7159_v33 = vmax.f32 %v7156_v21, %v7157_v15 }
 0x4bc   : > { %9537 = vmatmul.mubr.msk.f32.vlgmr.msra.gmra.mrb[162].mxu1 %vm7171_vm6, %v7159_v33 }
 0x4bd   : > { %9543 = vmatprep.mubr.msk.f32.mxu1 %vm10209_vm3, %v10210_v57  ;;  %9625 = vmatpush3.bf16.msra.mxu1 %v9624_v18 }
 0x4be   : > { %9626 = vmatprep.subr.bf16.mxu1 %v10208_v40 }
 0x58f   : > { %v7241_v54 = vpop.f32.mrb[162].mxu1 }
 0x590   : > { %v13336_v4 = vadd.f32 %v8475_v52, %v7241_v54  ;;  %v9538_v51 = vpop.f32.mrb[163].mxu1 }
 0x592   : > { %v7258_v61 = vsub.f32 0.0, %v13336_v4 }
 0x594   : > { %v7259_v11 = vmul.f32 1.442695, %v7258_v61 }
 0x596   : > { %10108 = vpow2.f32 %v7259_v11  ;;  %v7249_v11 = vld [vmem:[%s13446_s9 + $0x20] sm:$0xff] }
 0x5a0   : > { %v10109_v25 = vpop.eup %10108 }
 0x5a1   : > { %v7261_v14 = vadd.f32 1.0, %v10109_v25  ;;  %v7250_v25 = vld [vmem:[%s13446_s9 + $0x28] sm:$0xff] }
 0x5a3   : > { %10110 = vrcp.f32 %v7261_v14  ;;  %v9630_v14 = vpack.c.bf16 %v7250_v25, %v7249_v11 }
 0x5a5   : > { %9631 = vmatpush3.bf16.msra.mxu0 %v9630_v14 }
 0x5a6   : > { %9635 = vmatprep.subr.bf16.mxu0 %v10208_v40 }
 0x5ad   : > { %v10111_v20 = vpop.eup %10110 }
 0x5ae   : > { %v7264_v29 = vmul.f32 2.0, %v10111_v20  ;;  %v7266_v35 = vmul.f32 0.0, %v10111_v20 }
 0x5b0   : > { %v8477_v31 = vadd.f32 -1.0, %v7264_v29 }
 0x5b2   : > { %7268 = vrot.lane.b32.xlu0 %v8477_v31, %s10211_s16 }
 0x624   : > { %v7269_v10 = vpop.permute.xlu0 %7268 }
 0x625   : > { %v7271_v26 = vmul.f32 %v10111_v20, %v7269_v10 }
 0x627   : > { %7273 = vrot.lane.b32.xlu0 %v7271_v26, %s10212_s17 }
 0x699   : > { %v7274_v13 = vpop.permute.xlu0 %7273 }
 0x69a   : > { %v7276_v42 = vadd.f32 %v7274_v13, %v7266_v35 }
 0x69c   : > { %10112 = vtanh.f32 %v7276_v42  ;;  %v7373_v49 = vrot.slane %v7276_v42, 7 }
 0x6a6   : > { %v10113_v56 = vpop.eup %10112 }
 0x6a7   : > { %7279 = vrot.lane.b32.xlu1 %v10113_v56, %s10213_s21 }
 0x719   : > { %v7280_v3 = vpop.permute.xlu1 %7279 }
 0x71a   : > { %v7282_v36 = vmul.f32 %v10111_v20, %v7280_v3 }
 0x71c   : > { %7284 = vrot.lane.b32.xlu1 %v7282_v36, %s10214_s22 }
 0x78e   : > { %v7285_v39 = vpop.permute.xlu1 %7284 }
 0x78f   : > { %9544 = vmatmul.mubr.msk.f32.vlgmr.msra.gmra.mrb[164].mxu1 %vm7286_vm7, %v7285_v39 }
 0x790   : > { %9550 = vmatprep.mubr.msk.f32.mxu1 %vm10209_vm3, %v10210_v57  ;;  %9628 = vmatpush3.bf16.msra.mxu1 %v9627_v55 }
 0x791   : > { %9632 = vmatprep.subr.bf16.mxu1 %v10208_v40 }
 0x862   : > { %v7355_v9 = vpop.f32.mrb[164].mxu1 }
 0x863   : > { %v7361_v19 = vrot.slane %v7355_v9, 7  ;;  %v9545_v60 = vpop.f32.mrb[165].mxu1 }
 0x865   : > { %v7363_v6 = vadd.f32 %v7361_v19, %v13336_v4 }
 0x867   : > { %v7364_v62 = vsub.f32 0.0, %v7363_v6 }
 0x869   : > { %v7365_v63 = vmul.f32 1.442695, %v7364_v62 }
 0x86b   : > { %10114 = vpow2.f32 %v7365_v63 }
 0x875   : > { %v10115_v7 = vpop.eup %10114 }
 0x876   : > { %v7367_v8 = vadd.f32 1.0, %v10115_v7 }
 0x878   : > { %10116 = vrcp.f32 %v7367_v8 }
 0x882   : > { %v10117_v22 = vpop.eup %10116 }
 0x883   : > { %v7370_v2 = vmul.f32 2.0, %v10117_v22  ;;  %v7375_v34 = vmul.f32 %v10117_v22, %v7373_v49 }
 0x885   : > { %v8479_v12 = vadd.f32 -1.0, %v7370_v2  ;;  %v7252_v2 = vld [vmem:[%s13446_s9 + $0x38] sm:$0xff] }
 0x887   : > { %7377 = vrot.lane.b32.xlu0 %v8479_v12, %s10211_s16 }
 0x8f9   : > { %v7378_v48 = vpop.permute.xlu0 %7377 }
 0x8fa   : > { %v7380_v50 = vmul.f32 %v10117_v22, %v7378_v48 }
 0x8fc   : > { %7382 = vrot.lane.b32.xlu1 %v7380_v50, %s10212_s17 }
 0x96e   : > { %v7383_v41 = vpop.permute.xlu1 %7382 }
 0x96f   : > { %v7385_v1 = vadd.f32 %v7383_v41, %v7375_v34 }
 0x971   : > { %10118 = vtanh.f32 %v7385_v1  ;;  %v7482_v52 = vrot.slane %v7385_v1, 7 }
 0x97b   : > { %v10119_v37 = vpop.eup %10118 }
 0x97c   : > { %7388 = vrot.lane.b32.xlu0 %v10119_v37, %s10213_s21 }
 0x9ee   : > { %v7389_v45 = vpop.permute.xlu0 %7388 }
 0x9ef   : > { %v7391_v0 = vmul.f32 %v10117_v22, %v7389_v45  ;;  %v7251_v22 = vld [vmem:[%s13446_s9 + $0x30] sm:$0xff] }
 0x9f0   : > { %v9633_v12 = vpack.c.bf16 %v7252_v2, %v7251_v22 }
 0x9f1   : > { %v7393_v17 = vrot.slane %v7391_v0, 1 }
 0x9f3   : > { %7394 = vrot.lane.b32.xlu1 %v7393_v17, %s10214_s22 }
 0xa65   : > { %v7395_v58 = vpop.permute.xlu1 %7394 }
 0xa66   : > { %9551 = vmatmul.mubr.msk.f32.vlgmr.msra.gmra.mrb[166].mxu1 %vm7286_vm7, %v7395_v58 }
 0xa67   : > { %9564 = vmatprep.mubr.msk.f32.mxu1 %vm10209_vm3, %v10210_v57  ;;  %9634 = vmatpush3.bf16.msra.mxu1 %v9633_v12 }
 0xa68   : > { %9638 = vmatprep.subr.bf16.mxu1 %v10208_v40 }
 0xb39   : > { %v7464_v30 = vpop.f32.mrb[166].mxu1 }
 0xb3a   : > { %v7468_v47 = vadd.f32 %v7464_v30, %v7355_v9  ;;  %v7470_v53 = vrot.slane %v7464_v30, 6  ;;  %v9552_v32 = vpop.f32.mrb[167].mxu1 }
 0xb3c   : > { %v7472_v23 = vadd.f32 %v7470_v53, %v13336_v4 }
 0xb3e   : > { %v7473_v28 = vsub.f32 0.0, %v7472_v23 }
 0xb40   : > { %v7474_v24 = vmul.f32 1.442695, %v7473_v28 }
 0xb42   : > { %10120 = vpow2.f32 %v7474_v24 }
 0xb4c   : > { %v10121_v27 = vpop.eup %10120 }
 0xb4d   : > { %v7476_v44 = vadd.f32 1.0, %v10121_v27  ;;  %v7253_v27 = vld [vmem:[%s13446_s9 + $0x40] sm:$0xff] }
 0xb4f   : > { %10122 = vrcp.f32 %v7476_v44  ;;  %v7254_v44 = vld [vmem:[%s13446_s9 + $0x48] sm:$0xff] }
 0xb59   : > { %v10123_v16 = vpop.eup %10122 }
 0xb5a   : > { %v7479_v59 = vmul.f32 2.0, %v10123_v16  ;;  %v7484_v54 = vmul.f32 %v10123_v16, %v7482_v52 }
 0xb5c   : > { %v8481_v21 = vadd.f32 -1.0, %v7479_v59 }
 0xb5e   : > { %7486 = vrot.lane.b32.xlu0 %v8481_v21, %s10211_s16 }
 0xbd0   : > { %v7487_v15 = vpop.permute.xlu0 %7486 }
 0xbd1   : > { %v7489_v33 = vmul.f32 %v10123_v16, %v7487_v15 }
 0xbd3   : > { %7491 = vrot.lane.b32.xlu1 %v7489_v33, %s10212_s17 }
 0xc45   : > { %v7492_v51 = vpop.permute.xlu1 %7491 }
 0xc46   : > { %v7494_v61 = vadd.f32 %v7492_v51, %v7484_v54 }
 0xc48   : > { %10124 = vtanh.f32 %v7494_v61  ;;  %v7591_v62 = vrot.slane %v7494_v61, 7 }
 0xc52   : > { %v10125_v20 = vpop.eup %10124 }
 0xc53   : > { %7497 = vrot.lane.b32.xlu0 %v10125_v20, %s10213_s21 }
 0xcc5   : > { %v7498_v29 = vpop.permute.xlu0 %7497 }
 0xcc6   : > { %v7500_v31 = vmul.f32 %v10123_v16, %v7498_v29  ;;  %v9636_v16 = vpack.c.bf16 %v7254_v44, %v7253_v27 }
 0xcc8   : > { %v7502_v10 = vrot.slane %v7500_v31, 2 }
 0xcca   : > { %7503 = vrot.lane.b32.xlu1 %v7502_v10, %s10214_s22 }
 0xd3c   : > { %v7504_v26 = vpop.permute.xlu1 %7503 }
 0xd3d   : > { %9558 = vmatmul.mubr.msk.f32.vlgmr.msra.gmra.mrb[164].mxu0 %vm7286_vm7, %v7504_v26 }
 0xd3e   : > { %9571 = vmatprep.mubr.msk.f32.mxu0 %vm10209_vm3, %v10210_v57  ;;  %9637 = vmatpush3.bf16.msra.mxu0 %v9636_v16 }
 0xe10   : > { %v7573_v35 = vpop.f32.mrb[164].mxu0 }
 0xe11   : > { %v7577_v13 = vadd.f32 %v7573_v35, %v7468_v47  ;;  %v7579_v42 = vrot.slane %v7573_v35, 5  ;;  %v9559_v5 = vpop.f32.mrb[165].mxu0 }
 0xe13   : > { %v7581_v43 = vadd.f32 %v7579_v42, %v13336_v4 }
 0xe15   : > { %v7582_v18 = vsub.f32 0.0, %v7581_v43 }
 0xe17   : > { %v7583_v56 = vmul.f32 1.442695, %v7582_v18 }
 0xe19   : > { %10126 = vpow2.f32 %v7583_v56 }
 0xe23   : > { %v10127_v3 = vpop.eup %10126 }
 0xe24   : > { %v7585_v36 = vadd.f32 1.0, %v10127_v3  ;;  %v7256_v3 = vld [vmem:[%s13446_s9 + $0x58] sm:$0xff] }
 0xe26   : > { %10128 = vrcp.f32 %v7585_v36 }
 0xe30   : > { %v10129_v39 = vpop.eup %10128 }
 0xe31   : > { %v7588_v9 = vmul.f32 2.0, %v10129_v39  ;;  %v7593_v63 = vmul.f32 %v10129_v39, %v7591_v62  ;;  %v8490_v62 = vld [vmem:[%s13448_s11] ss:$0 sm:$0xff] }
 0xe33   : > { %v8483_v19 = vadd.f32 -1.0, %v7588_v9  ;;  %v8489_v9 = vld [vmem:[%s13447_s10] ss:$0 sm:$0xff] }
 0xe35   : > { %7595 = vrot.lane.b32.xlu0 %v8483_v19, %s10211_s16 }
 0xea7   : > { %v7596_v60 = vpop.permute.xlu0 %7595 }
 0xea8   : > { %v7598_v6 = vmul.f32 %v10129_v39, %v7596_v60 }
 0xeaa   : > { %7600 = vrot.lane.b32.xlu1 %v7598_v6, %s10212_s17 }
 0xf1c   : > { %v7601_v7 = vpop.permute.xlu1 %7600 }
 0xf1d   : > { %v7603_v8 = vadd.f32 %v7601_v7, %v7593_v63 }
 0xf1f   : > { %10130 = vtanh.f32 %v7603_v8 }
 0xf29   : > { %v10131_v48 = vpop.eup %10130 }
 0xf2a   : > { %7606 = vrot.lane.b32.xlu0 %v10131_v48, %s10213_s21 }
 0xf9c   : > { %v7607_v50 = vpop.permute.xlu0 %7606 }
 0xf9d   : > { %v7609_v49 = vmul.f32 %v10129_v39, %v7607_v50 }
 0xf9f   : > { %v7611_v34 = vrot.slane %v7609_v49, 3 }
 0xfa1   : > { %7612 = vrot.lane.b32.xlu1 %v7611_v34, %s10214_s22 }
0x1013   : > { %v7613_v41 = vpop.permute.xlu1 %7612 }
0x1014   : > { %9565 = vmatmul.mubr.msk.f32.vlgmr.msra.gmra.mrb[168].mxu1 %vm7286_vm7, %v7613_v41 }
0x1015   : > { %9578 = vmatprep.mubr.msk.f32.mxu1 %vm10209_vm3, %v10210_v57  ;;  %v7700_v57 = vrot.slane %v7603_v8, 7 }
0x10e7   : > { %v7682_v1 = vpop.f32.mrb[168].mxu1 }
0x10e8   : > { %v7686_v38 = vadd.f32 %v7682_v1, %v7577_v13  ;;  %v7688_v46 = vrot.slane %v7682_v1, 4  ;;  %v9566_v55 = vpop.f32.mrb[169].mxu1  ;;  %v7933_v1 = vld [vmem:[#allocation4] sm:$0x1] }
0x10ea   : > { %v7690_v40 = vadd.f32 %v7688_v46, %v13336_v4 }
0x10ec   : > { %v7691_v37 = vsub.f32 0.0, %v7690_v40 }
0x10ee   : > { %v7692_v45 = vmul.f32 1.442695, %v7691_v37 }
0x10f0   : > { %10132 = vpow2.f32 %v7692_v45 }
0x10fa   : > { %v10133_v0 = vpop.eup %10132 }
0x10fb   : > { %v7694_v17 = vadd.f32 1.0, %v10133_v0 }
0x10fd   : > { %10134 = vrcp.f32 %v7694_v17 }
0x1107   : > { %v10135_v58 = vpop.eup %10134 }
0x1108   : > { %v7697_v30 = vmul.f32 2.0, %v10135_v58  ;;  %v7702_v23 = vmul.f32 %v10135_v58, %v7700_v57 }
0x110a   : > { %v8485_v47 = vadd.f32 -1.0, %v7697_v30 }
0x110c   : > { %7704 = vrot.lane.b32.xlu0 %v8485_v47, %s10211_s16 }
0x117e   : > { %v7705_v53 = vpop.permute.xlu0 %7704 }
0x117f   : > { %v7707_v32 = vmul.f32 %v10135_v58, %v7705_v53 }
0x1181   : > { %7709 = vrot.lane.b32.xlu1 %v7707_v32, %s10212_s17 }
0x11f3   : > { %v7710_v28 = vpop.permute.xlu1 %7709 }
0x11f4   : > { %v7712_v24 = vadd.f32 %v7710_v28, %v7702_v23 }
0x11f6   : > { %10136 = vtanh.f32 %v7712_v24  ;;  %v7809_v5 = vrot.slane %v7712_v24, 7 }
0x1200   : > { %v10137_v59 = vpop.eup %10136 }
0x1201   : > { %7715 = vrot.lane.b32.xlu0 %v10137_v59, %s10213_s21 }
0x1273   : > { %v7716_v21 = vpop.permute.xlu0 %7715 }
0x1274   : > { %v7718_v15 = vmul.f32 %v10135_v58, %v7716_v21 }
0x1276   : > { %v7720_v33 = vrot.slane %v7718_v15, 4 }
0x1278   : > { %7721 = vrot.lane.b32.xlu1 %v7720_v33, %s10214_s22 }
0x12ea   : > { %v7722_v52 = vpop.permute.xlu1 %7721 }
0x12eb   : > { %9572 = vmatmul.mubr.msk.f32.vlgmr.msra.gmra.mrb[166].mxu0 %vm7286_vm7, %v7722_v52 }
0x13be   : > { %v7791_v54 = vpop.f32.mrb[166].mxu0 }
0x13bf   : > { %v7795_v51 = vadd.f32 %v7791_v54, %v7686_v38  ;;  %v7797_v61 = vrot.slane %v7791_v54, 3  ;;  %v9573_v11 = vpop.f32.mrb[167].mxu0 }
0x13c1   : > { %v7799_v25 = vadd.f32 %v7797_v61, %v13336_v4  ;;  %v7255_v4 = vld [vmem:[%s13446_s9 + $0x50] sm:$0xff] }
0x13c2   : > { %v9639_v36 = vpack.c.bf16 %v7256_v3, %v7255_v4 }
0x13c3   : > { %v7800_v14 = vsub.f32 0.0, %v7799_v25 }
0x13c4   : > { %9640 = vmatpush3.bf16.msra.mxu1 %v9639_v36 }
0x13c5   : > { %v7801_v20 = vmul.f32 1.442695, %v7800_v14 }
0x13c7   : > { %10138 = vpow2.f32 %v7801_v20 }
0x13d1   : > { %v10139_v29 = vpop.eup %10138 }
0x13d2   : > { %v7803_v31 = vadd.f32 1.0, %v10139_v29 }
0x13d4   : > { %10140 = vrcp.f32 %v7803_v31 }
0x13de   : > { %v10141_v10 = vpop.eup %10140 }
0x13df   : > { %v7806_v26 = vmul.f32 2.0, %v10141_v10  ;;  %v7811_v43 = vmul.f32 %v10141_v10, %v7809_v5 }
0x13e1   : > { %v8487_v35 = vadd.f32 -1.0, %v7806_v26 }
0x13e3   : > { %7813 = vrot.lane.b32.xlu0 %v8487_v35, %s10211_s16 }
0x1455   : > { %v7814_v13 = vpop.permute.xlu0 %7813 }
0x1456   : > { %v7816_v42 = vmul.f32 %v10141_v10, %v7814_v13 }
0x1458   : > { %7818 = vrot.lane.b32.xlu1 %v7816_v42, %s10212_s17 }
0x14ca   : > { %v7819_v18 = vpop.permute.xlu1 %7818 }
0x14cb   : > { %v7821_v56 = vadd.f32 %v7819_v18, %v7811_v43 }
0x14cd   : > { %10142 = vtanh.f32 %v7821_v56 }
0x14d7   : > { %v10143_v39 = vpop.eup %10142 }
0x14d8   : > { %7824 = vrot.lane.b32.xlu0 %v10143_v39, %s10213_s21  ;;  %s8004_s21 = sshll.u32 %s13652_s28, 3 }
0x14d9   : > { %s445_s24 = scalar_lea.vmem %s13450_s13, %s8004_s21 }
0x14dc   : > { %7911 = vrot.lane.b32.xlu0 %v8489_v9, %s10215_s30 }
0x154a   : > { %v7825_v19 = vpop.permute.xlu0 %7824 }
0x154b   : > { %v7827_v60 = vmul.f32 %v10141_v10, %v7825_v19 }
0x154d   : > { %v7829_v6 = vrot.slane %v7827_v60, 5 }
0x154e   : > { %v7912_v8 = vpop.permute.xlu0 %7911 }
0x154f   : > { %7830 = vrot.lane.b32.xlu1 %v7829_v6, %s10214_s22 }
0x1553   : > { %7922 = vrot.lane.b32.xlu1 %v8490_v62, %s10215_s30 }
0x15c1   : > { %v7831_v63 = vpop.permute.xlu1 %7830 }
0x15c2   : > { %9579 = vmatmul.mubr.msk.f32.vlgmr.msra.gmra.mrb[170].mxu1 %vm7286_vm7, %v7831_v63 }
0x15c5   : > { %v7923_v48 = vpop.permute.xlu1 %7922 }
0x1695   : > { %v7900_v7 = vpop.f32.mrb[170].mxu1 }
0x1696   : > { %v7904_v22 = vadd.f32 %v7900_v7, %v7795_v51  ;;  %v9580_v2 = vpop.f32.mrb[171].mxu1 }
0x1698   : > { %v7914_v12 = vadd.f32 %v7912_v8, %v7904_v22 }
0x169a   : > { %v7915_v50 = vmax.f32 %v7914_v12, 0.0 }
0x169c   : > { %v7925_v49 = vmul.f32 %v7923_v48, %v7915_v50 }
0x169e   : > { %7927 = vrot.lane.b32.xlu0 %v7925_v49, %s10215_s30 }
0x1710   : > { %v7928_v34 = vpop.permute.xlu0 %7927 }
0x1711   : > { %v7930_v41 = vsel %vm6888_vm5, %v7928_v34, 0.0 }
0x1712   : > { %7931 = vadd.xlane.f32.xlu1 %v7930_v41 }
0x179f   : > { %v7932_v38 = vpop.xlane.xlu1 %7931 }
0x17a0   : > { %v7934_v46 = vadd.f32 %v7933_v1, %v7932_v38 }
0x17a2   : > { %v7935_v55 = vsub.f32 0.0, %v7934_v46 }
0x17a4   : > { %v7936_v40 = vmul.f32 1.442695, %v7935_v55 }
0x17a6   : > { %10144 = vpow2.f32 %v7936_v40 }
0x17b0   : > { %v10145_v37 = vpop.eup %10144 }
0x17b1   : > { %v7938_v45 = vadd.f32 1.0, %v10145_v37 }
0x17b3   : > { %10146 = vrcp.f32 %v7938_v45 }
0x17bd   : > { %v10147_v0 = vpop.eup %10146 }
0x17be   : > { %9642 = vpush %v10147_v0 }
0x17ef   : > { %s9643_s25 = spop %9642 }
0x17f0   : > { %v7942_v17 = vstv %s9643_s25 }
0x17f1   : > { %7944 = vst [vmem:[%s445_s24] sm:$0xff] %v7942_v17 }
0x17f2 PF: > { %s25_s27 = sadd.s32 1, %s10206_s27  }
0x17f3   : > { %p22_p5 = scmp.ge.s32.totalorder %s25_s27, 4  }
0x17f5   :  { %24 = sbr.rel (!%p22_p5) target bundleno = 3 (0x3), region = 111 }

</bundles_post_ra>
